<compile_context>
chip_gen: v7x
topology: tpu7x:2x2x1
jax: 0.10.0
libtpu: 0.0.40
codegen_flags: <defaults>
</compile_context>

<pallas_src>
import jax
import jax.numpy as jnp
from jax.experimental import pallas as pl
from jax.experimental.pallas import tpu as pltpu

# Scaled-down but structurally identical hyper-parameters.
# out_channels stays 88 because forward() slices at 88 explicitly.
IN_CHANNELS = 16
HIDDEN_SIZE = 32
OUT_CHANNELS = 88
KERNEL_SIZE = 3
GRU_HIDDEN = HIDDEN_SIZE // 2
BATCH = 2
SEQ = 8
PROJ_OUT = 2 * OUT_CHANNELS      # 176, real projection width
PROJ_PAD = 256                   # lane-dense kernel-side output width (multiple of 128)


# -----------------------------------------------------------------------------
# Single fused kernel: conv stack + 2 BiGRU layers + projection.
#
# Packed operands (kernel-native layouts, built once in init_params):
#   x_ref    : (B*T, Cin)            channels-last rows
#   cw0_ref  : (3, Cin, HID)         conv0 taps (k=0: t-1, k=1: t, k=2: t+1)
#   cw12_ref : (6, HID, HID)         conv1 taps 0..2, conv2 taps 0..2
#   aff_ref  : (10, 6H)              rows 0..5 = conv (scale, shift) pairs in
#                                    cols[:HID]; rows 6..9 = GRU biases
#                                    [bih0, bhh0, bih1, bhh1]
#   gw_ref   : (4*HID, 6H)           [wih0; whh0; wih1; whh1], gate layout
#                                    [r_f r_b | z_f z_b | n_f n_b], whh block-diag
#   pwb_ref  : (HID+1, PROJ_PAD)     rows[:HID] = proj weight, row HID = bias
# -----------------------------------------------------------------------------
def _fused_decoder_kernel(x_ref, cw0_ref, cw12_ref, aff_ref, gw_ref, pwb_ref,
                          o_ref, hseq0_ref, hseq1_ref):
    B, T, H2 = hseq0_ref.shape
    H = H2 // 2
    HID = 2 * H                      # conv hidden width == GRU input width
    BT = B * T
    f32 = jnp.float32

    # Per-row sequence-boundary masks for the k=3 / pad=1 conv (computed once).
    pos = jax.lax.broadcasted_iota(jnp.int32, (BT, 1), 0) % T
    not_first = (pos != 0).astype(f32)          # zero the t-1 tap at t == 0
    not_last = (pos != T - 1).astype(f32)       # zero the t+1 tap at t == T-1

    def shifted(x):
        # Previous / next timestep rows with per-sequence zero padding.
        # Pure slice + concat + mask on the XLU/VPU path: no MXU round-trips.
        c = x.shape[1]
        zrow = jnp.zeros((1, c), f32)
        prv = jnp.concatenate([zrow, x[:BT - 1, :]], axis=0) * not_first
        nxt = jnp.concatenate([x[1:, :], zrow], axis=0) * not_last
        return prv, nxt

    aff = aff_ref[...]                           # (10, 6H)

    # ---- Conv1d(k=3, s=1, p=1) + folded BatchNorm(eval) + ELU ----------------
    def conv_bn_elu(x, taps, layer):
        scale = aff[2 * layer:2 * layer + 1, 0:HID]
        shift = aff[2 * layer + 1:2 * layer + 2, 0:HID]
        x_prev, x_next = shifted(x)
        y = (jnp.dot(x_prev, taps[0], preferred_element_type=f32)
             + jnp.dot(x, taps[1], preferred_element_type=f32)
             + jnp.dot(x_next, taps[2], preferred_element_type=f32))
        y = y * scale + shift                    # conv bias + BN folded
        # TODO(synk): jnp.expm1 would be marginally more accurate near 0.
        return jnp.where(y > 0, y, jnp.exp(jnp.minimum(y, 0.0)) - 1.0)  # ELU(a=1)

    x = x_ref[...]                                            # (B*T, Cin)
    x = conv_bn_elu(x, [cw0_ref[k] for k in range(3)], 0)     # (B*T, HID)
    x = conv_bn_elu(x, [cw12_ref[k] for k in range(3)], 1)
    x = conv_bn_elu(x, [cw12_ref[3 + k] for k in range(3)], 2)
    # Dropout(0.5) / GRU inter-layer dropout(0.2) are identity at inference.

    # ---- 2-layer bidirectional GRU (PyTorch gate equations) ------------------
    # Gate layout along the 6H axis: [r_f r_b | z_f z_b | n_f n_b]; hidden [h_f | h_b].
    col = jax.lax.broadcasted_iota(jnp.int32, (B, 6 * H), 1)
    fwd_cols = ((col < H)
                | ((col >= 2 * H) & (col < 3 * H))
                | ((col >= 4 * H) & (col < 5 * H)))

    def bigru_layer(x_flat, layer, hseq_ref):
        r0 = 2 * HID * layer
        wih = gw_ref[r0:r0 + HID, :]                          # (HID, 6H)
        whh = gw_ref[r0 + HID:r0 + 2 * HID, :]                # (2H, 6H), block-diag
        bih = aff[6 + 2 * layer:7 + 2 * layer, :]
        bhh = aff[7 + 2 * layer:8 + 2 * layer, :]

        # One MXU matmul = input projections for all timesteps, gates, directions.
        gih = (jnp.dot(x_flat, wih, preferred_element_type=f32)
               + bih).reshape(B, T, 6 * H)
        # Direction merge hoisted OFF the serial recurrence chain: step t uses
        # fwd columns from time t and bwd columns from time T-1-t.
        gx_steps = [jnp.where(fwd_cols, gih[:, t, :], gih[:, T - 1 - t, :])
                    for t in range(T)]

        h = jnp.zeros((B, 2 * H), f32)                        # [h_fwd | h_bwd]
        for t in range(T):                                    # static unroll, T small
            gh = jnp.dot(h, whh, preferred_element_type=f32) + bhh
            gx = gx_steps[t]
            r = jax.nn.sigmoid(gx[:, 0:2 * H] + gh[:, 0:2 * H])
            z = jax.nn.sigmoid(gx[:, 2 * H:4 * H] + gh[:, 2 * H:4 * H])
            n = jnp.tanh(gx[:, 4 * H:6 * H] + r * gh[:, 4 * H:6 * H])
            h = (1.0 - z) * n + z * h
            hseq_ref[:, t, 0:H] = h[:, 0:H]                   # fwd output at time t
            hseq_ref[:, T - 1 - t, H:2 * H] = h[:, H:2 * H]   # bwd output at time T-1-t
        return hseq_ref[...].reshape(BT, 2 * H)

    x = bigru_layer(x, 0, hseq0_ref)
    x = bigru_layer(x, 1, hseq1_ref)

    # ---- Linear -> Sigmoid (lane-dense, padded to 256) -----------------------
    y = (jnp.dot(x, pwb_ref[0:HID, :], preferred_element_type=f32)
         + pwb_ref[HID:HID + 1, :])
    o_ref[...] = jax.nn.sigmoid(y)


# -----------------------------------------------------------------------------
# Wrapper
# -----------------------------------------------------------------------------
def semcodec_midi_decoder_forward(x_nct, params):
    # x_nct: (B, C, T) as in PyTorch; kernel works channels-last on (B*T, C) rows.
    B, Cin, T = x_nct.shape
    H = GRU_HIDDEN
    BT = B * T
    x = jnp.transpose(x_nct, (0, 2, 1)).astype(jnp.float32).reshape(BT, Cin)

    args = [x, params['cw0'], params['cw12'], params['aff'],
            params['gw'], params['pwb']]

    # Advisory cost estimate so XLA can schedule / overlap around the kernel.
    flops = (2 * BT * (3 * Cin * HIDDEN_SIZE + 2 * 3 * HIDDEN_SIZE * HIDDEN_SIZE)
             + 2 * 2 * BT * HIDDEN_SIZE * 6 * H              # GRU input projections
             + 2 * T * 2 * B * (2 * H) * (6 * H)             # GRU recurrent matmuls
             + 2 * BT * HIDDEN_SIZE * PROJ_PAD)              # output projection
    transcendentals = 3 * BT * HIDDEN_SIZE + 2 * T * 3 * B * 2 * H + BT * PROJ_PAD
    bytes_accessed = 4 * (sum(int(a.size) for a in args) + BT * PROJ_PAD)
    cost = pl.CostEstimate(flops=flops, transcendentals=transcendentals,
                           bytes_accessed=bytes_accessed)

    vmem = pl.BlockSpec(memory_space=pltpu.MemorySpace.VMEM)
    out = pl.pallas_call(
        _fused_decoder_kernel,
        out_shape=jax.ShapeDtypeStruct((BT, PROJ_PAD), jnp.float32),
        in_specs=[vmem] * len(args),
        out_specs=vmem,
        scratch_shapes=[
            pltpu.VMEM((B, T, 2 * H), jnp.float32),   # hseq, GRU layer 0
            pltpu.VMEM((B, T, 2 * H), jnp.float32),   # hseq, GRU layer 1
        ],
        cost_estimate=cost,
    )(*args)

    y = out.reshape(B, T, PROJ_PAD)[:, :, :PROJ_OUT]   # drop lane padding (256 -> 176)
    y = jnp.transpose(y, (0, 2, 1))                    # (B, 176, T)
    # torch.stack([x[:, :88, :], x[:, 88:, :]], dim=1)
    return jnp.stack([y[:, :OUT_CHANNELS, :], y[:, OUT_CHANNELS:, :]], axis=1)


# -----------------------------------------------------------------------------
# Deterministic synthetic parameters, packed into kernel-native slabs.
# NOTE: a real checkpoint loader must transpose / scatter PyTorch tensors into
# these layouts (channels-last conv taps, gate order [r_f r_b | z_f z_b | n_f n_b],
# block-diagonal whh, lane-padded projection, packed affine/bias slab).
# -----------------------------------------------------------------------------
def init_params(key):
    keys = iter(jax.random.split(key, 128))

    def nrm(shape, scale=0.1):
        return scale * jax.random.normal(next(keys), shape, jnp.float32)

    H = GRU_HIDDEN
    HID = HIDDEN_SIZE

    # --- conv taps (channels-last) + folded BN affine rows --------------------
    conv_w = []
    aff_rows = []
    cin = IN_CHANNELS
    for _ in range(3):
        w = nrm((KERNEL_SIZE, cin, HID))                  # (K, Cin, Cout)
        b = nrm((HID,))
        gamma = 1.0 + nrm((HID,))
        beta = nrm((HID,))
        run_mean = nrm((HID,))
        run_var = 1.0 + 0.1 * jax.random.uniform(next(keys), (HID,))
        scale = gamma * jax.lax.rsqrt(run_var + 1e-5)     # fold BN (eval mode)
        shift = (b - run_mean) * scale + beta             # fold conv bias too
        conv_w.append(w)
        aff_rows.append(jnp.pad(scale, (0, 6 * H - HID))) # pad 32 -> 96 cols
        aff_rows.append(jnp.pad(shift, (0, 6 * H - HID)))
        cin = HID
    cw0 = conv_w[0]                                       # (3, Cin, HID)
    cw12 = jnp.concatenate([conv_w[1], conv_w[2]], axis=0)  # (6, HID, HID)

    # --- GRU weights: gate-concat, block-diagonal recurrent -------------------
    gw_blocks = []
    for _layer in range(2):
        din = HID   # layer0: conv out; layer1: 2*H == HID
        wih = jnp.zeros((din, 6 * H), jnp.float32)        # [r_f r_b z_f z_b n_f n_b]
        whh = jnp.zeros((2 * H, 6 * H), jnp.float32)      # block-diag per direction
        bih = jnp.zeros((6 * H,), jnp.float32)
        bhh = jnp.zeros((6 * H,), jnp.float32)
        for d in range(2):          # 0: forward, 1: backward
            for g in range(3):      # 0: r, 1: z, 2: n (PyTorch gate order)
                c0 = g * 2 * H + d * H
                wih = wih.at[:, c0:c0 + H].set(nrm((din, H)))
                whh = whh.at[d * H:(d + 1) * H, c0:c0 + H].set(nrm((H, H)))
                bih = bih.at[c0:c0 + H].set(nrm((H,)))
                bhh = bhh.at[c0:c0 + H].set(nrm((H,)))
        gw_blocks += [wih, whh]
        aff_rows += [bih, bhh]
    gw = jnp.concatenate(gw_blocks, axis=0)               # (4*HID, 6H) = (128, 96)
    aff = jnp.stack(aff_rows, axis=0)                     # (10, 96)

    # --- projection, lane-padded to 256 ----------------------------------------
    pw = jnp.zeros((HID, PROJ_PAD), jnp.float32).at[:, :PROJ_OUT].set(
        nrm((HID, PROJ_OUT)))
    pbias = jnp.zeros((PROJ_PAD,), jnp.float32).at[:PROJ_OUT].set(nrm((PROJ_OUT,)))
    pwb = jnp.concatenate([pw, pbias[None, :]], axis=0)   # (HID+1, 256)

    return {'cw0': cw0, 'cw12': cw12, 'aff': aff, 'gw': gw, 'pwb': pwb}


if __name__ == "__main__":
    key = jax.random.PRNGKey(0)
    pkey, xkey = jax.random.split(key)
    params = init_params(pkey)
    x = jax.random.normal(xkey, (BATCH, IN_CHANNELS, SEQ), jnp.float32)

    out = jax.jit(semcodec_midi_decoder_forward)(x, params)
    out = jax.block_until_ready(out)

    assert out.shape == (BATCH, 2, OUT_CHANNELS, SEQ), out.shape
    assert bool(jnp.isfinite(out).all())
    assert bool((out >= 0.0).all()) and bool((out <= 1.0).all())  # sigmoid range
    print("KERNEL_OK")
</pallas_src>

<mosaic_0001>
module attributes {stable_mosaic.version = 11 : i64} {
  func.func @_fused_decoder_kernel(%arg0: memref<16x16xf32, #tpu.memory_space<vmem>>, %arg1: memref<3x16x32xf32, #tpu.memory_space<vmem>>, %arg2: memref<6x32x32xf32, #tpu.memory_space<vmem>>, %arg3: memref<10x96xf32, #tpu.memory_space<vmem>>, %arg4: memref<128x96xf32, #tpu.memory_space<vmem>>, %arg5: memref<33x256xf32, #tpu.memory_space<vmem>>, %arg6: memref<16x256xf32, #tpu.memory_space<vmem>>, %arg7: memref<2x8x32xf32, #tpu.memory_space<vmem>>, %arg8: memref<2x8x32xf32, #tpu.memory_space<vmem>>) attributes {dimension_semantics = [], scalar_prefetch = 0 : i64, scratch_operands = 2 : i64, tpu.core_type = #tpu.core_type<tc>} {
    %0 = tpu.iota {dimensions = array<i32: 0>} : vector<16x1xi32>
    %c8_i32 = arith.constant 8 : i32
    %c0_i32 = arith.constant 0 : i32
    %1 = arith.cmpi eq, %c8_i32, %c0_i32 : i32
    %c1_i32 = arith.constant 1 : i32
    %2 = arith.select %1, %c1_i32, %c8_i32 : i32
    %3 = vector.broadcast %2 : i32 to vector<16x1xi32>
    %4 = arith.remsi %0, %3 : vector<16x1xi32>
    %c0_i32_0 = arith.constant 0 : i32
    %5 = vector.broadcast %c0_i32_0 : i32 to vector<16x1xi32>
    %6 = arith.cmpi ne, %4, %5 : vector<16x1xi32>
    %c0_i32_1 = arith.constant 0 : i32
    %7 = vector.broadcast %c0_i32_1 : i32 to vector<16x1xi32>
    %8 = arith.cmpi slt, %4, %7 : vector<16x1xi32>
    %c0_i32_2 = arith.constant 0 : i32
    %9 = arith.cmpi slt, %2, %c0_i32_2 : i32
    %10 = vector.broadcast %9 : i1 to vector<16x1xi1>
    %11 = vector.broadcast %10 : vector<16x1xi1> to vector<16x1xi1>
    %12 = arith.xori %8, %11 : vector<16x1xi1>
    %13 = arith.andi %12, %6 : vector<16x1xi1>
    %14 = vector.broadcast %2 : i32 to vector<16x1xi32>
    %15 = arith.addi %4, %14 : vector<16x1xi32>
    %16 = arith.select %13, %15, %4 : vector<16x1xi1>, vector<16x1xi32>
    %c0_i32_3 = arith.constant 0 : i32
    %17 = vector.broadcast %c0_i32_3 : i32 to vector<16x1xi32>
    %18 = arith.cmpi ne, %16, %17 : vector<16x1xi32>
    %19 = arith.extui %18 : vector<16x1xi1> to vector<16x1xi32>
    %20 = arith.sitofp %19 : vector<16x1xi32> to vector<16x1xf32>
    %c7_i32 = arith.constant 7 : i32
    %21 = vector.broadcast %c7_i32 : i32 to vector<16x1xi32>
    %22 = arith.cmpi ne, %16, %21 : vector<16x1xi32>
    %23 = arith.extui %22 : vector<16x1xi1> to vector<16x1xi32>
    %24 = arith.sitofp %23 : vector<16x1xi32> to vector<16x1xf32>
    %c0 = arith.constant 0 : index
    %c0_4 = arith.constant 0 : index
    %25 = vector.load %arg3[%c0, %c0_4] : memref<10x96xf32, #tpu.memory_space<vmem>>, vector<10x96xf32>
    %c0_5 = arith.constant 0 : index
    %c0_6 = arith.constant 0 : index
    %26 = vector.load %arg0[%c0_5, %c0_6] : memref<16x16xf32, #tpu.memory_space<vmem>>, vector<16x16xf32>
    %c0_7 = arith.constant 0 : index
    %c0_8 = arith.constant 0 : index
    %c0_9 = arith.constant 0 : index
    %27 = vector.load %arg1[%c0_7, %c0_8, %c0_9] : memref<3x16x32xf32, #tpu.memory_space<vmem>>, vector<1x16x32xf32>
    %28 = vector.shape_cast %27 : vector<1x16x32xf32> to vector<16x32xf32>
    %c1 = arith.constant 1 : index
    %c0_10 = arith.constant 0 : index
    %c0_11 = arith.constant 0 : index
    %29 = vector.load %arg1[%c1, %c0_10, %c0_11] : memref<3x16x32xf32, #tpu.memory_space<vmem>>, vector<1x16x32xf32>
    %30 = vector.shape_cast %29 : vector<1x16x32xf32> to vector<16x32xf32>
    %c2 = arith.constant 2 : index
    %c0_12 = arith.constant 0 : index
    %c0_13 = arith.constant 0 : index
    %31 = vector.load %arg1[%c2, %c0_12, %c0_13] : memref<3x16x32xf32, #tpu.memory_space<vmem>>, vector<1x16x32xf32>
    %32 = vector.shape_cast %31 : vector<1x16x32xf32> to vector<16x32xf32>
    %33 = vector.extract_strided_slice %25 {offsets = [0, 0], sizes = [1, 32], strides = [1, 1]} : vector<10x96xf32> to vector<1x32xf32>
    %34 = vector.extract_strided_slice %25 {offsets = [1, 0], sizes = [1, 32], strides = [1, 1]} : vector<10x96xf32> to vector<1x32xf32>
    %cst = arith.constant 0.000000e+00 : f32
    %35 = vector.broadcast %cst : f32 to vector<1x16xf32>
    %36 = vector.extract_strided_slice %26 {offsets = [0, 0], sizes = [15, 16], strides = [1, 1]} : vector<16x16xf32> to vector<15x16xf32>
    %37 = tpu.concatenate %35, %36 in 0 : vector<1x16xf32>, vector<15x16xf32> -> vector<16x16xf32>
    %38 = vector.broadcast %20 : vector<16x1xf32> to vector<16x16xf32>
    %39 = arith.mulf %37, %38 : vector<16x16xf32>
    %40 = vector.extract_strided_slice %26 {offsets = [1, 0], sizes = [15, 16], strides = [1, 1]} : vector<16x16xf32> to vector<15x16xf32>
    %41 = tpu.concatenate %40, %35 in 0 : vector<15x16xf32>, vector<1x16xf32> -> vector<16x16xf32>
    %42 = vector.broadcast %24 : vector<16x1xf32> to vector<16x16xf32>
    %43 = arith.mulf %41, %42 : vector<16x16xf32>
    %cst_14 = arith.constant dense<0.000000e+00> : vector<16x32xf32>
    %44 = tpu.matmul %39, %28, %cst_14 {dimension_numbers = #tpu.dot_dimension_numbers<[1], [0], [0], [1], [0, 0, 1, 1], [], []>} : vector<16x16xf32>, vector<16x32xf32>, vector<16x32xf32> -> vector<16x32xf32>
    %cst_15 = arith.constant dense<0.000000e+00> : vector<16x32xf32>
    %45 = tpu.matmul %26, %30, %cst_15 {dimension_numbers = #tpu.dot_dimension_numbers<[1], [0], [0], [1], [0, 0, 1, 1], [], []>} : vector<16x16xf32>, vector<16x32xf32>, vector<16x32xf32> -> vector<16x32xf32>
    %46 = arith.addf %44, %45 : vector<16x32xf32>
    %cst_16 = arith.constant dense<0.000000e+00> : vector<16x32xf32>
    %47 = tpu.matmul %43, %32, %cst_16 {dimension_numbers = #tpu.dot_dimension_numbers<[1], [0], [0], [1], [0, 0, 1, 1], [], []>} : vector<16x16xf32>, vector<16x32xf32>, vector<16x32xf32> -> vector<16x32xf32>
    %48 = arith.addf %46, %47 : vector<16x32xf32>
    %49 = vector.broadcast %33 : vector<1x32xf32> to vector<16x32xf32>
    %50 = arith.mulf %48, %49 : vector<16x32xf32>
    %51 = vector.broadcast %34 : vector<1x32xf32> to vector<16x32xf32>
    %52 = arith.addf %50, %51 : vector<16x32xf32>
    %cst_17 = arith.constant 0.000000e+00 : f32
    %53 = vector.broadcast %cst_17 : f32 to vector<16x32xf32>
    %54 = arith.cmpf ogt, %52, %53 : vector<16x32xf32>
    %cst_18 = arith.constant 0.000000e+00 : f32
    %55 = vector.broadcast %cst_18 : f32 to vector<16x32xf32>
    %56 = arith.minimumf %52, %55 : vector<16x32xf32>
    %57 = math.exp %56 : vector<16x32xf32>
    %cst_19 = arith.constant 1.000000e+00 : f32
    %58 = vector.broadcast %cst_19 : f32 to vector<16x32xf32>
    %59 = arith.subf %57, %58 : vector<16x32xf32>
    %60 = arith.select %54, %52, %59 : vector<16x32xi1>, vector<16x32xf32>
    %c0_20 = arith.constant 0 : index
    %c0_21 = arith.constant 0 : index
    %c0_22 = arith.constant 0 : index
    %61 = vector.load %arg2[%c0_20, %c0_21, %c0_22] : memref<6x32x32xf32, #tpu.memory_space<vmem>>, vector<1x32x32xf32>
    %62 = vector.shape_cast %61 : vector<1x32x32xf32> to vector<32x32xf32>
    %c1_23 = arith.constant 1 : index
    %c0_24 = arith.constant 0 : index
    %c0_25 = arith.constant 0 : index
    %63 = vector.load %arg2[%c1_23, %c0_24, %c0_25] : memref<6x32x32xf32, #tpu.memory_space<vmem>>, vector<1x32x32xf32>
    %64 = vector.shape_cast %63 : vector<1x32x32xf32> to vector<32x32xf32>
    %c2_26 = arith.constant 2 : index
    %c0_27 = arith.constant 0 : index
    %c0_28 = arith.constant 0 : index
    %65 = vector.load %arg2[%c2_26, %c0_27, %c0_28] : memref<6x32x32xf32, #tpu.memory_space<vmem>>, vector<1x32x32xf32>
    %66 = vector.shape_cast %65 : vector<1x32x32xf32> to vector<32x32xf32>
    %67 = vector.extract_strided_slice %25 {offsets = [2, 0], sizes = [1, 32], strides = [1, 1]} : vector<10x96xf32> to vector<1x32xf32>
    %68 = vector.extract_strided_slice %25 {offsets = [3, 0], sizes = [1, 32], strides = [1, 1]} : vector<10x96xf32> to vector<1x32xf32>
    %cst_29 = arith.constant 0.000000e+00 : f32
    %69 = vector.broadcast %cst_29 : f32 to vector<1x32xf32>
    %70 = vector.extract_strided_slice %60 {offsets = [0, 0], sizes = [15, 32], strides = [1, 1]} : vector<16x32xf32> to vector<15x32xf32>
    %71 = tpu.concatenate %69, %70 in 0 : vector<1x32xf32>, vector<15x32xf32> -> vector<16x32xf32>
    %72 = vector.broadcast %20 : vector<16x1xf32> to vector<16x32xf32>
    %73 = arith.mulf %71, %72 : vector<16x32xf32>
    %74 = vector.extract_strided_slice %60 {offsets = [1, 0], sizes = [15, 32], strides = [1, 1]} : vector<16x32xf32> to vector<15x32xf32>
    %75 = tpu.concatenate %74, %69 in 0 : vector<15x32xf32>, vector<1x32xf32> -> vector<16x32xf32>
    %76 = vector.broadcast %24 : vector<16x1xf32> to vector<16x32xf32>
    %77 = arith.mulf %75, %76 : vector<16x32xf32>
    %cst_30 = arith.constant dense<0.000000e+00> : vector<16x32xf32>
    %78 = tpu.matmul %73, %62, %cst_30 {dimension_numbers = #tpu.dot_dimension_numbers<[1], [0], [0], [1], [0, 0, 1, 1], [], []>} : vector<16x32xf32>, vector<32x32xf32>, vector<16x32xf32> -> vector<16x32xf32>
    %cst_31 = arith.constant dense<0.000000e+00> : vector<16x32xf32>
    %79 = tpu.matmul %60, %64, %cst_31 {dimension_numbers = #tpu.dot_dimension_numbers<[1], [0], [0], [1], [0, 0, 1, 1], [], []>} : vector<16x32xf32>, vector<32x32xf32>, vector<16x32xf32> -> vector<16x32xf32>
    %80 = arith.addf %78, %79 : vector<16x32xf32>
    %cst_32 = arith.constant dense<0.000000e+00> : vector<16x32xf32>
    %81 = tpu.matmul %77, %66, %cst_32 {dimension_numbers = #tpu.dot_dimension_numbers<[1], [0], [0], [1], [0, 0, 1, 1], [], []>} : vector<16x32xf32>, vector<32x32xf32>, vector<16x32xf32> -> vector<16x32xf32>
    %82 = arith.addf %80, %81 : vector<16x32xf32>
    %83 = vector.broadcast %67 : vector<1x32xf32> to vector<16x32xf32>
    %84 = arith.mulf %82, %83 : vector<16x32xf32>
    %85 = vector.broadcast %68 : vector<1x32xf32> to vector<16x32xf32>
    %86 = arith.addf %84, %85 : vector<16x32xf32>
    %cst_33 = arith.constant 0.000000e+00 : f32
    %87 = vector.broadcast %cst_33 : f32 to vector<16x32xf32>
    %88 = arith.cmpf ogt, %86, %87 : vector<16x32xf32>
    %cst_34 = arith.constant 0.000000e+00 : f32
    %89 = vector.broadcast %cst_34 : f32 to vector<16x32xf32>
    %90 = arith.minimumf %86, %89 : vector<16x32xf32>
    %91 = math.exp %90 : vector<16x32xf32>
    %cst_35 = arith.constant 1.000000e+00 : f32
    %92 = vector.broadcast %cst_35 : f32 to vector<16x32xf32>
    %93 = arith.subf %91, %92 : vector<16x32xf32>
    %94 = arith.select %88, %86, %93 : vector<16x32xi1>, vector<16x32xf32>
    %c3 = arith.constant 3 : index
    %c0_36 = arith.constant 0 : index
    %c0_37 = arith.constant 0 : index
    %95 = vector.load %arg2[%c3, %c0_36, %c0_37] : memref<6x32x32xf32, #tpu.memory_space<vmem>>, vector<1x32x32xf32>
    %96 = vector.shape_cast %95 : vector<1x32x32xf32> to vector<32x32xf32>
    %c4 = arith.constant 4 : index
    %c0_38 = arith.constant 0 : index
    %c0_39 = arith.constant 0 : index
    %97 = vector.load %arg2[%c4, %c0_38, %c0_39] : memref<6x32x32xf32, #tpu.memory_space<vmem>>, vector<1x32x32xf32>
    %98 = vector.shape_cast %97 : vector<1x32x32xf32> to vector<32x32xf32>
    %c5 = arith.constant 5 : index
    %c0_40 = arith.constant 0 : index
    %c0_41 = arith.constant 0 : index
    %99 = vector.load %arg2[%c5, %c0_40, %c0_41] : memref<6x32x32xf32, #tpu.memory_space<vmem>>, vector<1x32x32xf32>
    %100 = vector.shape_cast %99 : vector<1x32x32xf32> to vector<32x32xf32>
    %101 = vector.extract_strided_slice %25 {offsets = [4, 0], sizes = [1, 32], strides = [1, 1]} : vector<10x96xf32> to vector<1x32xf32>
    %102 = vector.extract_strided_slice %25 {offsets = [5, 0], sizes = [1, 32], strides = [1, 1]} : vector<10x96xf32> to vector<1x32xf32>
    %cst_42 = arith.constant 0.000000e+00 : f32
    %103 = vector.broadcast %cst_42 : f32 to vector<1x32xf32>
    %104 = vector.extract_strided_slice %94 {offsets = [0, 0], sizes = [15, 32], strides = [1, 1]} : vector<16x32xf32> to vector<15x32xf32>
    %105 = tpu.concatenate %103, %104 in 0 : vector<1x32xf32>, vector<15x32xf32> -> vector<16x32xf32>
    %106 = vector.broadcast %20 : vector<16x1xf32> to vector<16x32xf32>
    %107 = arith.mulf %105, %106 : vector<16x32xf32>
    %108 = vector.extract_strided_slice %94 {offsets = [1, 0], sizes = [15, 32], strides = [1, 1]} : vector<16x32xf32> to vector<15x32xf32>
    %109 = tpu.concatenate %108, %103 in 0 : vector<15x32xf32>, vector<1x32xf32> -> vector<16x32xf32>
    %110 = vector.broadcast %24 : vector<16x1xf32> to vector<16x32xf32>
    %111 = arith.mulf %109, %110 : vector<16x32xf32>
    %cst_43 = arith.constant dense<0.000000e+00> : vector<16x32xf32>
    %112 = tpu.matmul %107, %96, %cst_43 {dimension_numbers = #tpu.dot_dimension_numbers<[1], [0], [0], [1], [0, 0, 1, 1], [], []>} : vector<16x32xf32>, vector<32x32xf32>, vector<16x32xf32> -> vector<16x32xf32>
    %cst_44 = arith.constant dense<0.000000e+00> : vector<16x32xf32>
    %113 = tpu.matmul %94, %98, %cst_44 {dimension_numbers = #tpu.dot_dimension_numbers<[1], [0], [0], [1], [0, 0, 1, 1], [], []>} : vector<16x32xf32>, vector<32x32xf32>, vector<16x32xf32> -> vector<16x32xf32>
    %114 = arith.addf %112, %113 : vector<16x32xf32>
    %cst_45 = arith.constant dense<0.000000e+00> : vector<16x32xf32>
    %115 = tpu.matmul %111, %100, %cst_45 {dimension_numbers = #tpu.dot_dimension_numbers<[1], [0], [0], [1], [0, 0, 1, 1], [], []>} : vector<16x32xf32>, vector<32x32xf32>, vector<16x32xf32> -> vector<16x32xf32>
    %116 = arith.addf %114, %115 : vector<16x32xf32>
    %117 = vector.broadcast %101 : vector<1x32xf32> to vector<16x32xf32>
    %118 = arith.mulf %116, %117 : vector<16x32xf32>
    %119 = vector.broadcast %102 : vector<1x32xf32> to vector<16x32xf32>
    %120 = arith.addf %118, %119 : vector<16x32xf32>
    %cst_46 = arith.constant 0.000000e+00 : f32
    %121 = vector.broadcast %cst_46 : f32 to vector<16x32xf32>
    %122 = arith.cmpf ogt, %120, %121 : vector<16x32xf32>
    %cst_47 = arith.constant 0.000000e+00 : f32
    %123 = vector.broadcast %cst_47 : f32 to vector<16x32xf32>
    %124 = arith.minimumf %120, %123 : vector<16x32xf32>
    %125 = math.exp %124 : vector<16x32xf32>
    %cst_48 = arith.constant 1.000000e+00 : f32
    %126 = vector.broadcast %cst_48 : f32 to vector<16x32xf32>
    %127 = arith.subf %125, %126 : vector<16x32xf32>
    %128 = arith.select %122, %120, %127 : vector<16x32xi1>, vector<16x32xf32>
    %129 = tpu.iota {dimensions = array<i32: 1>} : vector<2x96xi32>
    %c16_i32 = arith.constant 16 : i32
    %130 = vector.broadcast %c16_i32 : i32 to vector<2x96xi32>
    %131 = arith.cmpi slt, %129, %130 : vector<2x96xi32>
    %c32_i32 = arith.constant 32 : i32
    %132 = vector.broadcast %c32_i32 : i32 to vector<2x96xi32>
    %133 = arith.cmpi sge, %129, %132 : vector<2x96xi32>
    %c48_i32 = arith.constant 48 : i32
    %134 = vector.broadcast %c48_i32 : i32 to vector<2x96xi32>
    %135 = arith.cmpi slt, %129, %134 : vector<2x96xi32>
    %136 = arith.andi %133, %135 : vector<2x96xi1>
    %137 = arith.ori %131, %136 : vector<2x96xi1>
    %c64_i32 = arith.constant 64 : i32
    %138 = vector.broadcast %c64_i32 : i32 to vector<2x96xi32>
    %139 = arith.cmpi sge, %129, %138 : vector<2x96xi32>
    %c80_i32 = arith.constant 80 : i32
    %140 = vector.broadcast %c80_i32 : i32 to vector<2x96xi32>
    %141 = arith.cmpi slt, %129, %140 : vector<2x96xi32>
    %142 = arith.andi %139, %141 : vector<2x96xi1>
    %143 = arith.ori %137, %142 : vector<2x96xi1>
    %c0_49 = arith.constant 0 : index
    %c0_50 = arith.constant 0 : index
    %144 = vector.load %arg4[%c0_49, %c0_50] : memref<128x96xf32, #tpu.memory_space<vmem>>, vector<32x96xf32>
    %c32 = arith.constant 32 : index
    %c0_51 = arith.constant 0 : index
    %145 = vector.load %arg4[%c32, %c0_51] : memref<128x96xf32, #tpu.memory_space<vmem>>, vector<32x96xf32>
    %146 = vector.extract_strided_slice %25 {offsets = [6, 0], sizes = [1, 96], strides = [1, 1]} : vector<10x96xf32> to vector<1x96xf32>
    %147 = vector.extract_strided_slice %25 {offsets = [7, 0], sizes = [1, 96], strides = [1, 1]} : vector<10x96xf32> to vector<1x96xf32>
    %cst_52 = arith.constant dense<0.000000e+00> : vector<16x96xf32>
    %148 = tpu.matmul %128, %144, %cst_52 {dimension_numbers = #tpu.dot_dimension_numbers<[1], [0], [0], [1], [0, 0, 1, 1], [], []>} : vector<16x32xf32>, vector<32x96xf32>, vector<16x96xf32> -> vector<16x96xf32>
    %149 = vector.broadcast %146 : vector<1x96xf32> to vector<16x96xf32>
    %150 = arith.addf %148, %149 : vector<16x96xf32>
    %151 = vector.shape_cast %150 : vector<16x96xf32> to vector<2x8x96xf32>
    %152 = vector.extract_strided_slice %151 {offsets = [0, 0, 0], sizes = [2, 1, 96], strides = [1, 1, 1]} : vector<2x8x96xf32> to vector<2x1x96xf32>
    %153 = vector.shape_cast %152 : vector<2x1x96xf32> to vector<2x96xf32>
    %154 = vector.extract_strided_slice %151 {offsets = [0, 7, 0], sizes = [2, 1, 96], strides = [1, 1, 1]} : vector<2x8x96xf32> to vector<2x1x96xf32>
    %155 = vector.shape_cast %154 : vector<2x1x96xf32> to vector<2x96xf32>
    %156 = arith.select %143, %153, %155 : vector<2x96xi1>, vector<2x96xf32>
    %157 = vector.extract_strided_slice %151 {offsets = [0, 1, 0], sizes = [2, 1, 96], strides = [1, 1, 1]} : vector<2x8x96xf32> to vector<2x1x96xf32>
    %158 = vector.shape_cast %157 : vector<2x1x96xf32> to vector<2x96xf32>
    %159 = vector.extract_strided_slice %151 {offsets = [0, 6, 0], sizes = [2, 1, 96], strides = [1, 1, 1]} : vector<2x8x96xf32> to vector<2x1x96xf32>
    %160 = vector.shape_cast %159 : vector<2x1x96xf32> to vector<2x96xf32>
    %161 = arith.select %143, %158, %160 : vector<2x96xi1>, vector<2x96xf32>
    %162 = vector.extract_strided_slice %151 {offsets = [0, 2, 0], sizes = [2, 1, 96], strides = [1, 1, 1]} : vector<2x8x96xf32> to vector<2x1x96xf32>
    %163 = vector.shape_cast %162 : vector<2x1x96xf32> to vector<2x96xf32>
    %164 = vector.extract_strided_slice %151 {offsets = [0, 5, 0], sizes = [2, 1, 96], strides = [1, 1, 1]} : vector<2x8x96xf32> to vector<2x1x96xf32>
    %165 = vector.shape_cast %164 : vector<2x1x96xf32> to vector<2x96xf32>
    %166 = arith.select %143, %163, %165 : vector<2x96xi1>, vector<2x96xf32>
    %167 = vector.extract_strided_slice %151 {offsets = [0, 3, 0], sizes = [2, 1, 96], strides = [1, 1, 1]} : vector<2x8x96xf32> to vector<2x1x96xf32>
    %168 = vector.shape_cast %167 : vector<2x1x96xf32> to vector<2x96xf32>
    %169 = vector.extract_strided_slice %151 {offsets = [0, 4, 0], sizes = [2, 1, 96], strides = [1, 1, 1]} : vector<2x8x96xf32> to vector<2x1x96xf32>
    %170 = vector.shape_cast %169 : vector<2x1x96xf32> to vector<2x96xf32>
    %171 = arith.select %143, %168, %170 : vector<2x96xi1>, vector<2x96xf32>
    %172 = vector.extract_strided_slice %151 {offsets = [0, 4, 0], sizes = [2, 1, 96], strides = [1, 1, 1]} : vector<2x8x96xf32> to vector<2x1x96xf32>
    %173 = vector.shape_cast %172 : vector<2x1x96xf32> to vector<2x96xf32>
    %174 = vector.extract_strided_slice %151 {offsets = [0, 3, 0], sizes = [2, 1, 96], strides = [1, 1, 1]} : vector<2x8x96xf32> to vector<2x1x96xf32>
    %175 = vector.shape_cast %174 : vector<2x1x96xf32> to vector<2x96xf32>
    %176 = arith.select %143, %173, %175 : vector<2x96xi1>, vector<2x96xf32>
    %177 = vector.extract_strided_slice %151 {offsets = [0, 5, 0], sizes = [2, 1, 96], strides = [1, 1, 1]} : vector<2x8x96xf32> to vector<2x1x96xf32>
    %178 = vector.shape_cast %177 : vector<2x1x96xf32> to vector<2x96xf32>
    %179 = vector.extract_strided_slice %151 {offsets = [0, 2, 0], sizes = [2, 1, 96], strides = [1, 1, 1]} : vector<2x8x96xf32> to vector<2x1x96xf32>
    %180 = vector.shape_cast %179 : vector<2x1x96xf32> to vector<2x96xf32>
    %181 = arith.select %143, %178, %180 : vector<2x96xi1>, vector<2x96xf32>
    %182 = vector.extract_strided_slice %151 {offsets = [0, 6, 0], sizes = [2, 1, 96], strides = [1, 1, 1]} : vector<2x8x96xf32> to vector<2x1x96xf32>
    %183 = vector.shape_cast %182 : vector<2x1x96xf32> to vector<2x96xf32>
    %184 = vector.extract_strided_slice %151 {offsets = [0, 1, 0], sizes = [2, 1, 96], strides = [1, 1, 1]} : vector<2x8x96xf32> to vector<2x1x96xf32>
    %185 = vector.shape_cast %184 : vector<2x1x96xf32> to vector<2x96xf32>
    %186 = arith.select %143, %183, %185 : vector<2x96xi1>, vector<2x96xf32>
    %187 = vector.extract_strided_slice %151 {offsets = [0, 7, 0], sizes = [2, 1, 96], strides = [1, 1, 1]} : vector<2x8x96xf32> to vector<2x1x96xf32>
    %188 = vector.shape_cast %187 : vector<2x1x96xf32> to vector<2x96xf32>
    %189 = vector.extract_strided_slice %151 {offsets = [0, 0, 0], sizes = [2, 1, 96], strides = [1, 1, 1]} : vector<2x8x96xf32> to vector<2x1x96xf32>
    %190 = vector.shape_cast %189 : vector<2x1x96xf32> to vector<2x96xf32>
    %191 = arith.select %143, %188, %190 : vector<2x96xi1>, vector<2x96xf32>
    %cst_53 = arith.constant 0.000000e+00 : f32
    %192 = vector.broadcast %cst_53 : f32 to vector<2x32xf32>
    %cst_54 = arith.constant dense<0.000000e+00> : vector<2x96xf32>
    %193 = tpu.matmul %192, %145, %cst_54 {dimension_numbers = #tpu.dot_dimension_numbers<[1], [0], [0], [1], [0, 0, 1, 1], [], []>} : vector<2x32xf32>, vector<32x96xf32>, vector<2x96xf32> -> vector<2x96xf32>
    %194 = vector.broadcast %147 : vector<1x96xf32> to vector<2x96xf32>
    %195 = arith.addf %193, %194 : vector<2x96xf32>
    %196 = vector.extract_strided_slice %156 {offsets = [0, 0], sizes = [2, 32], strides = [1, 1]} : vector<2x96xf32> to vector<2x32xf32>
    %197 = vector.extract_strided_slice %195 {offsets = [0, 0], sizes = [2, 32], strides = [1, 1]} : vector<2x96xf32> to vector<2x32xf32>
    %198 = arith.addf %196, %197 : vector<2x32xf32>
    %199 = arith.negf %198 : vector<2x32xf32>
    %200 = math.exp %199 : vector<2x32xf32>
    %cst_55 = arith.constant 1.000000e+00 : f32
    %201 = vector.broadcast %cst_55 : f32 to vector<2x32xf32>
    %202 = arith.addf %201, %200 : vector<2x32xf32>
    %203 = arith.divf %201, %202 : vector<2x32xf32>
    %204 = vector.extract_strided_slice %156 {offsets = [0, 32], sizes = [2, 32], strides = [1, 1]} : vector<2x96xf32> to vector<2x32xf32>
    %205 = vector.extract_strided_slice %195 {offsets = [0, 32], sizes = [2, 32], strides = [1, 1]} : vector<2x96xf32> to vector<2x32xf32>
    %206 = arith.addf %204, %205 : vector<2x32xf32>
    %207 = arith.negf %206 : vector<2x32xf32>
    %208 = math.exp %207 : vector<2x32xf32>
    %cst_56 = arith.constant 1.000000e+00 : f32
    %209 = vector.broadcast %cst_56 : f32 to vector<2x32xf32>
    %210 = arith.addf %209, %208 : vector<2x32xf32>
    %211 = arith.divf %209, %210 : vector<2x32xf32>
    %212 = vector.extract_strided_slice %156 {offsets = [0, 64], sizes = [2, 32], strides = [1, 1]} : vector<2x96xf32> to vector<2x32xf32>
    %213 = vector.extract_strided_slice %195 {offsets = [0, 64], sizes = [2, 32], strides = [1, 1]} : vector<2x96xf32> to vector<2x32xf32>
    %214 = arith.mulf %203, %213 : vector<2x32xf32>
    %215 = arith.addf %212, %214 : vector<2x32xf32>
    %216 = math.tanh %215 : vector<2x32xf32>
    %cst_57 = arith.constant 1.000000e+00 : f32
    %217 = vector.broadcast %cst_57 : f32 to vector<2x32xf32>
    %218 = arith.subf %217, %211 : vector<2x32xf32>
    %219 = arith.mulf %218, %216 : vector<2x32xf32>
    %220 = arith.mulf %211, %192 : vector<2x32xf32>
    %221 = arith.addf %219, %220 : vector<2x32xf32>
    %222 = vector.extract_strided_slice %221 {offsets = [0, 0], sizes = [2, 16], strides = [1, 1]} : vector<2x32xf32> to vector<2x16xf32>
    %c0_58 = arith.constant 0 : index
    %c0_59 = arith.constant 0 : index
    %c0_60 = arith.constant 0 : index
    %223 = vector.load %arg7[%c0_58, %c0_59, %c0_60] : memref<2x8x32xf32, #tpu.memory_space<vmem>>, vector<2x1x16xf32>
    %224 = vector.shape_cast %223 : vector<2x1x16xf32> to vector<2x16xf32>
    %225 = vector.shape_cast %222 : vector<2x16xf32> to vector<2x1x16xf32>
    tpu.vector_store %arg7[%c0_58, %c0_59, %c0_60], %225 {strides = array<i32>} : memref<2x8x32xf32, #tpu.memory_space<vmem>>, vector<2x1x16xf32>,
    %226 = vector.extract_strided_slice %221 {offsets = [0, 16], sizes = [2, 16], strides = [1, 1]} : vector<2x32xf32> to vector<2x16xf32>
    %c0_61 = arith.constant 0 : index
    %c7 = arith.constant 7 : index
    %c16 = arith.constant 16 : index
    %227 = vector.load %arg7[%c0_61, %c7, %c16] : memref<2x8x32xf32, #tpu.memory_space<vmem>>, vector<2x1x16xf32>
    %228 = vector.shape_cast %227 : vector<2x1x16xf32> to vector<2x16xf32>
    %229 = vector.shape_cast %226 : vector<2x16xf32> to vector<2x1x16xf32>
    tpu.vector_store %arg7[%c0_61, %c7, %c16], %229 {strides = array<i32>} : memref<2x8x32xf32, #tpu.memory_space<vmem>>, vector<2x1x16xf32>,
    %cst_62 = arith.constant dense<0.000000e+00> : vector<2x96xf32>
    %230 = tpu.matmul %221, %145, %cst_62 {dimension_numbers = #tpu.dot_dimension_numbers<[1], [0], [0], [1], [0, 0, 1, 1], [], []>} : vector<2x32xf32>, vector<32x96xf32>, vector<2x96xf32> -> vector<2x96xf32>
    %231 = vector.broadcast %147 : vector<1x96xf32> to vector<2x96xf32>
    %232 = arith.addf %230, %231 : vector<2x96xf32>
    %233 = vector.extract_strided_slice %161 {offsets = [0, 0], sizes = [2, 32], strides = [1, 1]} : vector<2x96xf32> to vector<2x32xf32>
    %234 = vector.extract_strided_slice %232 {offsets = [0, 0], sizes = [2, 32], strides = [1, 1]} : vector<2x96xf32> to vector<2x32xf32>
    %235 = arith.addf %233, %234 : vector<2x32xf32>
    %236 = arith.negf %235 : vector<2x32xf32>
    %237 = math.exp %236 : vector<2x32xf32>
    %cst_63 = arith.constant 1.000000e+00 : f32
    %238 = vector.broadcast %cst_63 : f32 to vector<2x32xf32>
    %239 = arith.addf %238, %237 : vector<2x32xf32>
    %240 = arith.divf %238, %239 : vector<2x32xf32>
    %241 = vector.extract_strided_slice %161 {offsets = [0, 32], sizes = [2, 32], strides = [1, 1]} : vector<2x96xf32> to vector<2x32xf32>
    %242 = vector.extract_strided_slice %232 {offsets = [0, 32], sizes = [2, 32], strides = [1, 1]} : vector<2x96xf32> to vector<2x32xf32>
    %243 = arith.addf %241, %242 : vector<2x32xf32>
    %244 = arith.negf %243 : vector<2x32xf32>
    %245 = math.exp %244 : vector<2x32xf32>
    %cst_64 = arith.constant 1.000000e+00 : f32
    %246 = vector.broadcast %cst_64 : f32 to vector<2x32xf32>
    %247 = arith.addf %246, %245 : vector<2x32xf32>
    %248 = arith.divf %246, %247 : vector<2x32xf32>
    %249 = vector.extract_strided_slice %161 {offsets = [0, 64], sizes = [2, 32], strides = [1, 1]} : vector<2x96xf32> to vector<2x32xf32>
    %250 = vector.extract_strided_slice %232 {offsets = [0, 64], sizes = [2, 32], strides = [1, 1]} : vector<2x96xf32> to vector<2x32xf32>
    %251 = arith.mulf %240, %250 : vector<2x32xf32>
    %252 = arith.addf %249, %251 : vector<2x32xf32>
    %253 = math.tanh %252 : vector<2x32xf32>
    %cst_65 = arith.constant 1.000000e+00 : f32
    %254 = vector.broadcast %cst_65 : f32 to vector<2x32xf32>
    %255 = arith.subf %254, %248 : vector<2x32xf32>
    %256 = arith.mulf %255, %253 : vector<2x32xf32>
    %257 = arith.mulf %248, %221 : vector<2x32xf32>
    %258 = arith.addf %256, %257 : vector<2x32xf32>
    %259 = vector.extract_strided_slice %258 {offsets = [0, 0], sizes = [2, 16], strides = [1, 1]} : vector<2x32xf32> to vector<2x16xf32>
    %c0_66 = arith.constant 0 : index
    %c1_67 = arith.constant 1 : index
    %c0_68 = arith.constant 0 : index
    %260 = vector.load %arg7[%c0_66, %c1_67, %c0_68] : memref<2x8x32xf32, #tpu.memory_space<vmem>>, vector<2x1x16xf32>
    %261 = vector.shape_cast %260 : vector<2x1x16xf32> to vector<2x16xf32>
    %262 = vector.shape_cast %259 : vector<2x16xf32> to vector<2x1x16xf32>
    tpu.vector_store %arg7[%c0_66, %c1_67, %c0_68], %262 {strides = array<i32>} : memref<2x8x32xf32, #tpu.memory_space<vmem>>, vector<2x1x16xf32>,
    %263 = vector.extract_strided_slice %258 {offsets = [0, 16], sizes = [2, 16], strides = [1, 1]} : vector<2x32xf32> to vector<2x16xf32>
    %c0_69 = arith.constant 0 : index
    %c6 = arith.constant 6 : index
    %c16_70 = arith.constant 16 : index
    %264 = vector.load %arg7[%c0_69, %c6, %c16_70] : memref<2x8x32xf32, #tpu.memory_space<vmem>>, vector<2x1x16xf32>
    %265 = vector.shape_cast %264 : vector<2x1x16xf32> to vector<2x16xf32>
    %266 = vector.shape_cast %263 : vector<2x16xf32> to vector<2x1x16xf32>
    tpu.vector_store %arg7[%c0_69, %c6, %c16_70], %266 {strides = array<i32>} : memref<2x8x32xf32, #tpu.memory_space<vmem>>, vector<2x1x16xf32>,
    %cst_71 = arith.constant dense<0.000000e+00> : vector<2x96xf32>
    %267 = tpu.matmul %258, %145, %cst_71 {dimension_numbers = #tpu.dot_dimension_numbers<[1], [0], [0], [1], [0, 0, 1, 1], [], []>} : vector<2x32xf32>, vector<32x96xf32>, vector<2x96xf32> -> vector<2x96xf32>
    %268 = vector.broadcast %147 : vector<1x96xf32> to vector<2x96xf32>
    %269 = arith.addf %267, %268 : vector<2x96xf32>
    %270 = vector.extract_strided_slice %166 {offsets = [0, 0], sizes = [2, 32], strides = [1, 1]} : vector<2x96xf32> to vector<2x32xf32>
    %271 = vector.extract_strided_slice %269 {offsets = [0, 0], sizes = [2, 32], strides = [1, 1]} : vector<2x96xf32> to vector<2x32xf32>
    %272 = arith.addf %270, %271 : vector<2x32xf32>
    %273 = arith.negf %272 : vector<2x32xf32>
    %274 = math.exp %273 : vector<2x32xf32>
    %cst_72 = arith.constant 1.000000e+00 : f32
    %275 = vector.broadcast %cst_72 : f32 to vector<2x32xf32>
    %276 = arith.addf %275, %274 : vector<2x32xf32>
    %277 = arith.divf %275, %276 : vector<2x32xf32>
    %278 = vector.extract_strided_slice %166 {offsets = [0, 32], sizes = [2, 32], strides = [1, 1]} : vector<2x96xf32> to vector<2x32xf32>
    %279 = vector.extract_strided_slice %269 {offsets = [0, 32], sizes = [2, 32], strides = [1, 1]} : vector<2x96xf32> to vector<2x32xf32>
    %280 = arith.addf %278, %279 : vector<2x32xf32>
    %281 = arith.negf %280 : vector<2x32xf32>
    %282 = math.exp %281 : vector<2x32xf32>
    %cst_73 = arith.constant 1.000000e+00 : f32
    %283 = vector.broadcast %cst_73 : f32 to vector<2x32xf32>
    %284 = arith.addf %283, %282 : vector<2x32xf32>
    %285 = arith.divf %283, %284 : vector<2x32xf32>
    %286 = vector.extract_strided_slice %166 {offsets = [0, 64], sizes = [2, 32], strides = [1, 1]} : vector<2x96xf32> to vector<2x32xf32>
    %287 = vector.extract_strided_slice %269 {offsets = [0, 64], sizes = [2, 32], strides = [1, 1]} : vector<2x96xf32> to vector<2x32xf32>
    %288 = arith.mulf %277, %287 : vector<2x32xf32>
    %289 = arith.addf %286, %288 : vector<2x32xf32>
    %290 = math.tanh %289 : vector<2x32xf32>
    %cst_74 = arith.constant 1.000000e+00 : f32
    %291 = vector.broadcast %cst_74 : f32 to vector<2x32xf32>
    %292 = arith.subf %291, %285 : vector<2x32xf32>
    %293 = arith.mulf %292, %290 : vector<2x32xf32>
    %294 = arith.mulf %285, %258 : vector<2x32xf32>
    %295 = arith.addf %293, %294 : vector<2x32xf32>
    %296 = vector.extract_strided_slice %295 {offsets = [0, 0], sizes = [2, 16], strides = [1, 1]} : vector<2x32xf32> to vector<2x16xf32>
    %c0_75 = arith.constant 0 : index
    %c2_76 = arith.constant 2 : index
    %c0_77 = arith.constant 0 : index
    %297 = vector.load %arg7[%c0_75, %c2_76, %c0_77] : memref<2x8x32xf32, #tpu.memory_space<vmem>>, vector<2x1x16xf32>
    %298 = vector.shape_cast %297 : vector<2x1x16xf32> to vector<2x16xf32>
    %299 = vector.shape_cast %296 : vector<2x16xf32> to vector<2x1x16xf32>
    tpu.vector_store %arg7[%c0_75, %c2_76, %c0_77], %299 {strides = array<i32>} : memref<2x8x32xf32, #tpu.memory_space<vmem>>, vector<2x1x16xf32>,
    %300 = vector.extract_strided_slice %295 {offsets = [0, 16], sizes = [2, 16], strides = [1, 1]} : vector<2x32xf32> to vector<2x16xf32>
    %c0_78 = arith.constant 0 : index
    %c5_79 = arith.constant 5 : index
    %c16_80 = arith.constant 16 : index
    %301 = vector.load %arg7[%c0_78, %c5_79, %c16_80] : memref<2x8x32xf32, #tpu.memory_space<vmem>>, vector<2x1x16xf32>
    %302 = vector.shape_cast %301 : vector<2x1x16xf32> to vector<2x16xf32>
    %303 = vector.shape_cast %300 : vector<2x16xf32> to vector<2x1x16xf32>
    tpu.vector_store %arg7[%c0_78, %c5_79, %c16_80], %303 {strides = array<i32>} : memref<2x8x32xf32, #tpu.memory_space<vmem>>, vector<2x1x16xf32>,
    %cst_81 = arith.constant dense<0.000000e+00> : vector<2x96xf32>
    %304 = tpu.matmul %295, %145, %cst_81 {dimension_numbers = #tpu.dot_dimension_numbers<[1], [0], [0], [1], [0, 0, 1, 1], [], []>} : vector<2x32xf32>, vector<32x96xf32>, vector<2x96xf32> -> vector<2x96xf32>
    %305 = vector.broadcast %147 : vector<1x96xf32> to vector<2x96xf32>
    %306 = arith.addf %304, %305 : vector<2x96xf32>
    %307 = vector.extract_strided_slice %171 {offsets = [0, 0], sizes = [2, 32], strides = [1, 1]} : vector<2x96xf32> to vector<2x32xf32>
    %308 = vector.extract_strided_slice %306 {offsets = [0, 0], sizes = [2, 32], strides = [1, 1]} : vector<2x96xf32> to vector<2x32xf32>
    %309 = arith.addf %307, %308 : vector<2x32xf32>
    %310 = arith.negf %309 : vector<2x32xf32>
    %311 = math.exp %310 : vector<2x32xf32>
    %cst_82 = arith.constant 1.000000e+00 : f32
    %312 = vector.broadcast %cst_82 : f32 to vector<2x32xf32>
    %313 = arith.addf %312, %311 : vector<2x32xf32>
    %314 = arith.divf %312, %313 : vector<2x32xf32>
    %315 = vector.extract_strided_slice %171 {offsets = [0, 32], sizes = [2, 32], strides = [1, 1]} : vector<2x96xf32> to vector<2x32xf32>
    %316 = vector.extract_strided_slice %306 {offsets = [0, 32], sizes = [2, 32], strides = [1, 1]} : vector<2x96xf32> to vector<2x32xf32>
    %317 = arith.addf %315, %316 : vector<2x32xf32>
    %318 = arith.negf %317 : vector<2x32xf32>
    %319 = math.exp %318 : vector<2x32xf32>
    %cst_83 = arith.constant 1.000000e+00 : f32
    %320 = vector.broadcast %cst_83 : f32 to vector<2x32xf32>
    %321 = arith.addf %320, %319 : vector<2x32xf32>
    %322 = arith.divf %320, %321 : vector<2x32xf32>
    %323 = vector.extract_strided_slice %171 {offsets = [0, 64], sizes = [2, 32], strides = [1, 1]} : vector<2x96xf32> to vector<2x32xf32>
    %324 = vector.extract_strided_slice %306 {offsets = [0, 64], sizes = [2, 32], strides = [1, 1]} : vector<2x96xf32> to vector<2x32xf32>
    %325 = arith.mulf %314, %324 : vector<2x32xf32>
    %326 = arith.addf %323, %325 : vector<2x32xf32>
    %327 = math.tanh %326 : vector<2x32xf32>
    %cst_84 = arith.constant 1.000000e+00 : f32
    %328 = vector.broadcast %cst_84 : f32 to vector<2x32xf32>
    %329 = arith.subf %328, %322 : vector<2x32xf32>
    %330 = arith.mulf %329, %327 : vector<2x32xf32>
    %331 = arith.mulf %322, %295 : vector<2x32xf32>
    %332 = arith.addf %330, %331 : vector<2x32xf32>
    %333 = vector.extract_strided_slice %332 {offsets = [0, 0], sizes = [2, 16], strides = [1, 1]} : vector<2x32xf32> to vector<2x16xf32>
    %c0_85 = arith.constant 0 : index
    %c3_86 = arith.constant 3 : index
    %c0_87 = arith.constant 0 : index
    %334 = vector.load %arg7[%c0_85, %c3_86, %c0_87] : memref<2x8x32xf32, #tpu.memory_space<vmem>>, vector<2x1x16xf32>
    %335 = vector.shape_cast %334 : vector<2x1x16xf32> to vector<2x16xf32>
    %336 = vector.shape_cast %333 : vector<2x16xf32> to vector<2x1x16xf32>
    tpu.vector_store %arg7[%c0_85, %c3_86, %c0_87], %336 {strides = array<i32>} : memref<2x8x32xf32, #tpu.memory_space<vmem>>, vector<2x1x16xf32>,
    %337 = vector.extract_strided_slice %332 {offsets = [0, 16], sizes = [2, 16], strides = [1, 1]} : vector<2x32xf32> to vector<2x16xf32>
    %c0_88 = arith.constant 0 : index
    %c4_89 = arith.constant 4 : index
    %c16_90 = arith.constant 16 : index
    %338 = vector.load %arg7[%c0_88, %c4_89, %c16_90] : memref<2x8x32xf32, #tpu.memory_space<vmem>>, vector<2x1x16xf32>
    %339 = vector.shape_cast %338 : vector<2x1x16xf32> to vector<2x16xf32>
    %340 = vector.shape_cast %337 : vector<2x16xf32> to vector<2x1x16xf32>
    tpu.vector_store %arg7[%c0_88, %c4_89, %c16_90], %340 {strides = array<i32>} : memref<2x8x32xf32, #tpu.memory_space<vmem>>, vector<2x1x16xf32>,
    %cst_91 = arith.constant dense<0.000000e+00> : vector<2x96xf32>
    %341 = tpu.matmul %332, %145, %cst_91 {dimension_numbers = #tpu.dot_dimension_numbers<[1], [0], [0], [1], [0, 0, 1, 1], [], []>} : vector<2x32xf32>, vector<32x96xf32>, vector<2x96xf32> -> vector<2x96xf32>
    %342 = vector.broadcast %147 : vector<1x96xf32> to vector<2x96xf32>
    %343 = arith.addf %341, %342 : vector<2x96xf32>
    %344 = vector.extract_strided_slice %176 {offsets = [0, 0], sizes = [2, 32], strides = [1, 1]} : vector<2x96xf32> to vector<2x32xf32>
    %345 = vector.extract_strided_slice %343 {offsets = [0, 0], sizes = [2, 32], strides = [1, 1]} : vector<2x96xf32> to vector<2x32xf32>
    %346 = arith.addf %344, %345 : vector<2x32xf32>
    %347 = arith.negf %346 : vector<2x32xf32>
    %348 = math.exp %347 : vector<2x32xf32>
    %cst_92 = arith.constant 1.000000e+00 : f32
    %349 = vector.broadcast %cst_92 : f32 to vector<2x32xf32>
    %350 = arith.addf %349, %348 : vector<2x32xf32>
    %351 = arith.divf %349, %350 : vector<2x32xf32>
    %352 = vector.extract_strided_slice %176 {offsets = [0, 32], sizes = [2, 32], strides = [1, 1]} : vector<2x96xf32> to vector<2x32xf32>
    %353 = vector.extract_strided_slice %343 {offsets = [0, 32], sizes = [2, 32], strides = [1, 1]} : vector<2x96xf32> to vector<2x32xf32>
    %354 = arith.addf %352, %353 : vector<2x32xf32>
    %355 = arith.negf %354 : vector<2x32xf32>
    %356 = math.exp %355 : vector<2x32xf32>
    %cst_93 = arith.constant 1.000000e+00 : f32
    %357 = vector.broadcast %cst_93 : f32 to vector<2x32xf32>
    %358 = arith.addf %357, %356 : vector<2x32xf32>
    %359 = arith.divf %357, %358 : vector<2x32xf32>
    %360 = vector.extract_strided_slice %176 {offsets = [0, 64], sizes = [2, 32], strides = [1, 1]} : vector<2x96xf32> to vector<2x32xf32>
    %361 = vector.extract_strided_slice %343 {offsets = [0, 64], sizes = [2, 32], strides = [1, 1]} : vector<2x96xf32> to vector<2x32xf32>
    %362 = arith.mulf %351, %361 : vector<2x32xf32>
    %363 = arith.addf %360, %362 : vector<2x32xf32>
    %364 = math.tanh %363 : vector<2x32xf32>
    %cst_94 = arith.constant 1.000000e+00 : f32
    %365 = vector.broadcast %cst_94 : f32 to vector<2x32xf32>
    %366 = arith.subf %365, %359 : vector<2x32xf32>
    %367 = arith.mulf %366, %364 : vector<2x32xf32>
    %368 = arith.mulf %359, %332 : vector<2x32xf32>
    %369 = arith.addf %367, %368 : vector<2x32xf32>
    %370 = vector.extract_strided_slice %369 {offsets = [0, 0], sizes = [2, 16], strides = [1, 1]} : vector<2x32xf32> to vector<2x16xf32>
    %c0_95 = arith.constant 0 : index
    %c4_96 = arith.constant 4 : index
    %c0_97 = arith.constant 0 : index
    %371 = vector.load %arg7[%c0_95, %c4_96, %c0_97] : memref<2x8x32xf32, #tpu.memory_space<vmem>>, vector<2x1x16xf32>
    %372 = vector.shape_cast %371 : vector<2x1x16xf32> to vector<2x16xf32>
    %373 = vector.shape_cast %370 : vector<2x16xf32> to vector<2x1x16xf32>
    tpu.vector_store %arg7[%c0_95, %c4_96, %c0_97], %373 {strides = array<i32>} : memref<2x8x32xf32, #tpu.memory_space<vmem>>, vector<2x1x16xf32>,
    %374 = vector.extract_strided_slice %369 {offsets = [0, 16], sizes = [2, 16], strides = [1, 1]} : vector<2x32xf32> to vector<2x16xf32>
    %c0_98 = arith.constant 0 : index
    %c3_99 = arith.constant 3 : index
    %c16_100 = arith.constant 16 : index
    %375 = vector.load %arg7[%c0_98, %c3_99, %c16_100] : memref<2x8x32xf32, #tpu.memory_space<vmem>>, vector<2x1x16xf32>
    %376 = vector.shape_cast %375 : vector<2x1x16xf32> to vector<2x16xf32>
    %377 = vector.shape_cast %374 : vector<2x16xf32> to vector<2x1x16xf32>
    tpu.vector_store %arg7[%c0_98, %c3_99, %c16_100], %377 {strides = array<i32>} : memref<2x8x32xf32, #tpu.memory_space<vmem>>, vector<2x1x16xf32>,
    %cst_101 = arith.constant dense<0.000000e+00> : vector<2x96xf32>
    %378 = tpu.matmul %369, %145, %cst_101 {dimension_numbers = #tpu.dot_dimension_numbers<[1], [0], [0], [1], [0, 0, 1, 1], [], []>} : vector<2x32xf32>, vector<32x96xf32>, vector<2x96xf32> -> vector<2x96xf32>
    %379 = vector.broadcast %147 : vector<1x96xf32> to vector<2x96xf32>
    %380 = arith.addf %378, %379 : vector<2x96xf32>
    %381 = vector.extract_strided_slice %181 {offsets = [0, 0], sizes = [2, 32], strides = [1, 1]} : vector<2x96xf32> to vector<2x32xf32>
    %382 = vector.extract_strided_slice %380 {offsets = [0, 0], sizes = [2, 32], strides = [1, 1]} : vector<2x96xf32> to vector<2x32xf32>
    %383 = arith.addf %381, %382 : vector<2x32xf32>
    %384 = arith.negf %383 : vector<2x32xf32>
    %385 = math.exp %384 : vector<2x32xf32>
    %cst_102 = arith.constant 1.000000e+00 : f32
    %386 = vector.broadcast %cst_102 : f32 to vector<2x32xf32>
    %387 = arith.addf %386, %385 : vector<2x32xf32>
    %388 = arith.divf %386, %387 : vector<2x32xf32>
    %389 = vector.extract_strided_slice %181 {offsets = [0, 32], sizes = [2, 32], strides = [1, 1]} : vector<2x96xf32> to vector<2x32xf32>
    %390 = vector.extract_strided_slice %380 {offsets = [0, 32], sizes = [2, 32], strides = [1, 1]} : vector<2x96xf32> to vector<2x32xf32>
    %391 = arith.addf %389, %390 : vector<2x32xf32>
    %392 = arith.negf %391 : vector<2x32xf32>
    %393 = math.exp %392 : vector<2x32xf32>
    %cst_103 = arith.constant 1.000000e+00 : f32
    %394 = vector.broadcast %cst_103 : f32 to vector<2x32xf32>
    %395 = arith.addf %394, %393 : vector<2x32xf32>
    %396 = arith.divf %394, %395 : vector<2x32xf32>
    %397 = vector.extract_strided_slice %181 {offsets = [0, 64], sizes = [2, 32], strides = [1, 1]} : vector<2x96xf32> to vector<2x32xf32>
    %398 = vector.extract_strided_slice %380 {offsets = [0, 64], sizes = [2, 32], strides = [1, 1]} : vector<2x96xf32> to vector<2x32xf32>
    %399 = arith.mulf %388, %398 : vector<2x32xf32>
    %400 = arith.addf %397, %399 : vector<2x32xf32>
    %401 = math.tanh %400 : vector<2x32xf32>
    %cst_104 = arith.constant 1.000000e+00 : f32
    %402 = vector.broadcast %cst_104 : f32 to vector<2x32xf32>
    %403 = arith.subf %402, %396 : vector<2x32xf32>
    %404 = arith.mulf %403, %401 : vector<2x32xf32>
    %405 = arith.mulf %396, %369 : vector<2x32xf32>
    %406 = arith.addf %404, %405 : vector<2x32xf32>
    %407 = vector.extract_strided_slice %406 {offsets = [0, 0], sizes = [2, 16], strides = [1, 1]} : vector<2x32xf32> to vector<2x16xf32>
    %c0_105 = arith.constant 0 : index
    %c5_106 = arith.constant 5 : index
    %c0_107 = arith.constant 0 : index
    %408 = vector.load %arg7[%c0_105, %c5_106, %c0_107] : memref<2x8x32xf32, #tpu.memory_space<vmem>>, vector<2x1x16xf32>
    %409 = vector.shape_cast %408 : vector<2x1x16xf32> to vector<2x16xf32>
    %410 = vector.shape_cast %407 : vector<2x16xf32> to vector<2x1x16xf32>
    tpu.vector_store %arg7[%c0_105, %c5_106, %c0_107], %410 {strides = array<i32>} : memref<2x8x32xf32, #tpu.memory_space<vmem>>, vector<2x1x16xf32>,
    %411 = vector.extract_strided_slice %406 {offsets = [0, 16], sizes = [2, 16], strides = [1, 1]} : vector<2x32xf32> to vector<2x16xf32>
    %c0_108 = arith.constant 0 : index
    %c2_109 = arith.constant 2 : index
    %c16_110 = arith.constant 16 : index
    %412 = vector.load %arg7[%c0_108, %c2_109, %c16_110] : memref<2x8x32xf32, #tpu.memory_space<vmem>>, vector<2x1x16xf32>
    %413 = vector.shape_cast %412 : vector<2x1x16xf32> to vector<2x16xf32>
    %414 = vector.shape_cast %411 : vector<2x16xf32> to vector<2x1x16xf32>
    tpu.vector_store %arg7[%c0_108, %c2_109, %c16_110], %414 {strides = array<i32>} : memref<2x8x32xf32, #tpu.memory_space<vmem>>, vector<2x1x16xf32>,
    %cst_111 = arith.constant dense<0.000000e+00> : vector<2x96xf32>
    %415 = tpu.matmul %406, %145, %cst_111 {dimension_numbers = #tpu.dot_dimension_numbers<[1], [0], [0], [1], [0, 0, 1, 1], [], []>} : vector<2x32xf32>, vector<32x96xf32>, vector<2x96xf32> -> vector<2x96xf32>
    %416 = vector.broadcast %147 : vector<1x96xf32> to vector<2x96xf32>
    %417 = arith.addf %415, %416 : vector<2x96xf32>
    %418 = vector.extract_strided_slice %186 {offsets = [0, 0], sizes = [2, 32], strides = [1, 1]} : vector<2x96xf32> to vector<2x32xf32>
    %419 = vector.extract_strided_slice %417 {offsets = [0, 0], sizes = [2, 32], strides = [1, 1]} : vector<2x96xf32> to vector<2x32xf32>
    %420 = arith.addf %418, %419 : vector<2x32xf32>
    %421 = arith.negf %420 : vector<2x32xf32>
    %422 = math.exp %421 : vector<2x32xf32>
    %cst_112 = arith.constant 1.000000e+00 : f32
    %423 = vector.broadcast %cst_112 : f32 to vector<2x32xf32>
    %424 = arith.addf %423, %422 : vector<2x32xf32>
    %425 = arith.divf %423, %424 : vector<2x32xf32>
    %426 = vector.extract_strided_slice %186 {offsets = [0, 32], sizes = [2, 32], strides = [1, 1]} : vector<2x96xf32> to vector<2x32xf32>
    %427 = vector.extract_strided_slice %417 {offsets = [0, 32], sizes = [2, 32], strides = [1, 1]} : vector<2x96xf32> to vector<2x32xf32>
    %428 = arith.addf %426, %427 : vector<2x32xf32>
    %429 = arith.negf %428 : vector<2x32xf32>
    %430 = math.exp %429 : vector<2x32xf32>
    %cst_113 = arith.constant 1.000000e+00 : f32
    %431 = vector.broadcast %cst_113 : f32 to vector<2x32xf32>
    %432 = arith.addf %431, %430 : vector<2x32xf32>
    %433 = arith.divf %431, %432 : vector<2x32xf32>
    %434 = vector.extract_strided_slice %186 {offsets = [0, 64], sizes = [2, 32], strides = [1, 1]} : vector<2x96xf32> to vector<2x32xf32>
    %435 = vector.extract_strided_slice %417 {offsets = [0, 64], sizes = [2, 32], strides = [1, 1]} : vector<2x96xf32> to vector<2x32xf32>
    %436 = arith.mulf %425, %435 : vector<2x32xf32>
    %437 = arith.addf %434, %436 : vector<2x32xf32>
    %438 = math.tanh %437 : vector<2x32xf32>
    %cst_114 = arith.constant 1.000000e+00 : f32
    %439 = vector.broadcast %cst_114 : f32 to vector<2x32xf32>
    %440 = arith.subf %439, %433 : vector<2x32xf32>
    %441 = arith.mulf %440, %438 : vector<2x32xf32>
    %442 = arith.mulf %433, %406 : vector<2x32xf32>
    %443 = arith.addf %441, %442 : vector<2x32xf32>
    %444 = vector.extract_strided_slice %443 {offsets = [0, 0], sizes = [2, 16], strides = [1, 1]} : vector<2x32xf32> to vector<2x16xf32>
    %c0_115 = arith.constant 0 : index
    %c6_116 = arith.constant 6 : index
    %c0_117 = arith.constant 0 : index
    %445 = vector.load %arg7[%c0_115, %c6_116, %c0_117] : memref<2x8x32xf32, #tpu.memory_space<vmem>>, vector<2x1x16xf32>
    %446 = vector.shape_cast %445 : vector<2x1x16xf32> to vector<2x16xf32>
    %447 = vector.shape_cast %444 : vector<2x16xf32> to vector<2x1x16xf32>
    tpu.vector_store %arg7[%c0_115, %c6_116, %c0_117], %447 {strides = array<i32>} : memref<2x8x32xf32, #tpu.memory_space<vmem>>, vector<2x1x16xf32>,
    %448 = vector.extract_strided_slice %443 {offsets = [0, 16], sizes = [2, 16], strides = [1, 1]} : vector<2x32xf32> to vector<2x16xf32>
    %c0_118 = arith.constant 0 : index
    %c1_119 = arith.constant 1 : index
    %c16_120 = arith.constant 16 : index
    %449 = vector.load %arg7[%c0_118, %c1_119, %c16_120] : memref<2x8x32xf32, #tpu.memory_space<vmem>>, vector<2x1x16xf32>
    %450 = vector.shape_cast %449 : vector<2x1x16xf32> to vector<2x16xf32>
    %451 = vector.shape_cast %448 : vector<2x16xf32> to vector<2x1x16xf32>
    tpu.vector_store %arg7[%c0_118, %c1_119, %c16_120], %451 {strides = array<i32>} : memref<2x8x32xf32, #tpu.memory_space<vmem>>, vector<2x1x16xf32>,
    %cst_121 = arith.constant dense<0.000000e+00> : vector<2x96xf32>
    %452 = tpu.matmul %443, %145, %cst_121 {dimension_numbers = #tpu.dot_dimension_numbers<[1], [0], [0], [1], [0, 0, 1, 1], [], []>} : vector<2x32xf32>, vector<32x96xf32>, vector<2x96xf32> -> vector<2x96xf32>
    %453 = vector.broadcast %147 : vector<1x96xf32> to vector<2x96xf32>
    %454 = arith.addf %452, %453 : vector<2x96xf32>
    %455 = vector.extract_strided_slice %191 {offsets = [0, 0], sizes = [2, 32], strides = [1, 1]} : vector<2x96xf32> to vector<2x32xf32>
    %456 = vector.extract_strided_slice %454 {offsets = [0, 0], sizes = [2, 32], strides = [1, 1]} : vector<2x96xf32> to vector<2x32xf32>
    %457 = arith.addf %455, %456 : vector<2x32xf32>
    %458 = arith.negf %457 : vector<2x32xf32>
    %459 = math.exp %458 : vector<2x32xf32>
    %cst_122 = arith.constant 1.000000e+00 : f32
    %460 = vector.broadcast %cst_122 : f32 to vector<2x32xf32>
    %461 = arith.addf %460, %459 : vector<2x32xf32>
    %462 = arith.divf %460, %461 : vector<2x32xf32>
    %463 = vector.extract_strided_slice %191 {offsets = [0, 32], sizes = [2, 32], strides = [1, 1]} : vector<2x96xf32> to vector<2x32xf32>
    %464 = vector.extract_strided_slice %454 {offsets = [0, 32], sizes = [2, 32], strides = [1, 1]} : vector<2x96xf32> to vector<2x32xf32>
    %465 = arith.addf %463, %464 : vector<2x32xf32>
    %466 = arith.negf %465 : vector<2x32xf32>
    %467 = math.exp %466 : vector<2x32xf32>
    %cst_123 = arith.constant 1.000000e+00 : f32
    %468 = vector.broadcast %cst_123 : f32 to vector<2x32xf32>
    %469 = arith.addf %468, %467 : vector<2x32xf32>
    %470 = arith.divf %468, %469 : vector<2x32xf32>
    %471 = vector.extract_strided_slice %191 {offsets = [0, 64], sizes = [2, 32], strides = [1, 1]} : vector<2x96xf32> to vector<2x32xf32>
    %472 = vector.extract_strided_slice %454 {offsets = [0, 64], sizes = [2, 32], strides = [1, 1]} : vector<2x96xf32> to vector<2x32xf32>
    %473 = arith.mulf %462, %472 : vector<2x32xf32>
    %474 = arith.addf %471, %473 : vector<2x32xf32>
    %475 = math.tanh %474 : vector<2x32xf32>
    %cst_124 = arith.constant 1.000000e+00 : f32
    %476 = vector.broadcast %cst_124 : f32 to vector<2x32xf32>
    %477 = arith.subf %476, %470 : vector<2x32xf32>
    %478 = arith.mulf %477, %475 : vector<2x32xf32>
    %479 = arith.mulf %470, %443 : vector<2x32xf32>
    %480 = arith.addf %478, %479 : vector<2x32xf32>
    %481 = vector.extract_strided_slice %480 {offsets = [0, 0], sizes = [2, 16], strides = [1, 1]} : vector<2x32xf32> to vector<2x16xf32>
    %c0_125 = arith.constant 0 : index
    %c7_126 = arith.constant 7 : index
    %c0_127 = arith.constant 0 : index
    %482 = vector.load %arg7[%c0_125, %c7_126, %c0_127] : memref<2x8x32xf32, #tpu.memory_space<vmem>>, vector<2x1x16xf32>
    %483 = vector.shape_cast %482 : vector<2x1x16xf32> to vector<2x16xf32>
    %484 = vector.shape_cast %481 : vector<2x16xf32> to vector<2x1x16xf32>
    tpu.vector_store %arg7[%c0_125, %c7_126, %c0_127], %484 {strides = array<i32>} : memref<2x8x32xf32, #tpu.memory_space<vmem>>, vector<2x1x16xf32>,
    %485 = vector.extract_strided_slice %480 {offsets = [0, 16], sizes = [2, 16], strides = [1, 1]} : vector<2x32xf32> to vector<2x16xf32>
    %c0_128 = arith.constant 0 : index
    %c0_129 = arith.constant 0 : index
    %c16_130 = arith.constant 16 : index
    %486 = vector.load %arg7[%c0_128, %c0_129, %c16_130] : memref<2x8x32xf32, #tpu.memory_space<vmem>>, vector<2x1x16xf32>
    %487 = vector.shape_cast %486 : vector<2x1x16xf32> to vector<2x16xf32>
    %488 = vector.shape_cast %485 : vector<2x16xf32> to vector<2x1x16xf32>
    tpu.vector_store %arg7[%c0_128, %c0_129, %c16_130], %488 {strides = array<i32>} : memref<2x8x32xf32, #tpu.memory_space<vmem>>, vector<2x1x16xf32>,
    %c0_131 = arith.constant 0 : index
    %c0_132 = arith.constant 0 : index
    %c0_133 = arith.constant 0 : index
    %489 = vector.load %arg7[%c0_131, %c0_132, %c0_133] : memref<2x8x32xf32, #tpu.memory_space<vmem>>, vector<2x8x32xf32>
    %490 = vector.shape_cast %489 : vector<2x8x32xf32> to vector<16x32xf32>
    %c64 = arith.constant 64 : index
    %c0_134 = arith.constant 0 : index
    %491 = vector.load %arg4[%c64, %c0_134] : memref<128x96xf32, #tpu.memory_space<vmem>>, vector<32x96xf32>
    %c96 = arith.constant 96 : index
    %c0_135 = arith.constant 0 : index
    %492 = vector.load %arg4[%c96, %c0_135] : memref<128x96xf32, #tpu.memory_space<vmem>>, vector<32x96xf32>
    %493 = vector.extract_strided_slice %25 {offsets = [8, 0], sizes = [1, 96], strides = [1, 1]} : vector<10x96xf32> to vector<1x96xf32>
    %494 = vector.extract_strided_slice %25 {offsets = [9, 0], sizes = [1, 96], strides = [1, 1]} : vector<10x96xf32> to vector<1x96xf32>
    %cst_136 = arith.constant dense<0.000000e+00> : vector<16x96xf32>
    %495 = tpu.matmul %490, %491, %cst_136 {dimension_numbers = #tpu.dot_dimension_numbers<[1], [0], [0], [1], [0, 0, 1, 1], [], []>} : vector<16x32xf32>, vector<32x96xf32>, vector<16x96xf32> -> vector<16x96xf32>
    %496 = vector.broadcast %493 : vector<1x96xf32> to vector<16x96xf32>
    %497 = arith.addf %495, %496 : vector<16x96xf32>
    %498 = vector.shape_cast %497 : vector<16x96xf32> to vector<2x8x96xf32>
    %499 = vector.extract_strided_slice %498 {offsets = [0, 0, 0], sizes = [2, 1, 96], strides = [1, 1, 1]} : vector<2x8x96xf32> to vector<2x1x96xf32>
    %500 = vector.shape_cast %499 : vector<2x1x96xf32> to vector<2x96xf32>
    %501 = vector.extract_strided_slice %498 {offsets = [0, 7, 0], sizes = [2, 1, 96], strides = [1, 1, 1]} : vector<2x8x96xf32> to vector<2x1x96xf32>
    %502 = vector.shape_cast %501 : vector<2x1x96xf32> to vector<2x96xf32>
    %503 = arith.select %143, %500, %502 : vector<2x96xi1>, vector<2x96xf32>
    %504 = vector.extract_strided_slice %498 {offsets = [0, 1, 0], sizes = [2, 1, 96], strides = [1, 1, 1]} : vector<2x8x96xf32> to vector<2x1x96xf32>
    %505 = vector.shape_cast %504 : vector<2x1x96xf32> to vector<2x96xf32>
    %506 = vector.extract_strided_slice %498 {offsets = [0, 6, 0], sizes = [2, 1, 96], strides = [1, 1, 1]} : vector<2x8x96xf32> to vector<2x1x96xf32>
    %507 = vector.shape_cast %506 : vector<2x1x96xf32> to vector<2x96xf32>
    %508 = arith.select %143, %505, %507 : vector<2x96xi1>, vector<2x96xf32>
    %509 = vector.extract_strided_slice %498 {offsets = [0, 2, 0], sizes = [2, 1, 96], strides = [1, 1, 1]} : vector<2x8x96xf32> to vector<2x1x96xf32>
    %510 = vector.shape_cast %509 : vector<2x1x96xf32> to vector<2x96xf32>
    %511 = vector.extract_strided_slice %498 {offsets = [0, 5, 0], sizes = [2, 1, 96], strides = [1, 1, 1]} : vector<2x8x96xf32> to vector<2x1x96xf32>
    %512 = vector.shape_cast %511 : vector<2x1x96xf32> to vector<2x96xf32>
    %513 = arith.select %143, %510, %512 : vector<2x96xi1>, vector<2x96xf32>
    %514 = vector.extract_strided_slice %498 {offsets = [0, 3, 0], sizes = [2, 1, 96], strides = [1, 1, 1]} : vector<2x8x96xf32> to vector<2x1x96xf32>
    %515 = vector.shape_cast %514 : vector<2x1x96xf32> to vector<2x96xf32>
    %516 = vector.extract_strided_slice %498 {offsets = [0, 4, 0], sizes = [2, 1, 96], strides = [1, 1, 1]} : vector<2x8x96xf32> to vector<2x1x96xf32>
    %517 = vector.shape_cast %516 : vector<2x1x96xf32> to vector<2x96xf32>
    %518 = arith.select %143, %515, %517 : vector<2x96xi1>, vector<2x96xf32>
    %519 = vector.extract_strided_slice %498 {offsets = [0, 4, 0], sizes = [2, 1, 96], strides = [1, 1, 1]} : vector<2x8x96xf32> to vector<2x1x96xf32>
    %520 = vector.shape_cast %519 : vector<2x1x96xf32> to vector<2x96xf32>
    %521 = vector.extract_strided_slice %498 {offsets = [0, 3, 0], sizes = [2, 1, 96], strides = [1, 1, 1]} : vector<2x8x96xf32> to vector<2x1x96xf32>
    %522 = vector.shape_cast %521 : vector<2x1x96xf32> to vector<2x96xf32>
    %523 = arith.select %143, %520, %522 : vector<2x96xi1>, vector<2x96xf32>
    %524 = vector.extract_strided_slice %498 {offsets = [0, 5, 0], sizes = [2, 1, 96], strides = [1, 1, 1]} : vector<2x8x96xf32> to vector<2x1x96xf32>
    %525 = vector.shape_cast %524 : vector<2x1x96xf32> to vector<2x96xf32>
    %526 = vector.extract_strided_slice %498 {offsets = [0, 2, 0], sizes = [2, 1, 96], strides = [1, 1, 1]} : vector<2x8x96xf32> to vector<2x1x96xf32>
    %527 = vector.shape_cast %526 : vector<2x1x96xf32> to vector<2x96xf32>
    %528 = arith.select %143, %525, %527 : vector<2x96xi1>, vector<2x96xf32>
    %529 = vector.extract_strided_slice %498 {offsets = [0, 6, 0], sizes = [2, 1, 96], strides = [1, 1, 1]} : vector<2x8x96xf32> to vector<2x1x96xf32>
    %530 = vector.shape_cast %529 : vector<2x1x96xf32> to vector<2x96xf32>
    %531 = vector.extract_strided_slice %498 {offsets = [0, 1, 0], sizes = [2, 1, 96], strides = [1, 1, 1]} : vector<2x8x96xf32> to vector<2x1x96xf32>
    %532 = vector.shape_cast %531 : vector<2x1x96xf32> to vector<2x96xf32>
    %533 = arith.select %143, %530, %532 : vector<2x96xi1>, vector<2x96xf32>
    %534 = vector.extract_strided_slice %498 {offsets = [0, 7, 0], sizes = [2, 1, 96], strides = [1, 1, 1]} : vector<2x8x96xf32> to vector<2x1x96xf32>
    %535 = vector.shape_cast %534 : vector<2x1x96xf32> to vector<2x96xf32>
    %536 = vector.extract_strided_slice %498 {offsets = [0, 0, 0], sizes = [2, 1, 96], strides = [1, 1, 1]} : vector<2x8x96xf32> to vector<2x1x96xf32>
    %537 = vector.shape_cast %536 : vector<2x1x96xf32> to vector<2x96xf32>
    %538 = arith.select %143, %535, %537 : vector<2x96xi1>, vector<2x96xf32>
    %cst_137 = arith.constant 0.000000e+00 : f32
    %539 = vector.broadcast %cst_137 : f32 to vector<2x32xf32>
    %cst_138 = arith.constant dense<0.000000e+00> : vector<2x96xf32>
    %540 = tpu.matmul %539, %492, %cst_138 {dimension_numbers = #tpu.dot_dimension_numbers<[1], [0], [0], [1], [0, 0, 1, 1], [], []>} : vector<2x32xf32>, vector<32x96xf32>, vector<2x96xf32> -> vector<2x96xf32>
    %541 = vector.broadcast %494 : vector<1x96xf32> to vector<2x96xf32>
    %542 = arith.addf %540, %541 : vector<2x96xf32>
    %543 = vector.extract_strided_slice %503 {offsets = [0, 0], sizes = [2, 32], strides = [1, 1]} : vector<2x96xf32> to vector<2x32xf32>
    %544 = vector.extract_strided_slice %542 {offsets = [0, 0], sizes = [2, 32], strides = [1, 1]} : vector<2x96xf32> to vector<2x32xf32>
    %545 = arith.addf %543, %544 : vector<2x32xf32>
    %546 = arith.negf %545 : vector<2x32xf32>
    %547 = math.exp %546 : vector<2x32xf32>
    %cst_139 = arith.constant 1.000000e+00 : f32
    %548 = vector.broadcast %cst_139 : f32 to vector<2x32xf32>
    %549 = arith.addf %548, %547 : vector<2x32xf32>
    %550 = arith.divf %548, %549 : vector<2x32xf32>
    %551 = vector.extract_strided_slice %503 {offsets = [0, 32], sizes = [2, 32], strides = [1, 1]} : vector<2x96xf32> to vector<2x32xf32>
    %552 = vector.extract_strided_slice %542 {offsets = [0, 32], sizes = [2, 32], strides = [1, 1]} : vector<2x96xf32> to vector<2x32xf32>
    %553 = arith.addf %551, %552 : vector<2x32xf32>
    %554 = arith.negf %553 : vector<2x32xf32>
    %555 = math.exp %554 : vector<2x32xf32>
    %cst_140 = arith.constant 1.000000e+00 : f32
    %556 = vector.broadcast %cst_140 : f32 to vector<2x32xf32>
    %557 = arith.addf %556, %555 : vector<2x32xf32>
    %558 = arith.divf %556, %557 : vector<2x32xf32>
    %559 = vector.extract_strided_slice %503 {offsets = [0, 64], sizes = [2, 32], strides = [1, 1]} : vector<2x96xf32> to vector<2x32xf32>
    %560 = vector.extract_strided_slice %542 {offsets = [0, 64], sizes = [2, 32], strides = [1, 1]} : vector<2x96xf32> to vector<2x32xf32>
    %561 = arith.mulf %550, %560 : vector<2x32xf32>
    %562 = arith.addf %559, %561 : vector<2x32xf32>
    %563 = math.tanh %562 : vector<2x32xf32>
    %cst_141 = arith.constant 1.000000e+00 : f32
    %564 = vector.broadcast %cst_141 : f32 to vector<2x32xf32>
    %565 = arith.subf %564, %558 : vector<2x32xf32>
    %566 = arith.mulf %565, %563 : vector<2x32xf32>
    %567 = arith.mulf %558, %539 : vector<2x32xf32>
    %568 = arith.addf %566, %567 : vector<2x32xf32>
    %569 = vector.extract_strided_slice %568 {offsets = [0, 0], sizes = [2, 16], strides = [1, 1]} : vector<2x32xf32> to vector<2x16xf32>
    %c0_142 = arith.constant 0 : index
    %c0_143 = arith.constant 0 : index
    %c0_144 = arith.constant 0 : index
    %570 = vector.load %arg8[%c0_142, %c0_143, %c0_144] : memref<2x8x32xf32, #tpu.memory_space<vmem>>, vector<2x1x16xf32>
    %571 = vector.shape_cast %570 : vector<2x1x16xf32> to vector<2x16xf32>
    %572 = vector.shape_cast %569 : vector<2x16xf32> to vector<2x1x16xf32>
    tpu.vector_store %arg8[%c0_142, %c0_143, %c0_144], %572 {strides = array<i32>} : memref<2x8x32xf32, #tpu.memory_space<vmem>>, vector<2x1x16xf32>,
    %573 = vector.extract_strided_slice %568 {offsets = [0, 16], sizes = [2, 16], strides = [1, 1]} : vector<2x32xf32> to vector<2x16xf32>
    %c0_145 = arith.constant 0 : index
    %c7_146 = arith.constant 7 : index
    %c16_147 = arith.constant 16 : index
    %574 = vector.load %arg8[%c0_145, %c7_146, %c16_147] : memref<2x8x32xf32, #tpu.memory_space<vmem>>, vector<2x1x16xf32>
    %575 = vector.shape_cast %574 : vector<2x1x16xf32> to vector<2x16xf32>
    %576 = vector.shape_cast %573 : vector<2x16xf32> to vector<2x1x16xf32>
    tpu.vector_store %arg8[%c0_145, %c7_146, %c16_147], %576 {strides = array<i32>} : memref<2x8x32xf32, #tpu.memory_space<vmem>>, vector<2x1x16xf32>,
    %cst_148 = arith.constant dense<0.000000e+00> : vector<2x96xf32>
    %577 = tpu.matmul %568, %492, %cst_148 {dimension_numbers = #tpu.dot_dimension_numbers<[1], [0], [0], [1], [0, 0, 1, 1], [], []>} : vector<2x32xf32>, vector<32x96xf32>, vector<2x96xf32> -> vector<2x96xf32>
    %578 = vector.broadcast %494 : vector<1x96xf32> to vector<2x96xf32>
    %579 = arith.addf %577, %578 : vector<2x96xf32>
    %580 = vector.extract_strided_slice %508 {offsets = [0, 0], sizes = [2, 32], strides = [1, 1]} : vector<2x96xf32> to vector<2x32xf32>
    %581 = vector.extract_strided_slice %579 {offsets = [0, 0], sizes = [2, 32], strides = [1, 1]} : vector<2x96xf32> to vector<2x32xf32>
    %582 = arith.addf %580, %581 : vector<2x32xf32>
    %583 = arith.negf %582 : vector<2x32xf32>
    %584 = math.exp %583 : vector<2x32xf32>
    %cst_149 = arith.constant 1.000000e+00 : f32
    %585 = vector.broadcast %cst_149 : f32 to vector<2x32xf32>
    %586 = arith.addf %585, %584 : vector<2x32xf32>
    %587 = arith.divf %585, %586 : vector<2x32xf32>
    %588 = vector.extract_strided_slice %508 {offsets = [0, 32], sizes = [2, 32], strides = [1, 1]} : vector<2x96xf32> to vector<2x32xf32>
    %589 = vector.extract_strided_slice %579 {offsets = [0, 32], sizes = [2, 32], strides = [1, 1]} : vector<2x96xf32> to vector<2x32xf32>
    %590 = arith.addf %588, %589 : vector<2x32xf32>
    %591 = arith.negf %590 : vector<2x32xf32>
    %592 = math.exp %591 : vector<2x32xf32>
    %cst_150 = arith.constant 1.000000e+00 : f32
    %593 = vector.broadcast %cst_150 : f32 to vector<2x32xf32>
    %594 = arith.addf %593, %592 : vector<2x32xf32>
    %595 = arith.divf %593, %594 : vector<2x32xf32>
    %596 = vector.extract_strided_slice %508 {offsets = [0, 64], sizes = [2, 32], strides = [1, 1]} : vector<2x96xf32> to vector<2x32xf32>
    %597 = vector.extract_strided_slice %579 {offsets = [0, 64], sizes = [2, 32], strides = [1, 1]} : vector<2x96xf32> to vector<2x32xf32>
    %598 = arith.mulf %587, %597 : vector<2x32xf32>
    %599 = arith.addf %596, %598 : vector<2x32xf32>
    %600 = math.tanh %599 : vector<2x32xf32>
    %cst_151 = arith.constant 1.000000e+00 : f32
    %601 = vector.broadcast %cst_151 : f32 to vector<2x32xf32>
    %602 = arith.subf %601, %595 : vector<2x32xf32>
    %603 = arith.mulf %602, %600 : vector<2x32xf32>
    %604 = arith.mulf %595, %568 : vector<2x32xf32>
    %605 = arith.addf %603, %604 : vector<2x32xf32>
    %606 = vector.extract_strided_slice %605 {offsets = [0, 0], sizes = [2, 16], strides = [1, 1]} : vector<2x32xf32> to vector<2x16xf32>
    %c0_152 = arith.constant 0 : index
    %c1_153 = arith.constant 1 : index
    %c0_154 = arith.constant 0 : index
    %607 = vector.load %arg8[%c0_152, %c1_153, %c0_154] : memref<2x8x32xf32, #tpu.memory_space<vmem>>, vector<2x1x16xf32>
    %608 = vector.shape_cast %607 : vector<2x1x16xf32> to vector<2x16xf32>
    %609 = vector.shape_cast %606 : vector<2x16xf32> to vector<2x1x16xf32>
    tpu.vector_store %arg8[%c0_152, %c1_153, %c0_154], %609 {strides = array<i32>} : memref<2x8x32xf32, #tpu.memory_space<vmem>>, vector<2x1x16xf32>,
    %610 = vector.extract_strided_slice %605 {offsets = [0, 16], sizes = [2, 16], strides = [1, 1]} : vector<2x32xf32> to vector<2x16xf32>
    %c0_155 = arith.constant 0 : index
    %c6_156 = arith.constant 6 : index
    %c16_157 = arith.constant 16 : index
    %611 = vector.load %arg8[%c0_155, %c6_156, %c16_157] : memref<2x8x32xf32, #tpu.memory_space<vmem>>, vector<2x1x16xf32>
    %612 = vector.shape_cast %611 : vector<2x1x16xf32> to vector<2x16xf32>
    %613 = vector.shape_cast %610 : vector<2x16xf32> to vector<2x1x16xf32>
    tpu.vector_store %arg8[%c0_155, %c6_156, %c16_157], %613 {strides = array<i32>} : memref<2x8x32xf32, #tpu.memory_space<vmem>>, vector<2x1x16xf32>,
    %cst_158 = arith.constant dense<0.000000e+00> : vector<2x96xf32>
    %614 = tpu.matmul %605, %492, %cst_158 {dimension_numbers = #tpu.dot_dimension_numbers<[1], [0], [0], [1], [0, 0, 1, 1], [], []>} : vector<2x32xf32>, vector<32x96xf32>, vector<2x96xf32> -> vector<2x96xf32>
    %615 = vector.broadcast %494 : vector<1x96xf32> to vector<2x96xf32>
    %616 = arith.addf %614, %615 : vector<2x96xf32>
    %617 = vector.extract_strided_slice %513 {offsets = [0, 0], sizes = [2, 32], strides = [1, 1]} : vector<2x96xf32> to vector<2x32xf32>
    %618 = vector.extract_strided_slice %616 {offsets = [0, 0], sizes = [2, 32], strides = [1, 1]} : vector<2x96xf32> to vector<2x32xf32>
    %619 = arith.addf %617, %618 : vector<2x32xf32>
    %620 = arith.negf %619 : vector<2x32xf32>
    %621 = math.exp %620 : vector<2x32xf32>
    %cst_159 = arith.constant 1.000000e+00 : f32
    %622 = vector.broadcast %cst_159 : f32 to vector<2x32xf32>
    %623 = arith.addf %622, %621 : vector<2x32xf32>
    %624 = arith.divf %622, %623 : vector<2x32xf32>
    %625 = vector.extract_strided_slice %513 {offsets = [0, 32], sizes = [2, 32], strides = [1, 1]} : vector<2x96xf32> to vector<2x32xf32>
    %626 = vector.extract_strided_slice %616 {offsets = [0, 32], sizes = [2, 32], strides = [1, 1]} : vector<2x96xf32> to vector<2x32xf32>
    %627 = arith.addf %625, %626 : vector<2x32xf32>
    %628 = arith.negf %627 : vector<2x32xf32>
    %629 = math.exp %628 : vector<2x32xf32>
    %cst_160 = arith.constant 1.000000e+00 : f32
    %630 = vector.broadcast %cst_160 : f32 to vector<2x32xf32>
    %631 = arith.addf %630, %629 : vector<2x32xf32>
    %632 = arith.divf %630, %631 : vector<2x32xf32>
    %633 = vector.extract_strided_slice %513 {offsets = [0, 64], sizes = [2, 32], strides = [1, 1]} : vector<2x96xf32> to vector<2x32xf32>
    %634 = vector.extract_strided_slice %616 {offsets = [0, 64], sizes = [2, 32], strides = [1, 1]} : vector<2x96xf32> to vector<2x32xf32>
    %635 = arith.mulf %624, %634 : vector<2x32xf32>
    %636 = arith.addf %633, %635 : vector<2x32xf32>
    %637 = math.tanh %636 : vector<2x32xf32>
    %cst_161 = arith.constant 1.000000e+00 : f32
    %638 = vector.broadcast %cst_161 : f32 to vector<2x32xf32>
    %639 = arith.subf %638, %632 : vector<2x32xf32>
    %640 = arith.mulf %639, %637 : vector<2x32xf32>
    %641 = arith.mulf %632, %605 : vector<2x32xf32>
    %642 = arith.addf %640, %641 : vector<2x32xf32>
    %643 = vector.extract_strided_slice %642 {offsets = [0, 0], sizes = [2, 16], strides = [1, 1]} : vector<2x32xf32> to vector<2x16xf32>
    %c0_162 = arith.constant 0 : index
    %c2_163 = arith.constant 2 : index
    %c0_164 = arith.constant 0 : index
    %644 = vector.load %arg8[%c0_162, %c2_163, %c0_164] : memref<2x8x32xf32, #tpu.memory_space<vmem>>, vector<2x1x16xf32>
    %645 = vector.shape_cast %644 : vector<2x1x16xf32> to vector<2x16xf32>
    %646 = vector.shape_cast %643 : vector<2x16xf32> to vector<2x1x16xf32>
    tpu.vector_store %arg8[%c0_162, %c2_163, %c0_164], %646 {strides = array<i32>} : memref<2x8x32xf32, #tpu.memory_space<vmem>>, vector<2x1x16xf32>,
    %647 = vector.extract_strided_slice %642 {offsets = [0, 16], sizes = [2, 16], strides = [1, 1]} : vector<2x32xf32> to vector<2x16xf32>
    %c0_165 = arith.constant 0 : index
    %c5_166 = arith.constant 5 : index
    %c16_167 = arith.constant 16 : index
    %648 = vector.load %arg8[%c0_165, %c5_166, %c16_167] : memref<2x8x32xf32, #tpu.memory_space<vmem>>, vector<2x1x16xf32>
    %649 = vector.shape_cast %648 : vector<2x1x16xf32> to vector<2x16xf32>
    %650 = vector.shape_cast %647 : vector<2x16xf32> to vector<2x1x16xf32>
    tpu.vector_store %arg8[%c0_165, %c5_166, %c16_167], %650 {strides = array<i32>} : memref<2x8x32xf32, #tpu.memory_space<vmem>>, vector<2x1x16xf32>,
    %cst_168 = arith.constant dense<0.000000e+00> : vector<2x96xf32>
    %651 = tpu.matmul %642, %492, %cst_168 {dimension_numbers = #tpu.dot_dimension_numbers<[1], [0], [0], [1], [0, 0, 1, 1], [], []>} : vector<2x32xf32>, vector<32x96xf32>, vector<2x96xf32> -> vector<2x96xf32>
    %652 = vector.broadcast %494 : vector<1x96xf32> to vector<2x96xf32>
    %653 = arith.addf %651, %652 : vector<2x96xf32>
    %654 = vector.extract_strided_slice %518 {offsets = [0, 0], sizes = [2, 32], strides = [1, 1]} : vector<2x96xf32> to vector<2x32xf32>
    %655 = vector.extract_strided_slice %653 {offsets = [0, 0], sizes = [2, 32], strides = [1, 1]} : vector<2x96xf32> to vector<2x32xf32>
    %656 = arith.addf %654, %655 : vector<2x32xf32>
    %657 = arith.negf %656 : vector<2x32xf32>
    %658 = math.exp %657 : vector<2x32xf32>
    %cst_169 = arith.constant 1.000000e+00 : f32
    %659 = vector.broadcast %cst_169 : f32 to vector<2x32xf32>
    %660 = arith.addf %659, %658 : vector<2x32xf32>
    %661 = arith.divf %659, %660 : vector<2x32xf32>
    %662 = vector.extract_strided_slice %518 {offsets = [0, 32], sizes = [2, 32], strides = [1, 1]} : vector<2x96xf32> to vector<2x32xf32>
    %663 = vector.extract_strided_slice %653 {offsets = [0, 32], sizes = [2, 32], strides = [1, 1]} : vector<2x96xf32> to vector<2x32xf32>
    %664 = arith.addf %662, %663 : vector<2x32xf32>
    %665 = arith.negf %664 : vector<2x32xf32>
    %666 = math.exp %665 : vector<2x32xf32>
    %cst_170 = arith.constant 1.000000e+00 : f32
    %667 = vector.broadcast %cst_170 : f32 to vector<2x32xf32>
    %668 = arith.addf %667, %666 : vector<2x32xf32>
    %669 = arith.divf %667, %668 : vector<2x32xf32>
    %670 = vector.extract_strided_slice %518 {offsets = [0, 64], sizes = [2, 32], strides = [1, 1]} : vector<2x96xf32> to vector<2x32xf32>
    %671 = vector.extract_strided_slice %653 {offsets = [0, 64], sizes = [2, 32], strides = [1, 1]} : vector<2x96xf32> to vector<2x32xf32>
    %672 = arith.mulf %661, %671 : vector<2x32xf32>
    %673 = arith.addf %670, %672 : vector<2x32xf32>
    %674 = math.tanh %673 : vector<2x32xf32>
    %cst_171 = arith.constant 1.000000e+00 : f32
    %675 = vector.broadcast %cst_171 : f32 to vector<2x32xf32>
    %676 = arith.subf %675, %669 : vector<2x32xf32>
    %677 = arith.mulf %676, %674 : vector<2x32xf32>
    %678 = arith.mulf %669, %642 : vector<2x32xf32>
    %679 = arith.addf %677, %678 : vector<2x32xf32>
    %680 = vector.extract_strided_slice %679 {offsets = [0, 0], sizes = [2, 16], strides = [1, 1]} : vector<2x32xf32> to vector<2x16xf32>
    %c0_172 = arith.constant 0 : index
    %c3_173 = arith.constant 3 : index
    %c0_174 = arith.constant 0 : index
    %681 = vector.load %arg8[%c0_172, %c3_173, %c0_174] : memref<2x8x32xf32, #tpu.memory_space<vmem>>, vector<2x1x16xf32>
    %682 = vector.shape_cast %681 : vector<2x1x16xf32> to vector<2x16xf32>
    %683 = vector.shape_cast %680 : vector<2x16xf32> to vector<2x1x16xf32>
    tpu.vector_store %arg8[%c0_172, %c3_173, %c0_174], %683 {strides = array<i32>} : memref<2x8x32xf32, #tpu.memory_space<vmem>>, vector<2x1x16xf32>,
    %684 = vector.extract_strided_slice %679 {offsets = [0, 16], sizes = [2, 16], strides = [1, 1]} : vector<2x32xf32> to vector<2x16xf32>
    %c0_175 = arith.constant 0 : index
    %c4_176 = arith.constant 4 : index
    %c16_177 = arith.constant 16 : index
    %685 = vector.load %arg8[%c0_175, %c4_176, %c16_177] : memref<2x8x32xf32, #tpu.memory_space<vmem>>, vector<2x1x16xf32>
    %686 = vector.shape_cast %685 : vector<2x1x16xf32> to vector<2x16xf32>
    %687 = vector.shape_cast %684 : vector<2x16xf32> to vector<2x1x16xf32>
    tpu.vector_store %arg8[%c0_175, %c4_176, %c16_177], %687 {strides = array<i32>} : memref<2x8x32xf32, #tpu.memory_space<vmem>>, vector<2x1x16xf32>,
    %cst_178 = arith.constant dense<0.000000e+00> : vector<2x96xf32>
    %688 = tpu.matmul %679, %492, %cst_178 {dimension_numbers = #tpu.dot_dimension_numbers<[1], [0], [0], [1], [0, 0, 1, 1], [], []>} : vector<2x32xf32>, vector<32x96xf32>, vector<2x96xf32> -> vector<2x96xf32>
    %689 = vector.broadcast %494 : vector<1x96xf32> to vector<2x96xf32>
    %690 = arith.addf %688, %689 : vector<2x96xf32>
    %691 = vector.extract_strided_slice %523 {offsets = [0, 0], sizes = [2, 32], strides = [1, 1]} : vector<2x96xf32> to vector<2x32xf32>
    %692 = vector.extract_strided_slice %690 {offsets = [0, 0], sizes = [2, 32], strides = [1, 1]} : vector<2x96xf32> to vector<2x32xf32>
    %693 = arith.addf %691, %692 : vector<2x32xf32>
    %694 = arith.negf %693 : vector<2x32xf32>
    %695 = math.exp %694 : vector<2x32xf32>
    %cst_179 = arith.constant 1.000000e+00 : f32
    %696 = vector.broadcast %cst_179 : f32 to vector<2x32xf32>
    %697 = arith.addf %696, %695 : vector<2x32xf32>
    %698 = arith.divf %696, %697 : vector<2x32xf32>
    %699 = vector.extract_strided_slice %523 {offsets = [0, 32], sizes = [2, 32], strides = [1, 1]} : vector<2x96xf32> to vector<2x32xf32>
    %700 = vector.extract_strided_slice %690 {offsets = [0, 32], sizes = [2, 32], strides = [1, 1]} : vector<2x96xf32> to vector<2x32xf32>
    %701 = arith.addf %699, %700 : vector<2x32xf32>
    %702 = arith.negf %701 : vector<2x32xf32>
    %703 = math.exp %702 : vector<2x32xf32>
    %cst_180 = arith.constant 1.000000e+00 : f32
    %704 = vector.broadcast %cst_180 : f32 to vector<2x32xf32>
    %705 = arith.addf %704, %703 : vector<2x32xf32>
    %706 = arith.divf %704, %705 : vector<2x32xf32>
    %707 = vector.extract_strided_slice %523 {offsets = [0, 64], sizes = [2, 32], strides = [1, 1]} : vector<2x96xf32> to vector<2x32xf32>
    %708 = vector.extract_strided_slice %690 {offsets = [0, 64], sizes = [2, 32], strides = [1, 1]} : vector<2x96xf32> to vector<2x32xf32>
    %709 = arith.mulf %698, %708 : vector<2x32xf32>
    %710 = arith.addf %707, %709 : vector<2x32xf32>
    %711 = math.tanh %710 : vector<2x32xf32>
    %cst_181 = arith.constant 1.000000e+00 : f32
    %712 = vector.broadcast %cst_181 : f32 to vector<2x32xf32>
    %713 = arith.subf %712, %706 : vector<2x32xf32>
    %714 = arith.mulf %713, %711 : vector<2x32xf32>
    %715 = arith.mulf %706, %679 : vector<2x32xf32>
    %716 = arith.addf %714, %715 : vector<2x32xf32>
    %717 = vector.extract_strided_slice %716 {offsets = [0, 0], sizes = [2, 16], strides = [1, 1]} : vector<2x32xf32> to vector<2x16xf32>
    %c0_182 = arith.constant 0 : index
    %c4_183 = arith.constant 4 : index
    %c0_184 = arith.constant 0 : index
    %718 = vector.load %arg8[%c0_182, %c4_183, %c0_184] : memref<2x8x32xf32, #tpu.memory_space<vmem>>, vector<2x1x16xf32>
    %719 = vector.shape_cast %718 : vector<2x1x16xf32> to vector<2x16xf32>
    %720 = vector.shape_cast %717 : vector<2x16xf32> to vector<2x1x16xf32>
    tpu.vector_store %arg8[%c0_182, %c4_183, %c0_184], %720 {strides = array<i32>} : memref<2x8x32xf32, #tpu.memory_space<vmem>>, vector<2x1x16xf32>,
    %721 = vector.extract_strided_slice %716 {offsets = [0, 16], sizes = [2, 16], strides = [1, 1]} : vector<2x32xf32> to vector<2x16xf32>
    %c0_185 = arith.constant 0 : index
    %c3_186 = arith.constant 3 : index
    %c16_187 = arith.constant 16 : index
    %722 = vector.load %arg8[%c0_185, %c3_186, %c16_187] : memref<2x8x32xf32, #tpu.memory_space<vmem>>, vector<2x1x16xf32>
    %723 = vector.shape_cast %722 : vector<2x1x16xf32> to vector<2x16xf32>
    %724 = vector.shape_cast %721 : vector<2x16xf32> to vector<2x1x16xf32>
    tpu.vector_store %arg8[%c0_185, %c3_186, %c16_187], %724 {strides = array<i32>} : memref<2x8x32xf32, #tpu.memory_space<vmem>>, vector<2x1x16xf32>,
    %cst_188 = arith.constant dense<0.000000e+00> : vector<2x96xf32>
    %725 = tpu.matmul %716, %492, %cst_188 {dimension_numbers = #tpu.dot_dimension_numbers<[1], [0], [0], [1], [0, 0, 1, 1], [], []>} : vector<2x32xf32>, vector<32x96xf32>, vector<2x96xf32> -> vector<2x96xf32>
    %726 = vector.broadcast %494 : vector<1x96xf32> to vector<2x96xf32>
    %727 = arith.addf %725, %726 : vector<2x96xf32>
    %728 = vector.extract_strided_slice %528 {offsets = [0, 0], sizes = [2, 32], strides = [1, 1]} : vector<2x96xf32> to vector<2x32xf32>
    %729 = vector.extract_strided_slice %727 {offsets = [0, 0], sizes = [2, 32], strides = [1, 1]} : vector<2x96xf32> to vector<2x32xf32>
    %730 = arith.addf %728, %729 : vector<2x32xf32>
    %731 = arith.negf %730 : vector<2x32xf32>
    %732 = math.exp %731 : vector<2x32xf32>
    %cst_189 = arith.constant 1.000000e+00 : f32
    %733 = vector.broadcast %cst_189 : f32 to vector<2x32xf32>
    %734 = arith.addf %733, %732 : vector<2x32xf32>
    %735 = arith.divf %733, %734 : vector<2x32xf32>
    %736 = vector.extract_strided_slice %528 {offsets = [0, 32], sizes = [2, 32], strides = [1, 1]} : vector<2x96xf32> to vector<2x32xf32>
    %737 = vector.extract_strided_slice %727 {offsets = [0, 32], sizes = [2, 32], strides = [1, 1]} : vector<2x96xf32> to vector<2x32xf32>
    %738 = arith.addf %736, %737 : vector<2x32xf32>
    %739 = arith.negf %738 : vector<2x32xf32>
    %740 = math.exp %739 : vector<2x32xf32>
    %cst_190 = arith.constant 1.000000e+00 : f32
    %741 = vector.broadcast %cst_190 : f32 to vector<2x32xf32>
    %742 = arith.addf %741, %740 : vector<2x32xf32>
    %743 = arith.divf %741, %742 : vector<2x32xf32>
    %744 = vector.extract_strided_slice %528 {offsets = [0, 64], sizes = [2, 32], strides = [1, 1]} : vector<2x96xf32> to vector<2x32xf32>
    %745 = vector.extract_strided_slice %727 {offsets = [0, 64], sizes = [2, 32], strides = [1, 1]} : vector<2x96xf32> to vector<2x32xf32>
    %746 = arith.mulf %735, %745 : vector<2x32xf32>
    %747 = arith.addf %744, %746 : vector<2x32xf32>
    %748 = math.tanh %747 : vector<2x32xf32>
    %cst_191 = arith.constant 1.000000e+00 : f32
    %749 = vector.broadcast %cst_191 : f32 to vector<2x32xf32>
    %750 = arith.subf %749, %743 : vector<2x32xf32>
    %751 = arith.mulf %750, %748 : vector<2x32xf32>
    %752 = arith.mulf %743, %716 : vector<2x32xf32>
    %753 = arith.addf %751, %752 : vector<2x32xf32>
    %754 = vector.extract_strided_slice %753 {offsets = [0, 0], sizes = [2, 16], strides = [1, 1]} : vector<2x32xf32> to vector<2x16xf32>
    %c0_192 = arith.constant 0 : index
    %c5_193 = arith.constant 5 : index
    %c0_194 = arith.constant 0 : index
    %755 = vector.load %arg8[%c0_192, %c5_193, %c0_194] : memref<2x8x32xf32, #tpu.memory_space<vmem>>, vector<2x1x16xf32>
    %756 = vector.shape_cast %755 : vector<2x1x16xf32> to vector<2x16xf32>
    %757 = vector.shape_cast %754 : vector<2x16xf32> to vector<2x1x16xf32>
    tpu.vector_store %arg8[%c0_192, %c5_193, %c0_194], %757 {strides = array<i32>} : memref<2x8x32xf32, #tpu.memory_space<vmem>>, vector<2x1x16xf32>,
    %758 = vector.extract_strided_slice %753 {offsets = [0, 16], sizes = [2, 16], strides = [1, 1]} : vector<2x32xf32> to vector<2x16xf32>
    %c0_195 = arith.constant 0 : index
    %c2_196 = arith.constant 2 : index
    %c16_197 = arith.constant 16 : index
    %759 = vector.load %arg8[%c0_195, %c2_196, %c16_197] : memref<2x8x32xf32, #tpu.memory_space<vmem>>, vector<2x1x16xf32>
    %760 = vector.shape_cast %759 : vector<2x1x16xf32> to vector<2x16xf32>
    %761 = vector.shape_cast %758 : vector<2x16xf32> to vector<2x1x16xf32>
    tpu.vector_store %arg8[%c0_195, %c2_196, %c16_197], %761 {strides = array<i32>} : memref<2x8x32xf32, #tpu.memory_space<vmem>>, vector<2x1x16xf32>,
    %cst_198 = arith.constant dense<0.000000e+00> : vector<2x96xf32>
    %762 = tpu.matmul %753, %492, %cst_198 {dimension_numbers = #tpu.dot_dimension_numbers<[1], [0], [0], [1], [0, 0, 1, 1], [], []>} : vector<2x32xf32>, vector<32x96xf32>, vector<2x96xf32> -> vector<2x96xf32>
    %763 = vector.broadcast %494 : vector<1x96xf32> to vector<2x96xf32>
    %764 = arith.addf %762, %763 : vector<2x96xf32>
    %765 = vector.extract_strided_slice %533 {offsets = [0, 0], sizes = [2, 32], strides = [1, 1]} : vector<2x96xf32> to vector<2x32xf32>
    %766 = vector.extract_strided_slice %764 {offsets = [0, 0], sizes = [2, 32], strides = [1, 1]} : vector<2x96xf32> to vector<2x32xf32>
    %767 = arith.addf %765, %766 : vector<2x32xf32>
    %768 = arith.negf %767 : vector<2x32xf32>
    %769 = math.exp %768 : vector<2x32xf32>
    %cst_199 = arith.constant 1.000000e+00 : f32
    %770 = vector.broadcast %cst_199 : f32 to vector<2x32xf32>
    %771 = arith.addf %770, %769 : vector<2x32xf32>
    %772 = arith.divf %770, %771 : vector<2x32xf32>
    %773 = vector.extract_strided_slice %533 {offsets = [0, 32], sizes = [2, 32], strides = [1, 1]} : vector<2x96xf32> to vector<2x32xf32>
    %774 = vector.extract_strided_slice %764 {offsets = [0, 32], sizes = [2, 32], strides = [1, 1]} : vector<2x96xf32> to vector<2x32xf32>
    %775 = arith.addf %773, %774 : vector<2x32xf32>
    %776 = arith.negf %775 : vector<2x32xf32>
    %777 = math.exp %776 : vector<2x32xf32>
    %cst_200 = arith.constant 1.000000e+00 : f32
    %778 = vector.broadcast %cst_200 : f32 to vector<2x32xf32>
    %779 = arith.addf %778, %777 : vector<2x32xf32>
    %780 = arith.divf %778, %779 : vector<2x32xf32>
    %781 = vector.extract_strided_slice %533 {offsets = [0, 64], sizes = [2, 32], strides = [1, 1]} : vector<2x96xf32> to vector<2x32xf32>
    %782 = vector.extract_strided_slice %764 {offsets = [0, 64], sizes = [2, 32], strides = [1, 1]} : vector<2x96xf32> to vector<2x32xf32>
    %783 = arith.mulf %772, %782 : vector<2x32xf32>
    %784 = arith.addf %781, %783 : vector<2x32xf32>
    %785 = math.tanh %784 : vector<2x32xf32>
    %cst_201 = arith.constant 1.000000e+00 : f32
    %786 = vector.broadcast %cst_201 : f32 to vector<2x32xf32>
    %787 = arith.subf %786, %780 : vector<2x32xf32>
    %788 = arith.mulf %787, %785 : vector<2x32xf32>
    %789 = arith.mulf %780, %753 : vector<2x32xf32>
    %790 = arith.addf %788, %789 : vector<2x32xf32>
    %791 = vector.extract_strided_slice %790 {offsets = [0, 0], sizes = [2, 16], strides = [1, 1]} : vector<2x32xf32> to vector<2x16xf32>
    %c0_202 = arith.constant 0 : index
    %c6_203 = arith.constant 6 : index
    %c0_204 = arith.constant 0 : index
    %792 = vector.load %arg8[%c0_202, %c6_203, %c0_204] : memref<2x8x32xf32, #tpu.memory_space<vmem>>, vector<2x1x16xf32>
    %793 = vector.shape_cast %792 : vector<2x1x16xf32> to vector<2x16xf32>
    %794 = vector.shape_cast %791 : vector<2x16xf32> to vector<2x1x16xf32>
    tpu.vector_store %arg8[%c0_202, %c6_203, %c0_204], %794 {strides = array<i32>} : memref<2x8x32xf32, #tpu.memory_space<vmem>>, vector<2x1x16xf32>,
    %795 = vector.extract_strided_slice %790 {offsets = [0, 16], sizes = [2, 16], strides = [1, 1]} : vector<2x32xf32> to vector<2x16xf32>
    %c0_205 = arith.constant 0 : index
    %c1_206 = arith.constant 1 : index
    %c16_207 = arith.constant 16 : index
    %796 = vector.load %arg8[%c0_205, %c1_206, %c16_207] : memref<2x8x32xf32, #tpu.memory_space<vmem>>, vector<2x1x16xf32>
    %797 = vector.shape_cast %796 : vector<2x1x16xf32> to vector<2x16xf32>
    %798 = vector.shape_cast %795 : vector<2x16xf32> to vector<2x1x16xf32>
    tpu.vector_store %arg8[%c0_205, %c1_206, %c16_207], %798 {strides = array<i32>} : memref<2x8x32xf32, #tpu.memory_space<vmem>>, vector<2x1x16xf32>,
    %cst_208 = arith.constant dense<0.000000e+00> : vector<2x96xf32>
    %799 = tpu.matmul %790, %492, %cst_208 {dimension_numbers = #tpu.dot_dimension_numbers<[1], [0], [0], [1], [0, 0, 1, 1], [], []>} : vector<2x32xf32>, vector<32x96xf32>, vector<2x96xf32> -> vector<2x96xf32>
    %800 = vector.broadcast %494 : vector<1x96xf32> to vector<2x96xf32>
    %801 = arith.addf %799, %800 : vector<2x96xf32>
    %802 = vector.extract_strided_slice %538 {offsets = [0, 0], sizes = [2, 32], strides = [1, 1]} : vector<2x96xf32> to vector<2x32xf32>
    %803 = vector.extract_strided_slice %801 {offsets = [0, 0], sizes = [2, 32], strides = [1, 1]} : vector<2x96xf32> to vector<2x32xf32>
    %804 = arith.addf %802, %803 : vector<2x32xf32>
    %805 = arith.negf %804 : vector<2x32xf32>
    %806 = math.exp %805 : vector<2x32xf32>
    %cst_209 = arith.constant 1.000000e+00 : f32
    %807 = vector.broadcast %cst_209 : f32 to vector<2x32xf32>
    %808 = arith.addf %807, %806 : vector<2x32xf32>
    %809 = arith.divf %807, %808 : vector<2x32xf32>
    %810 = vector.extract_strided_slice %538 {offsets = [0, 32], sizes = [2, 32], strides = [1, 1]} : vector<2x96xf32> to vector<2x32xf32>
    %811 = vector.extract_strided_slice %801 {offsets = [0, 32], sizes = [2, 32], strides = [1, 1]} : vector<2x96xf32> to vector<2x32xf32>
    %812 = arith.addf %810, %811 : vector<2x32xf32>
    %813 = arith.negf %812 : vector<2x32xf32>
    %814 = math.exp %813 : vector<2x32xf32>
    %cst_210 = arith.constant 1.000000e+00 : f32
    %815 = vector.broadcast %cst_210 : f32 to vector<2x32xf32>
    %816 = arith.addf %815, %814 : vector<2x32xf32>
    %817 = arith.divf %815, %816 : vector<2x32xf32>
    %818 = vector.extract_strided_slice %538 {offsets = [0, 64], sizes = [2, 32], strides = [1, 1]} : vector<2x96xf32> to vector<2x32xf32>
    %819 = vector.extract_strided_slice %801 {offsets = [0, 64], sizes = [2, 32], strides = [1, 1]} : vector<2x96xf32> to vector<2x32xf32>
    %820 = arith.mulf %809, %819 : vector<2x32xf32>
    %821 = arith.addf %818, %820 : vector<2x32xf32>
    %822 = math.tanh %821 : vector<2x32xf32>
    %cst_211 = arith.constant 1.000000e+00 : f32
    %823 = vector.broadcast %cst_211 : f32 to vector<2x32xf32>
    %824 = arith.subf %823, %817 : vector<2x32xf32>
    %825 = arith.mulf %824, %822 : vector<2x32xf32>
    %826 = arith.mulf %817, %790 : vector<2x32xf32>
    %827 = arith.addf %825, %826 : vector<2x32xf32>
    %828 = vector.extract_strided_slice %827 {offsets = [0, 0], sizes = [2, 16], strides = [1, 1]} : vector<2x32xf32> to vector<2x16xf32>
    %c0_212 = arith.constant 0 : index
    %c7_213 = arith.constant 7 : index
    %c0_214 = arith.constant 0 : index
    %829 = vector.load %arg8[%c0_212, %c7_213, %c0_214] : memref<2x8x32xf32, #tpu.memory_space<vmem>>, vector<2x1x16xf32>
    %830 = vector.shape_cast %829 : vector<2x1x16xf32> to vector<2x16xf32>
    %831 = vector.shape_cast %828 : vector<2x16xf32> to vector<2x1x16xf32>
    tpu.vector_store %arg8[%c0_212, %c7_213, %c0_214], %831 {strides = array<i32>} : memref<2x8x32xf32, #tpu.memory_space<vmem>>, vector<2x1x16xf32>,
    %832 = vector.extract_strided_slice %827 {offsets = [0, 16], sizes = [2, 16], strides = [1, 1]} : vector<2x32xf32> to vector<2x16xf32>
    %c0_215 = arith.constant 0 : index
    %c0_216 = arith.constant 0 : index
    %c16_217 = arith.constant 16 : index
    %833 = vector.load %arg8[%c0_215, %c0_216, %c16_217] : memref<2x8x32xf32, #tpu.memory_space<vmem>>, vector<2x1x16xf32>
    %834 = vector.shape_cast %833 : vector<2x1x16xf32> to vector<2x16xf32>
    %835 = vector.shape_cast %832 : vector<2x16xf32> to vector<2x1x16xf32>
    tpu.vector_store %arg8[%c0_215, %c0_216, %c16_217], %835 {strides = array<i32>} : memref<2x8x32xf32, #tpu.memory_space<vmem>>, vector<2x1x16xf32>,
    %c0_218 = arith.constant 0 : index
    %c0_219 = arith.constant 0 : index
    %c0_220 = arith.constant 0 : index
    %836 = vector.load %arg8[%c0_218, %c0_219, %c0_220] : memref<2x8x32xf32, #tpu.memory_space<vmem>>, vector<2x8x32xf32>
    %837 = vector.shape_cast %836 : vector<2x8x32xf32> to vector<16x32xf32>
    %c0_221 = arith.constant 0 : index
    %c0_222 = arith.constant 0 : index
    %838 = vector.load %arg5[%c0_221, %c0_222] : memref<33x256xf32, #tpu.memory_space<vmem>>, vector<32x256xf32>
    %cst_223 = arith.constant dense<0.000000e+00> : vector<16x256xf32>
    %839 = tpu.matmul %837, %838, %cst_223 {dimension_numbers = #tpu.dot_dimension_numbers<[1], [0], [0], [1], [0, 0, 1, 1], [], []>} : vector<16x32xf32>, vector<32x256xf32>, vector<16x256xf32> -> vector<16x256xf32>
    %c32_224 = arith.constant 32 : index
    %c0_225 = arith.constant 0 : index
    %840 = vector.load %arg5[%c32_224, %c0_225] : memref<33x256xf32, #tpu.memory_space<vmem>>, vector<1x256xf32>
    %841 = vector.broadcast %840 : vector<1x256xf32> to vector<16x256xf32>
    %842 = arith.addf %839, %841 : vector<16x256xf32>
    %843 = arith.negf %842 : vector<16x256xf32>
    %844 = math.exp %843 : vector<16x256xf32>
    %cst_226 = arith.constant 1.000000e+00 : f32
    %845 = vector.broadcast %cst_226 : f32 to vector<16x256xf32>
    %846 = arith.addf %845, %844 : vector<16x256xf32>
    %847 = arith.divf %845, %846 : vector<16x256xf32>
    %c0_227 = arith.constant 0 : index
    %c0_228 = arith.constant 0 : index
    %848 = vector.load %arg6[%c0_227, %c0_228] : memref<16x256xf32, #tpu.memory_space<vmem>>, vector<16x256xf32>
    tpu.vector_store %arg6[%c0_227, %c0_228], %847 {strides = array<i32>} : memref<16x256xf32, #tpu.memory_space<vmem>>, vector<16x256xf32>,
    return
  }
}

</mosaic_0001>

<bundles_post_ra>
// kernel: semcodec_midi_decoder_forward.1
= control target key start
LH: loop header
LB: loop body
LE: loop exit
PB: predicated region body
PF: predicated region fallthrough
CT: control target
= control target key end

     0   :  { %11 = vsyncpa [#allocation5], 0  ;;  %s5442_s0 = inlined_call_operand.vmem [shape: f32[16,16], index: 0, kind: input, shape index: {}]   ;;  %s5443_s1 = inlined_call_operand.hbm [shape: f32[3,16,32], index: 1, kind: input, shape index: {}]   ;;  %s5444_s2 = inlined_call_operand.vmem [shape: f32[6,32,32], index: 2, kind: input, shape index: {}]   ;;  %s5445_s3 = inlined_call_operand.vmem [shape: f32[10,96], index: 3, kind: input, shape index: {}]   ;;  %s5446_s4 = inlined_call_operand.vmem [shape: f32[128,96], index: 4, kind: input, shape index: {}]   ;;  %s5447_s5 = inlined_call_operand.hbm [shape: f32[33,256], index: 5, kind: input, shape index: {}]   ;;  %s5448_s6 = inlined_call_operand.vmem [shape: f32[16,256], index: 6, kind: output, shape index: {}]  }
   0x1   :  { %12 = vsyncpa [#allocation7], 0  ;;  %s4560_s21 = smov [#allocation4]   ;;  %s4512_s25 = scalar_lea.hbm %s5443_s1, 768 }
   0x2   :  { %s20_s22 = sshll.u32 %s4560_s21, 4  ;;  %p4513_p0 = scmp.ne.s32.totalorder %s5443_s1, %s4512_s25  ;;  %s21_s22 = int_to_ptr.vmem [resolvable:$true] %s20_s22 }
   0x3   :  { %p4516_p1 = scmp.lt.u32.totalorder %s4512_s25, %s5443_s1 }
   0x5   :  { %p4518_p2 = pnand %p4516_p1, %p4513_p0 }
   0x7   :  { %4521 = shalt.err (!%p4518_p2)
}
   0x8   :  { %s4522_s30 = scalar_lea.vmem %s21_s22, 768  ;;  %p4527_p4 = scmp.lt.s32.totalorder %s21_s22, %s21_s22 }
   0x9   :  { %p4523_p3 = scmp.ne.s32.totalorder %s21_s22, %s4522_s30  ;;  %p4528_p5 = scmp.lt.s32.totalorder %s4522_s30, %s4522_s30 }
   0xb   :  { %p4529_p6 = por %p4528_p5, %p4527_p4 }
   0xd   :  { %p4530_p7 = pnand %p4529_p6, %p4523_p3 }
   0xf   :  { %4533 = shalt.err (!%p4530_p7)
}
  0x10   :  { %s4561_s7 = smov 128   ;;  %s4562_s8 = smov 8  }
  0x11   :  { %26 = dma.hbm_to_vmem [thread:$0]  %s5443_s1, 768, %s21_s22, [#allocation5], %s4561_s7, %s4561_s7, %s4562_s8  }
  0x12   :  { %s4563_s11 = smov [#allocation6]   ;;  %s4534_s15 = scalar_lea.hbm %s5447_s5, 1280 }
  0x13   :  { %s38_s12 = sshll.u32 %s4563_s11, 4  ;;  %p4535_p8 = scmp.ne.s32.totalorder %s5447_s5, %s4534_s15  ;;  %s39_s12 = int_to_ptr.vmem [resolvable:$true] %s38_s12 }
  0x14   :  { %p4538_p9 = scmp.lt.u32.totalorder %s4534_s15, %s5447_s5 }
  0x16   :  { %p4540_p10 = pnand %p4538_p9, %p4535_p8 }
  0x18   :  { %4543 = shalt.err (!%p4540_p10)
}
  0x19   :  { %s4544_s20 = scalar_lea.vmem %s39_s12, 1280  ;;  %p4549_p12 = scmp.lt.s32.totalorder %s39_s12, %s39_s12 }
  0x1a   :  { %p4545_p11 = scmp.ne.s32.totalorder %s39_s12, %s4544_s20  ;;  %p4550_p13 = scmp.lt.s32.totalorder %s4544_s20, %s4544_s20 }
  0x1c   :  { %p4551_p0 = por %p4550_p13, %p4549_p12 }
  0x1e   :  { %p4552_p1 = pnand %p4551_p0, %p4545_p11 }
  0x20   :  { %4555 = shalt.err (!%p4552_p1)
}
  0x21   :  { %s4564_s1 = smov 256   ;;  %s4565_s21 = smov 16  }
  0x22   :  { %44 = dma.hbm_to_vmem [thread:$0]  %s5447_s5, 1280, %s39_s12, [#allocation7], %s4564_s1, %s4564_s1, %s4565_s21  }
  0x23   :  { %4556 = dma.done.wait [#allocation5], 768  }
  0x24   :  { %4557 = vsyncadd [#allocation5], 4294966528 }
  0x25   :  { %4558 = dma.done.wait [#allocation7], 1280  }
  0x26   :  { %4559 = vsyncadd [#allocation7], 4294966016  ;;  %v51_v0 = vlaneseq  ;;  %vm104_vm1 = vcmask 1040384   ;;  %v94_v4 = vld [vmem:[#allocation4] sm:$0xff]  ;;  %v95_v5 = vld [vmem:[#allocation4 + $0x8] sm:$0xff]  ;;  %v4566_v6 = vmov 0.0  }
  0x27   :  { %v92_v9 = vld [vmem:[%s5442_s0] sm:$0xff]  ;;  %vm122_vm3 = vcmask 130048   ;;  %v4188_v10 = vpack.c.bf16 %v95_v5, %v94_v4  ;;  %v93_v14 = vld [vmem:[%s5442_s0 + $0x8] sm:$0xff]  ;;  %v97_v18 = vld [vmem:[#allocation4 + $0x10] sm:$0xff]  ;;  %vm113_vm4 = vcmask 1046528   ;;  %vm422_vm7 = vcmask 261120  }
  0x28   :  { %v4632_v1 = vshrl.u32 %v51_v0, 7  ;;  %v105_v11 = vrot.slane %v92_v9, 7  ;;  %v114_v12 = vrot.slane %v92_v9, 1  ;;  %v100_v15 = vld [vmem:[#allocation4 + $0x20] sm:$0xff]  ;;  %3903 = vmatprep.mubr.msk.f32.mxu1 %vm122_vm3, %v92_v9  ;;  %v106_v16 = vrot.slane %v93_v14, 7  ;;  %v101_v17 = vld [vmem:[#allocation4 + $0x28] sm:$0xff] }
  0x29   :  { %v115_v19 = vrot.slane %v93_v14, 1  ;;  %4189 = vmatprep.subr.bf16.mxu0 %v4188_v10  ;;  %v4192_v21 = vpack.c.bf16 %v101_v17, %v100_v15  ;;  %v98_v22 = vld [vmem:[#allocation4 + $0x18] sm:$0xff]  ;;  %v3683_v34 = vld [vmem:[%s5444_s2 + $0x20] sm:$0xff]  ;;  %v3684_v35 = vld [vmem:[%s5444_s2 + $0x28] sm:$0xff]  ;;  %vm4568_vm12 = vmmov 0   ;;  %s4569_s13 = smov 64  }
  0x2a   :  { %v58_v2 = vand.u32 7, %v4632_v1  ;;  %v53_v3 = vadd.s32 8, %v4632_v1  ;;  %v110_v20 = vsel %vm104_vm1, 0.0, %v105_v11  ;;  %4191 = vmatpush3.bf16.msra.mxu0 %v4188_v10  ;;  %v107_v26 = vsel %vm104_vm1, %v105_v11, %v106_v16  ;;  %v3685_v36 = vld [vmem:[%s5444_s2 + $0x30] sm:$0xff]  ;;  %v3686_v38 = vld [vmem:[%s5444_s2 + $0x38] sm:$0xff]  ;;  %v390_v40 = vld [vmem:[%s5444_s2] sm:$0xff] }
  0x2b   :  { %v4184_v27 = vpack.c.bf16 %v98_v22, %v97_v18  ;;  %4193 = vmatprep.subr.bf16.mxu0 %v4192_v21  ;;  %v116_v29 = vsel %vm113_vm4, %v114_v12, %v115_v19  ;;  %v119_v32 = vsel %vm113_vm4, %v115_v19, 0.0  ;;  %v4196_v37 = vpack.c.bf16 %v3684_v35, %v3683_v34  ;;  %v391_v41 = vld [vmem:[%s5444_s2 + $0x8] sm:$0xff]  ;;  %v4698_v45 = vld [vmem:[%s5445_s3] sm:$0xff]  ;;  %v393_v4 = vld [vmem:[%s5444_s2 + $0x18] sm:$0xff]  ;;  %s4570_s14 = smov 96  }
  0x2c   :  { %vm78_vm0 = vcmp.ne.s32.totalorder %v58_v2, 0  ;;  %vm4639_vm2 = vcmp.ne.s32.totalorder %v58_v2, 7  ;;  %v65_v13 = vand.u32 7, %v53_v3  ;;  %v4200_v39 = vpack.c.bf16 %v3686_v38, %v3685_v36  ;;  %v392_v3 = vld [vmem:[%s5444_s2 + $0x10] sm:$0xff]  ;;  %v3687_v15 = vld [vmem:[%s5444_s2 + $0x40] sm:$0xff]  ;;  %v3688_v16 = vld [vmem:[%s5444_s2 + $0x48] sm:$0xff] }
  0x2d   :  { %v4637_v7 = vsel %vm78_vm0, 1.0, %v4566_v6  ;;  %v4654_v23 = vsel %vm4639_vm2, 1.0, %v4566_v6  ;;  %4185 = vmatprep.subr.bf16.mxu1 %v4184_v27  ;;  %v4204_v42 = vpack.c.bf16 %v391_v41, %v390_v40  ;;  %v4693_v43 = vsub.s32 0, %v4632_v1  ;;  %v3689_v22 = vld [vmem:[%s5444_s2 + $0x50] sm:$0xff]  ;;  %v3706_v36 = vld [vmem:[%s5444_s2 + $0x98] sm:$0xff]  ;;  %v3699_v38 = vld [vmem:[%s5444_s2 + $0x60] sm:$0xff] }
  0x2e   :  { %vm79_vm5 = vcmp.ne.s32.totalorder %v65_v13, 0  ;;  %v111_v24 = vmul.f32 %v4637_v7, %v110_v20  ;;  %vm85_vm6 = vcmp.ne.s32.totalorder %v65_v13, 7  ;;  %v120_v30 = vmul.f32 %v4654_v23, %v116_v29  ;;  %4187 = vmatpush3.bf16.msra.mxu1 %v4184_v27  ;;  %v3705_v34 = vld [vmem:[%s5444_s2 + $0x90] sm:$0xff] }
  0x2f   :  { %v4658_v25 = vsel %vm79_vm5, 1.0, %v4566_v6  ;;  %v4668_v31 = vsel %vm85_vm6, 1.0, %v4566_v6  ;;  %4197 = vmatprep.subr.bf16.mxu1 %v4196_v37  ;;  %v4701_v47 = vsub.s32 1, %v4632_v1  ;;  %v369_v48 = vrot.slane %v4698_v45, %v4693_v43 }
  0x30   :  { %v112_v28 = vmul.f32 %v4658_v25, %v107_v26  ;;  %3910 = vmatprep.mubr.msk.f32.mxu0 %vm122_vm3, %v111_v24  ;;  %v121_v33 = vmul.f32 %v4668_v31, %v119_v32  ;;  %v4208_v12 = vpack.c.bf16 %v393_v4, %v392_v3  ;;  %v3690_v24 = vld [vmem:[%s5444_s2 + $0x58] sm:$0xff]  ;;  %v3703_v32 = vld [vmem:[%s5444_s2 + $0x80] sm:$0xff]  ;;  %v668_v41 = vsub.s32 2, %v4632_v1 }
  0x31   :  { %3904 = vmatmul.mubr.msk.f32.vlgmr.msra.gmra.mrb[0].mxu1 %vm122_vm3, %v93_v14  ;;  %v375_v51 = vrot.slane %v4698_v45, %v4701_v47  ;;  %v4216_v27 = vpack.c.bf16 %v3690_v24, %v3689_v22 }
  0x32   :  { %3911 = vmatmul.mubr.msk.f32.vlgmr.msra.gmra.mrb[0].mxu0 %vm122_vm3, %v112_v28  ;;  %4199 = vmatpush3.bf16.msra.mxu1 %v4196_v37  ;;  %v4224_v37 = vpack.c.bf16 %v3706_v36, %v3705_v34  ;;  %v1007_v34 = vld [vmem:[%s5446_s4 + $0x30] sm:$0xff] }
  0x33   :  { %4195 = vmatpush3.bf16.msra.mxu0 %v4192_v21  ;;  %3917 = vmatprep.mubr.msk.f32.mxu0 %vm122_vm3, %v120_v30  ;;  %v4212_v21 = vpack.c.bf16 %v3688_v16, %v3687_v15 }
  0x34   :  { %4201 = vmatprep.subr.bf16.mxu1 %v4200_v39 }
  0x36   :  { %4203 = vmatpush3.bf16.msra.mxu1 %v4200_v39  ;;  %v3700_v39 = vld [vmem:[%s5444_s2 + $0x68] sm:$0xff] }
  0x37   :  { %4205 = vmatprep.subr.bf16.mxu1 %v4204_v42  ;;  %v4228_v40 = vpack.c.bf16 %v3700_v39, %v3699_v38  ;;  %v974_v38 = vsub.s32 5, %v4632_v1 }
  0x3a   :  { %3918 = vmatmul.mubr.msk.f32.vlgmr.msra.gmra.mrb[0].mxu0 %vm122_vm3, %v121_v33  ;;  %v3704_v33 = vld [vmem:[%s5444_s2 + $0x88] sm:$0xff] }
  0x3b   :  { %v4220_v35 = vpack.c.bf16 %v3704_v33, %v3703_v32  ;;  %v4567_v33 = vmov 0.0|0.0  }
  0x3d   :  { %4221 = vmatprep.subr.bf16.mxu0 %v4220_v35 }
  0x3e   :  { %4223 = vmatpush3.bf16.msra.mxu0 %v4220_v35  ;;  %v1008_v35 = vld [vmem:[%s5446_s4 + $0x38] sm:$0xff] }
  0x3f   :  { %4225 = vmatprep.subr.bf16.mxu0 %v4224_v37  ;;  %v4823_v36 = vpack.c.bf16 %v1008_v35, %v1007_v34 }
  0x42   :  { %4227 = vmatpush3.bf16.msra.mxu0 %v4224_v37  ;;  %v968_v37 = vsub.s32 4, %v4632_v1 }
  0x43   :  { %4229 = vmatprep.subr.bf16.mxu0 %v4228_v40 }
  0x44   :  { %v969_v39 = vrot.slane %v4698_v45, %v968_v37 }
 0x104   :  { %v3905_v44 = vpop.f32.mrb[0].mxu1 }
 0x105   :  { %v193_v46 = vpop.f32.mrb[1].mxu1 }
 0x10d   :  { %v3919_v49 = vpop.f32.mrb[0].mxu0 }
 0x10e   :  { %v4364_v50 = vadd.f32 %v3919_v49, %v3905_v44  ;;  %v355_v52 = vpop.f32.mrb[1].mxu0  ;;  %v669_v44 = vrot.slane %v4698_v45, %v668_v41 }
 0x10f   :  { %v4365_v53 = vadd.f32 %v355_v52, %v193_v46 }
 0x110   :  { %v371_v54 = vmul.f32 %v4364_v50, %v369_v48 }
 0x111   :  { %v370_v55 = vmul.f32 %v4365_v53, %v369_v48 }
 0x112   :  { %v377_v56 = vadd.f32 %v375_v51, %v371_v54 }
 0x113   :  { %v376_v57 = vadd.f32 %v375_v51, %v370_v55 }
 0x114   :  { %v381_v58 = vmin.f32 %v377_v56, 0.0  ;;  %vm379_vm8 = vcmp.gt.f32.partialorder %v377_v56, 0.0 }
 0x115   :  { %v380_v59 = vmin.f32 %v376_v57, 0.0  ;;  %vm378_vm9 = vcmp.gt.f32.partialorder %v376_v57, 0.0 }
 0x116   :  { %v384_v60 = vmul.f32 1.442695, %v381_v58 }
 0x117   :  { %v382_v61 = vmul.f32 1.442695, %v380_v59 }
 0x118   :  { %4388 = vpow2.f32 %v384_v60 }
 0x119   :  { %4390 = vpow2.f32 %v382_v61  ;;  %v3701_v61 = vld [vmem:[%s5444_s2 + $0x70] sm:$0xff] }
 0x122   :  { %v4389_v62 = vpop.eup %4388 }
 0x123   :  { %v4391_v63 = vpop.eup %4390  ;;  %v3682_v2 = vadd.f32 -1.0, %v4389_v62  ;;  %v3702_v62 = vld [vmem:[%s5444_s2 + $0x78] sm:$0xff] }
 0x124   :  { %v3681_v5 = vadd.f32 -1.0, %v4391_v63 }
 0x125   :  { %v389_v8 = vsel %vm379_vm8, %v377_v56, %v3682_v2  ;;  %vm1097_vm8 = vcmask 1041409  }
 0x126   :  { %v388_v9 = vsel %vm378_vm9, %v376_v57, %v3681_v5  ;;  %v407_v10 = vrot.slane %v389_v8, 7  ;;  %v415_v11 = vrot.slane %v389_v8, 1 }
 0x127   :  { %v406_v13 = vrot.slane %v388_v9, 7  ;;  %v414_v14 = vrot.slane %v388_v9, 1  ;;  %3928 = vmatprep.mubr.msk.f32.mxu1 %vm422_vm7, %v388_v9 }
 0x128   :  { %3929 = vmatmul.mubr.msk.f32.vlgmr.msra.gmra.mrb[2].mxu1 %vm422_vm7, %v389_v8  ;;  %v419_v29 = vsel %vm113_vm4, %v415_v11, 0.0  ;;  %v4232_v8 = vpack.c.bf16 %v3702_v62, %v3701_v61  ;;  %v1011_v61 = vsub.s32 6, %v4632_v1 }
 0x129   :  { %v411_v17 = vsel %vm104_vm1, 0.0, %v406_v13  ;;  %v408_v18 = vsel %vm104_vm1, %v406_v13, %v407_v10  ;;  %4207 = vmatpush3.bf16.msra.mxu1 %v4204_v42  ;;  %v416_v19 = vsel %vm113_vm4, %v414_v14, %v415_v11  ;;  %v421_v30 = vmul.f32 %v4668_v31, %v419_v29  ;;  %v3707_v11 = vld [vmem:[%s5444_s2 + $0xa0] sm:$0xff] }
 0x12a   :  { %4209 = vmatprep.subr.bf16.mxu1 %v4208_v12  ;;  %v412_v20 = vmul.f32 %v4637_v7, %v411_v17  ;;  %v413_v26 = vmul.f32 %v4658_v25, %v408_v18  ;;  %v420_v28 = vmul.f32 %v4654_v23, %v416_v19  ;;  %v674_v42 = vsub.s32 3, %v4632_v1  ;;  %v3709_v18 = vld [vmem:[%s5444_s2 + $0xb0] sm:$0xff]  ;;  %v3710_v19 = vld [vmem:[%s5444_s2 + $0xb8] sm:$0xff]  ;;  %v1005_v29 = vld [vmem:[%s5446_s4 + $0x20] sm:$0xff] }
 0x12b   :  { %v1012_v62 = vrot.slane %v4698_v45, %v1011_v61 }
 0x12c   :  { %3939 = vmatprep.mubr.msk.f32.mxu1 %vm422_vm7, %v412_v20  ;;  %v675_v46 = vrot.slane %v4698_v45, %v674_v42 }
 0x12d   :  { %4211 = vmatpush3.bf16.msra.mxu1 %v4208_v12  ;;  %v3708_v12 = vld [vmem:[%s5444_s2 + $0xa8] sm:$0xff] }
 0x12e   :  { %4213 = vmatprep.subr.bf16.mxu1 %v4212_v21  ;;  %v4236_v17 = vpack.c.bf16 %v3708_v12, %v3707_v11 }
 0x130   :  { %3940 = vmatmul.mubr.msk.f32.vlgmr.msra.gmra.mrb[2].mxu1 %vm422_vm7, %v413_v26  ;;  %v1003_v26 = vld [vmem:[%s5446_s4 + $0x10] sm:$0xff] }
 0x131   :  { %4215 = vmatpush3.bf16.msra.mxu1 %v4212_v21  ;;  %3950 = vmatprep.mubr.msk.f32.mxu1 %vm422_vm7, %v420_v28  ;;  %v4240_v21 = vpack.c.bf16 %v3710_v19, %v3709_v18  ;;  %v1004_v28 = vld [vmem:[%s5446_s4 + $0x18] sm:$0xff] }
 0x132   :  { %4217 = vmatprep.subr.bf16.mxu1 %v4216_v27 }
 0x135   :  { %4219 = vmatpush3.bf16.msra.mxu1 %v4216_v27 }
 0x138   :  { %3951 = vmatmul.mubr.msk.f32.vlgmr.msra.gmra.mrb[2].mxu1 %vm422_vm7, %v421_v30  ;;  %v1006_v30 = vld [vmem:[%s5446_s4 + $0x28] sm:$0xff] }
 0x139   :  { %v4811_v32 = vpack.c.bf16 %v1006_v30, %v1005_v29 }
 0x20b   :  { %v3952_v48 = vpop.f32.mrb[2].mxu1 }
 0x20c   :  { %v671_v49 = vmul.f32 %v3952_v48, %v669_v44  ;;  %v655_v50 = vpop.f32.mrb[3].mxu1 }
 0x20d   :  { %v670_v51 = vmul.f32 %v669_v44, %v655_v50 }
 0x20e   :  { %v677_v52 = vadd.f32 %v675_v46, %v671_v49 }
 0x20f   :  { %v676_v53 = vadd.f32 %v675_v46, %v670_v51 }
 0x210   :  { %v681_v54 = vmin.f32 %v677_v52, 0.0  ;;  %vm679_vm10 = vcmp.gt.f32.partialorder %v677_v52, 0.0 }
 0x211   :  { %v680_v55 = vmin.f32 %v676_v53, 0.0  ;;  %vm678_vm11 = vcmp.gt.f32.partialorder %v676_v53, 0.0 }
 0x212   :  { %v684_v56 = vmul.f32 1.442695, %v681_v54 }
 0x213   :  { %v682_v57 = vmul.f32 1.442695, %v680_v55 }
 0x214   :  { %4392 = vpow2.f32 %v684_v56 }
 0x215   :  { %4394 = vpow2.f32 %v682_v57 }
 0x21e   :  { %v4393_v58 = vpop.eup %4392 }
 0x21f   :  { %v4395_v59 = vpop.eup %4394  ;;  %v3698_v60 = vadd.f32 -1.0, %v4393_v58 }
 0x220   :  { %v3697_v63 = vadd.f32 -1.0, %v4395_v59 }
 0x221   :  { %v689_v2 = vsel %vm679_vm10, %v677_v52, %v3698_v60  ;;  %v991_v60 = vand.u32 127, %v51_v0  ;;  %vm1275_vm10 = vcmask 122880  }
 0x222   :  { %v688_v3 = vsel %vm678_vm11, %v676_v53, %v3697_v63  ;;  %v708_v4 = vrot.slane %v689_v2, 7  ;;  %v716_v5 = vrot.slane %v689_v2, 1  ;;  %v1137_v63 = vsub.s32 7, %v4632_v1 }
 0x223   :  { %v707_v9 = vrot.slane %v688_v3, 7  ;;  %v715_v10 = vrot.slane %v688_v3, 1  ;;  %3961 = vmatprep.mubr.msk.f32.mxu0 %vm422_vm7, %v688_v3  ;;  %vm993_vm15 = vcmp.ge.s32.totalorder %v991_v60, 32  ;;  %vm994_vm0 = vcmp.lt.s32.totalorder %v991_v60, 48 }
 0x224   :  { %3962 = vmatmul.mubr.msk.f32.vlgmr.msra.gmra.mrb[2].mxu0 %vm422_vm7, %v689_v2  ;;  %vm995_vm2 = vmand %vm993_vm15, %vm994_vm0  ;;  %vm997_vm3 = vcmp.ge.s32.totalorder %v991_v60, 64  ;;  %v4853_v0 = vrot.slane %v4698_v45, %v1137_v63  ;;  %vm1278_vm11 = vcmask 254080  }
 0x225   :  { %v712_v13 = vsel %vm104_vm1, 0.0, %v707_v9  ;;  %v709_v14 = vsel %vm104_vm1, %v707_v9, %v708_v4  ;;  %4231 = vmatpush3.bf16.msra.mxu0 %v4228_v40  ;;  %v717_v15 = vsel %vm113_vm4, %v715_v10, %v716_v5  ;;  %v975_v40 = vrot.slane %v4698_v45, %v974_v38 }
 0x226   :  { %4233 = vmatprep.subr.bf16.mxu0 %v4232_v8  ;;  %v713_v16 = vmul.f32 %v4637_v7, %v712_v13  ;;  %v714_v20 = vmul.f32 %v4658_v25, %v709_v14  ;;  %v721_v22 = vmul.f32 %v4654_v23, %v717_v15  ;;  %v720_v7 = vsel %vm113_vm4, %v716_v5, 0.0  ;;  %v1001_v25 = vld [vmem:[%s5446_s4] sm:$0xff]  ;;  %v1002_v23 = vld [vmem:[%s5446_s4 + $0x8] sm:$0xff] }
 0x227   :  { %v722_v24 = vmul.f32 %v4668_v31, %v720_v7  ;;  %v4244_v27 = vpack.c.bf16 %v1002_v23, %v1001_v25  ;;  %v4248_v31 = vpack.c.bf16 %v1004_v28, %v1003_v26  ;;  %vm992_vm1 = vcmp.lt.s32.totalorder %v991_v60, 16 }
 0x228   :  { %3972 = vmatprep.mubr.msk.f32.mxu0 %vm422_vm7, %v713_v16  ;;  %vm998_vm4 = vcmp.lt.s32.totalorder %v991_v60, 80  ;;  %vm996_vm5 = vmor %vm992_vm1, %vm995_vm2 }
 0x229   :  { %4235 = vmatpush3.bf16.msra.mxu0 %v4232_v8  ;;  %4245 = vmatprep.subr.bf16.mxu1 %v4244_v27  ;;  %vm999_vm6 = vmand %vm997_vm3, %vm998_vm4 }
 0x22a   :  { %4237 = vmatprep.subr.bf16.mxu0 %v4236_v17  ;;  %4247 = vmatpush3.bf16.msra.mxu1 %v4244_v27  ;;  %vm4855_vm9 = vmor %vm996_vm5, %vm999_vm6 }
 0x22b   :  { %4249 = vmatprep.subr.bf16.mxu1 %v4248_v31 }
 0x22c   :  { %3973 = vmatmul.mubr.msk.f32.vlgmr.msra.gmra.mrb[2].mxu0 %vm422_vm7, %v714_v20 }
 0x22d   :  { %4239 = vmatpush3.bf16.msra.mxu0 %v4236_v17  ;;  %3983 = vmatprep.mubr.msk.f32.mxu0 %vm422_vm7, %v721_v22 }
 0x22e   :  { %4241 = vmatprep.subr.bf16.mxu0 %v4240_v21  ;;  %4251 = vmatpush3.bf16.msra.mxu1 %v4248_v31 }
 0x22f   :  { %4252 = vmatprep.subr.bf16.mxu1 %v4567_v33 }
 0x231   :  { %4243 = vmatpush3.bf16.msra.mxu0 %v4240_v21 }
 0x232   :  { %4258 = vmatprep.subr.bf16.mxu0 %v4567_v33 }
 0x234   :  { %3984 = vmatmul.mubr.msk.f32.vlgmr.msra.gmra.mrb[2].mxu0 %vm422_vm7, %v722_v24 }
 0x235   :  { %4260 = vmatpush3.bf16.msra.mxu0 %v4811_v32  ;;  %4016 = vmatprep.mubr.msk.f32.mxu0 %vm4568_vm12, %v4566_v6 }
 0x236   :  { %4261 = vmatprep.subr.bf16.mxu0 %v4567_v33 }
 0x239   :  { %4263 = vmatpush3.bf16.msra.mxu0 %v4823_v36 }
 0x23a   :  { %4270 = vmatprep.subr.bf16.mxu0 %v4567_v33 }
 0x307   :  { %v3985_v41 = vpop.f32.mrb[2].mxu0 }
 0x308   :  { %v971_v42 = vmul.f32 %v3985_v41, %v969_v39  ;;  %v955_v44 = vpop.f32.mrb[3].mxu0 }
 0x309   :  { %v970_v46 = vmul.f32 %v969_v39, %v955_v44 }
 0x30a   :  { %v977_v48 = vadd.f32 %v975_v40, %v971_v42 }
 0x30b   :  { %v976_v49 = vadd.f32 %v975_v40, %v970_v46 }
 0x30c   :  { %v981_v50 = vmin.f32 %v977_v48, 0.0  ;;  %vm979_vm14 = vcmp.gt.f32.partialorder %v977_v48, 0.0 }
 0x30d   :  { %v980_v51 = vmin.f32 %v976_v49, 0.0  ;;  %vm978_vm13 = vcmp.gt.f32.partialorder %v976_v49, 0.0 }
 0x30e   :  { %v984_v52 = vmul.f32 1.442695, %v981_v50 }
 0x30f   :  { %v982_v53 = vmul.f32 1.442695, %v980_v51 }
 0x310   :  { %4396 = vpow2.f32 %v984_v52 }
 0x311   :  { %4398 = vpow2.f32 %v982_v53 }
 0x31a   :  { %v4397_v54 = vpop.eup %4396 }
 0x31b   :  { %v4399_v55 = vpop.eup %4398  ;;  %v3718_v56 = vadd.f32 -1.0, %v4397_v54 }
 0x31c   :  { %v3717_v57 = vadd.f32 -1.0, %v4399_v55 }
 0x31d   :  { %v989_v59 = vsel %vm979_vm14, %v977_v48, %v3718_v56 }
 0x31e   :  { %v988_v58 = vsel %vm978_vm13, %v976_v49, %v3717_v57 }
 0x31f   :  { %3994 = vmatprep.mubr.msk.f32.mxu1 %vm422_vm7, %v988_v58 }
 0x320   :  { %3995 = vmatmul.mubr.msk.f32.vlgmr.msra.gmra.mrb[4].mxu1 %vm422_vm7, %v989_v59 }
 0x321   :  { %4254 = vmatpush3.bf16.msra.mxu1 %v4811_v32  ;;  %4005 = vmatprep.mubr.msk.f32.mxu1 %vm4568_vm12, %v4566_v6 }
 0x322   :  { %4255 = vmatprep.subr.bf16.mxu1 %v4567_v33 }
 0x325   :  { %4257 = vmatpush3.bf16.msra.mxu1 %v4823_v36 }
 0x326   :  { %4264 = vmatprep.subr.bf16.mxu1 %v4567_v33 }
 0x328   :  { %4006 = vmatmul.mubr.f32.vlgmr.msra.gmra.mrb[6].mxu1 %v4566_v6 }
 0x329   :  { %4266 = vmatpush3.bf16.msra.mxu1 %v4811_v32  ;;  %4027 = vmatprep.mubr.msk.f32.mxu1 %vm4568_vm12, %v4566_v6 }
 0x32a   :  { %4267 = vmatprep.subr.bf16.mxu1 %v4567_v33 }
 0x32d   :  { %4269 = vmatpush3.bf16.msra.mxu1 %v4823_v36 }
 0x32e   :  { %4276 = vmatprep.subr.bf16.mxu1 %v4567_v33 }
 0x3f3   :  { %v3996_v2 = vpop.f32.mrb[4].mxu1 }
 0x3f4   :  { %v1091_v3 = vadd.f32 %v3996_v2, %v1012_v62  ;;  %v1085_v4 = vpop.f32.mrb[5].mxu1 }
 0x3f5   :  { %v1086_v5 = vadd.f32 %v1085_v4, %v1012_v62 }
 0x3f6   :  { %v1096_v8 = vrot.slane %v1091_v3, 7  ;;  %v1101_v9 = vrot.slane %v1091_v3, 6  ;;  %v1109_v10 = vrot.slane %v1091_v3, 5  ;;  %v1114_v11 = vrot.slane %v1091_v3, 1 }
 0x3f7   :  { %v1100_v13 = vrot.slane %v1086_v5, 7  ;;  %v1105_v14 = vrot.slane %v1086_v5, 1  ;;  %v1108_v15 = vrot.slane %v1086_v5, 6  ;;  %v1113_v16 = vrot.slane %v1086_v5, 2 }
 0x3f8   :  { %v1098_v17 = vsel %vm1097_vm8, %v1096_v8, %v1086_v5  ;;  %v1117_v18 = vrot.slane %v1086_v5, 5  ;;  %v1118_v19 = vrot.slane %v1091_v3, 4  ;;  %v1122_v20 = vrot.slane %v1086_v5, 3 }
 0x3f9   :  { %v1102_v45 = vsel %vm1097_vm8, %v1101_v9, %v1100_v13  ;;  %v1106_v21 = vsel %vm1097_vm8, %v1091_v3, %v1105_v14  ;;  %v1110_v22 = vsel %vm1097_vm8, %v1109_v10, %v1108_v15  ;;  %v1115_v7 = vsel %vm1097_vm8, %v1114_v11, %v1113_v16 }
 0x3fa   :  { %v1104_v24 = vsel %vm4855_vm9, %v1098_v17, %v1102_v45  ;;  %v1112_v25 = vsel %vm4855_vm9, %v1106_v21, %v1110_v22  ;;  %v1119_v23 = vsel %vm1097_vm8, %v1118_v19, %v1117_v18  ;;  %v1123_v26 = vrot.slane %v1091_v3, 2 }
 0x3fb   :  { %v1208_v27 = vpop.f32.mrb[6].mxu1  ;;  %v4871_v28 = vsel %vm4855_vm9, %v1115_v7, %v1119_v23  ;;  %v1126_v31 = vrot.slane %v1086_v5, 4  ;;  %v1127_v29 = vrot.slane %v1091_v3, 3  ;;  %v4875_v30 = vsel %vm4855_vm9, %v1119_v23, %v1115_v7 }
 0x3fc   :  { %v1209_v34 = vadd.f32 %v1208_v27, %v4853_v0  ;;  %v4007_v35 = vpop.f32.mrb[7].mxu1  ;;  %v1124_v37 = vsel %vm1097_vm8, %v1123_v26, %v1122_v20  ;;  %v4881_v38 = vsel %vm4855_vm9, %v1110_v22, %v1106_v21  ;;  %v4885_v39 = vsel %vm4855_vm9, %v1102_v45, %v1098_v17 }
 0x3fd   :  { %v1128_v40 = vsel %vm1097_vm8, %v1127_v29, %v1126_v31 }
 0x3fe   :  { %1220 = vrot.lane.b32.xlu0 %v1209_v34, %s4569_s13  ;;  %v4891_v41 = vsel %vm4855_vm9, %v1124_v37, %v1128_v40  ;;  %v4895_v42 = vsel %vm4855_vm9, %v1128_v40, %v1124_v37  ;;  %v1212_v44 = vadd.f32 %v1209_v34, %v1104_v24 }
 0x400   :  { %v3721_v46 = vmul.f32 -1.442695, %v1212_v44 }
 0x402   :  { %4400 = vpow2.f32 %v3721_v46 }
 0x40c   :  { %v4401_v48 = vpop.eup %4400 }
 0x40d   :  { %v1216_v49 = vadd.f32 1.0, %v4401_v48 }
 0x40f   :  { %4402 = vrcp.f32 %v1216_v49 }
 0x419   :  { %v4403_v50 = vpop.eup %4402 }
 0x41a   :  { %v1230_v56 = vsub.f32 1.0, %v4403_v50  ;;  %v1236_v58 = vmul.f32 0.0, %v4403_v50 }
 0x470   :  { %v1221_v51 = vpop.permute.xlu0 %1220 }
 0x471   :  { %v1223_v52 = vmul.f32 %v4403_v50, %v1221_v51 }
 0x473   :  { %1225 = vrot.lane.b32.xlu0 %v1223_v52, %s4569_s13 }
 0x4e5   :  { %v1226_v53 = vpop.permute.xlu0 %1225 }
 0x4e6   :  { %v1228_v54 = vadd.f32 %v1226_v53, %v1104_v24 }
 0x4e8   :  { %4404 = vtanh.f32 %v1228_v54 }
 0x4f2   :  { %v4405_v55 = vpop.eup %4404 }
 0x4f3   :  { %1232 = vrot.lane.b32.xlu1 %v4405_v55, %s4570_s14 }
 0x565   :  { %v1233_v57 = vpop.permute.xlu1 %1232 }
 0x566   :  { %v1235_v59 = vmul.f32 %v1233_v57, %v1230_v56 }
 0x568   :  { %v4899_v60 = vadd.f32 %v1236_v58, %v1235_v59 }
 0x56a   :  { %1281 = vrot.lane.b32.xlu1 %v4899_v60, %s4570_s14 }
 0x5dc   :  { %v1282_v61 = vpop.permute.xlu1 %1281 }
 0x5dd   :  { %4017 = vmatmul.mubr.msk.f32.vlgmr.msra.gmra.mrb[4].mxu0 %vm422_vm7, %v1282_v61 }
 0x5de   :  { %4272 = vmatpush3.bf16.msra.mxu0 %v4811_v32  ;;  %4038 = vmatprep.mubr.msk.f32.mxu0 %vm4568_vm12, %v4566_v6 }
 0x5df   :  { %4273 = vmatprep.subr.bf16.mxu0 %v4567_v33 }
 0x5e2   :  { %4275 = vmatpush3.bf16.msra.mxu0 %v4823_v36 }
 0x5e3   :  { %4282 = vmatprep.subr.bf16.mxu0 %v4567_v33 }
 0x6b0   :  { %v1351_v62 = vpop.f32.mrb[4].mxu0 }
 0x6b1   :  { %v1352_v63 = vadd.f32 %v1351_v62, %v4853_v0  ;;  %v4018_v2 = vpop.f32.mrb[5].mxu0 }
 0x6b3   :  { %1363 = vrot.lane.b32.xlu0 %v1352_v63, %s4569_s13  ;;  %v1355_v3 = vadd.f32 %v1352_v63, %v1112_v25 }
 0x6b5   :  { %v3723_v4 = vmul.f32 -1.442695, %v1355_v3 }
 0x6b7   :  { %4406 = vpow2.f32 %v3723_v4 }
 0x6c1   :  { %v4407_v5 = vpop.eup %4406 }
 0x6c2   :  { %v1359_v8 = vadd.f32 1.0, %v4407_v5 }
 0x6c4   :  { %4408 = vrcp.f32 %v1359_v8 }
 0x6ce   :  { %v4409_v9 = vpop.eup %4408 }
 0x6cf   :  { %v1373_v16 = vsub.f32 1.0, %v4409_v9  ;;  %v1379_v18 = vmul.f32 %v4409_v9, %v4899_v60 }
 0x725   :  { %v1364_v10 = vpop.permute.xlu0 %1363 }
 0x726   :  { %v1366_v11 = vmul.f32 %v4409_v9, %v1364_v10 }
 0x728   :  { %1368 = vrot.lane.b32.xlu1 %v1366_v11, %s4569_s13 }
 0x79a   :  { %v1369_v13 = vpop.permute.xlu1 %1368 }
 0x79b   :  { %v1371_v14 = vadd.f32 %v1369_v13, %v1112_v25 }
 0x79d   :  { %4410 = vtanh.f32 %v1371_v14 }
 0x7a7   :  { %v4411_v15 = vpop.eup %4410 }
 0x7a8   :  { %1375 = vrot.lane.b32.xlu0 %v4411_v15, %s4570_s14 }
 0x81a   :  { %v1376_v17 = vpop.permute.xlu0 %1375 }
 0x81b   :  { %v1378_v19 = vmul.f32 %v1376_v17, %v1373_v16 }
 0x81d   :  { %v4915_v20 = vadd.f32 %v1379_v18, %v1378_v19 }
 0x81f   :  { %1422 = vrot.lane.b32.xlu1 %v4915_v20, %s4570_s14 }
 0x891   :  { %v1423_v45 = vpop.permute.xlu1 %1422 }
 0x892   :  { %4028 = vmatmul.mubr.msk.f32.vlgmr.msra.gmra.mrb[8].mxu1 %vm422_vm7, %v1423_v45 }
 0x893   :  { %4278 = vmatpush3.bf16.msra.mxu1 %v4811_v32  ;;  %4049 = vmatprep.mubr.msk.f32.mxu1 %vm4568_vm12, %v4566_v6 }
 0x894   :  { %4279 = vmatprep.subr.bf16.mxu1 %v4567_v33 }
 0x897   :  { %4281 = vmatpush3.bf16.msra.mxu1 %v4823_v36 }
 0x898   :  { %4288 = vmatprep.subr.bf16.mxu1 %v4567_v33 }
 0x965   :  { %v1492_v21 = vpop.f32.mrb[8].mxu1 }
 0x966   :  { %v1493_v22 = vadd.f32 %v1492_v21, %v4853_v0  ;;  %v4029_v7 = vpop.f32.mrb[9].mxu1 }
 0x968   :  { %1504 = vrot.lane.b32.xlu0 %v1493_v22, %s4569_s13  ;;  %v1496_v24 = vadd.f32 %v1493_v22, %v4871_v28 }
 0x96a   :  { %v3725_v25 = vmul.f32 -1.442695, %v1496_v24 }
 0x96c   :  { %4412 = vpow2.f32 %v3725_v25 }
 0x976   :  { %v4413_v23 = vpop.eup %4412 }
 0x977   :  { %v1500_v26 = vadd.f32 1.0, %v4413_v23 }
 0x979   :  { %4414 = vrcp.f32 %v1500_v26 }
 0x983   :  { %v4415_v27 = vpop.eup %4414 }
 0x984   :  { %v1514_v40 = vsub.f32 1.0, %v4415_v27  ;;  %v1520_v46 = vmul.f32 %v4415_v27, %v4915_v20 }
 0x9da   :  { %v1505_v31 = vpop.permute.xlu0 %1504 }
 0x9db   :  { %v1507_v29 = vmul.f32 %v4415_v27, %v1505_v31 }
 0x9dd   :  { %1509 = vrot.lane.b32.xlu1 %v1507_v29, %s4569_s13 }
 0xa4f   :  { %v1510_v34 = vpop.permute.xlu1 %1509 }
 0xa50   :  { %v1512_v35 = vadd.f32 %v1510_v34, %v4871_v28 }
 0xa52   :  { %4416 = vtanh.f32 %v1512_v35 }
 0xa5c   :  { %v4417_v37 = vpop.eup %4416 }
 0xa5d   :  { %1516 = vrot.lane.b32.xlu0 %v4417_v37, %s4570_s14 }
 0xacf   :  { %v1517_v44 = vpop.permute.xlu0 %1516 }
 0xad0   :  { %v1519_v48 = vmul.f32 %v1517_v44, %v1514_v40 }
 0xad2   :  { %v4933_v49 = vadd.f32 %v1520_v46, %v1519_v48 }
 0xad4   :  { %1563 = vrot.lane.b32.xlu1 %v4933_v49, %s4570_s14 }
 0xb46   :  { %v1564_v50 = vpop.permute.xlu1 %1563 }
 0xb47   :  { %4039 = vmatmul.mubr.msk.f32.vlgmr.msra.gmra.mrb[6].mxu0 %vm422_vm7, %v1564_v50 }
 0xb48   :  { %4284 = vmatpush3.bf16.msra.mxu0 %v4811_v32  ;;  %4060 = vmatprep.mubr.msk.f32.mxu0 %vm4568_vm12, %v4566_v6 }
 0xb49   :  { %4285 = vmatprep.subr.bf16.mxu0 %v4567_v33 }
 0xb4c   :  { %4287 = vmatpush3.bf16.msra.mxu0 %v4823_v36 }
 0xb4d   :  { %4294 = vmatprep.subr.bf16.mxu0 %v4567_v33 }
 0xc1a   :  { %v1633_v28 = vpop.f32.mrb[6].mxu0 }
 0xc1b   :  { %v1634_v51 = vadd.f32 %v1633_v28, %v4853_v0  ;;  %v4040_v52 = vpop.f32.mrb[7].mxu0 }
 0xc1d   :  { %1645 = vrot.lane.b32.xlu0 %v1634_v51, %s4569_s13  ;;  %v1637_v53 = vadd.f32 %v1634_v51, %v4891_v41 }
 0xc1f   :  { %v3727_v54 = vmul.f32 -1.442695, %v1637_v53 }
 0xc21   :  { %4418 = vpow2.f32 %v3727_v54 }
 0xc2b   :  { %v4419_v55 = vpop.eup %4418 }
 0xc2c   :  { %v1641_v56 = vadd.f32 1.0, %v4419_v55 }
 0xc2e   :  { %4420 = vrcp.f32 %v1641_v56 }
 0xc38   :  { %v4421_v57 = vpop.eup %4420 }
 0xc39   :  { %v1655_v2 = vsub.f32 1.0, %v4421_v57  ;;  %v1661_v4 = vmul.f32 %v4421_v57, %v4933_v49 }
 0xc8f   :  { %v1646_v58 = vpop.permute.xlu0 %1645 }
 0xc90   :  { %v1648_v59 = vmul.f32 %v4421_v57, %v1646_v58 }
 0xc92   :  { %1650 = vrot.lane.b32.xlu1 %v1648_v59, %s4569_s13 }
 0xd04   :  { %v1651_v61 = vpop.permute.xlu1 %1650 }
 0xd05   :  { %v1653_v62 = vadd.f32 %v1651_v61, %v4891_v41 }
 0xd07   :  { %4422 = vtanh.f32 %v1653_v62 }
 0xd11   :  { %v4423_v63 = vpop.eup %4422 }
 0xd12   :  { %1657 = vrot.lane.b32.xlu0 %v4423_v63, %s4570_s14 }
 0xd84   :  { %v1658_v3 = vpop.permute.xlu0 %1657 }
 0xd85   :  { %v1660_v5 = vmul.f32 %v1658_v3, %v1655_v2 }
 0xd87   :  { %v4951_v8 = vadd.f32 %v1661_v4, %v1660_v5 }
 0xd89   :  { %1704 = vrot.lane.b32.xlu1 %v4951_v8, %s4570_s14 }
 0xdfb   :  { %v1705_v9 = vpop.permute.xlu1 %1704 }
 0xdfc   :  { %4050 = vmatmul.mubr.msk.f32.vlgmr.msra.gmra.mrb[10].mxu1 %vm422_vm7, %v1705_v9 }
 0xdfd   :  { %4290 = vmatpush3.bf16.msra.mxu1 %v4811_v32  ;;  %4071 = vmatprep.mubr.msk.f32.mxu1 %vm4568_vm12, %v4566_v6 }
 0xdfe   :  { %4291 = vmatprep.subr.bf16.mxu1 %v4567_v33 }
 0xe01   :  { %4293 = vmatpush3.bf16.msra.mxu1 %v4823_v36 }
 0xecf   :  { %v1774_v41 = vpop.f32.mrb[10].mxu1 }
 0xed0   :  { %v1775_v10 = vadd.f32 %v1774_v41, %v4853_v0  ;;  %v4051_v11 = vpop.f32.mrb[11].mxu1 }
 0xed2   :  { %1786 = vrot.lane.b32.xlu0 %v1775_v10, %s4569_s13  ;;  %v1778_v13 = vadd.f32 %v1775_v10, %v4895_v42 }
 0xed4   :  { %v3729_v14 = vmul.f32 -1.442695, %v1778_v13 }
 0xed6   :  { %4424 = vpow2.f32 %v3729_v14 }
 0xee0   :  { %v4425_v15 = vpop.eup %4424 }
 0xee1   :  { %v1782_v16 = vadd.f32 1.0, %v4425_v15 }
 0xee3   :  { %4426 = vrcp.f32 %v1782_v16 }
 0xeed   :  { %v4427_v17 = vpop.eup %4426 }
 0xeee   :  { %v1796_v7 = vsub.f32 1.0, %v4427_v17  ;;  %v1802_v25 = vmul.f32 %v4427_v17, %v4951_v8 }
 0xf44   :  { %v1787_v18 = vpop.permute.xlu0 %1786 }
 0xf45   :  { %v1789_v19 = vmul.f32 %v4427_v17, %v1787_v18 }
 0xf47   :  { %1791 = vrot.lane.b32.xlu1 %v1789_v19, %s4569_s13 }
 0xfb9   :  { %v1792_v45 = vpop.permute.xlu1 %1791 }
 0xfba   :  { %v1794_v21 = vadd.f32 %v1792_v45, %v4895_v42 }
 0xfbc   :  { %4428 = vtanh.f32 %v1794_v21  ;;  %v4571_v21 = vmov 1966171168  }
 0xfc6   :  { %v4429_v22 = vpop.eup %4428 }
 0xfc7   :  { %1798 = vrot.lane.b32.xlu0 %v4429_v22, %s4570_s14  ;;  %v1240_v22 = vunpack.c.l.s4 %v4571_v21 }
0x1039   :  { %v1799_v24 = vpop.permute.xlu0 %1798 }
0x103a   :  { %v1801_v23 = vmul.f32 %v1799_v24, %v1796_v7  ;;  %v1241_v24 = vunpack.c.0.s8 %v1240_v22 }
0x103c   :  { %v4968_v26 = vadd.f32 %v1802_v25, %v1801_v23  ;;  %v5009_v25 = vsub.s32 %v1241_v24, %v4632_v1 }
0x103e   :  { %1845 = vrot.lane.b32.xlu1 %v4968_v26, %s4570_s14  ;;  %v1245_v23 = vrot.slane %v4899_v60, %v5009_v25 }
0x10b0   :  { %v1846_v27 = vpop.permute.xlu1 %1845 }
0x10b1   :  { %4061 = vmatmul.mubr.msk.f32.vlgmr.msra.gmra.mrb[8].mxu0 %vm422_vm7, %v1846_v27 }
0x10b2   :  { %4296 = vmatpush3.bf16.msra.mxu0 %v4811_v32  ;;  %4082 = vmatprep.mubr.msk.f32.mxu0 %vm4568_vm12, %v4566_v6 }
0x10b3   :  { %4297 = vmatprep.subr.bf16.mxu0 %v4567_v33 }
0x10b6   :  { %4299 = vmatpush3.bf16.msra.mxu0 %v4823_v36 }
0x10b7   :  { %4308 = vmatprep.subr.bf16.mxu0 %v4567_v33 }
0x1184   :  { %v1915_v42 = vpop.f32.mrb[8].mxu0 }
0x1185   :  { %v1916_v31 = vadd.f32 %v1915_v42, %v4853_v0  ;;  %v4062_v29 = vpop.f32.mrb[9].mxu0  ;;  %v1529_v42 = vrot.slane %v4933_v49, %v5009_v25  ;;  %v1811_v49 = vrot.slane %v4968_v26, %v5009_v25 }
0x1186   :  { %v1253_v29 = vrot.slane %v1245_v23, %v5009_v25 }
0x1187   :  { %1927 = vrot.lane.b32.xlu0 %v1916_v31, %s4569_s13  ;;  %v1919_v34 = vadd.f32 %v1916_v31, %v4875_v30  ;;  %v1537_v1 = vrot.slane %v1529_v42, %v5009_v25 }
0x1189   :  { %v3731_v35 = vmul.f32 -1.442695, %v1919_v34  ;;  %v1264_v34 = vrot.slane %v1253_v29, %v4693_v43  ;;  %v1548_v60 = vrot.slane %v1537_v1, %v4693_v43 }
0x118b   :  { %4430 = vpow2.f32 %v3731_v35  ;;  %v1246_v35 = vcombine.high %v1245_v23, %v1245_v23 }
0x1195   :  { %v4431_v32 = vpop.eup %4430 }
0x1196   :  { %v1923_v37 = vadd.f32 1.0, %v4431_v32  ;;  %v1260_v32 = vrot.slane %v1246_v35, %v5009_v25  ;;  %v2270_v35 = vld [vmem:[%s5446_s4 + $0x40] sm:$0xff] }
0x1198   :  { %4432 = vrcp.f32 %v1923_v37  ;;  %v1530_v37 = vcombine.high %v1529_v42, %v1529_v42 }
0x11a2   :  { %v4433_v40 = vpop.eup %4432 }
0x11a3   :  { %v1937_v28 = vsub.f32 1.0, %v4433_v40  ;;  %v1943_v52 = vmul.f32 %v4433_v40, %v4968_v26  ;;  %v1812_v26 = vcombine.high %v1811_v49, %v1811_v49 }
0x11f9   :  { %v1928_v44 = vpop.permute.xlu0 %1927 }
0x11fa   :  { %v1930_v46 = vmul.f32 %v4433_v40, %v1928_v44  ;;  %v1268_v40 = vrot.slane %v1260_v32, %v4693_v43  ;;  %v1544_v44 = vrot.slane %v1530_v37, %v5009_v25  ;;  %v2272_v32 = vld [vmem:[%s5446_s4 + $0x50] sm:$0xff] }
0x11fc   :  { %1932 = vrot.lane.b32.xlu1 %v1930_v46, %s4569_s13 }
0x126e   :  { %v1933_v36 = vpop.permute.xlu1 %1932 }
0x126f   :  { %v1935_v48 = vadd.f32 %v1933_v36, %v4875_v30  ;;  %v1552_v36 = vrot.slane %v1544_v44, %v4693_v43 }
0x1271   :  { %4434 = vtanh.f32 %v1935_v48  ;;  %v1819_v48 = vrot.slane %v1811_v49, %v5009_v25 }
0x127b   :  { %v4435_v50 = vpop.eup %4434 }
0x127c   :  { %1939 = vrot.lane.b32.xlu0 %v4435_v50, %s4570_s14  ;;  %v1830_v50 = vrot.slane %v1819_v48, %v4693_v43 }
0x12ee   :  { %v1940_v51 = vpop.permute.xlu0 %1939 }
0x12ef   :  { %v1942_v53 = vmul.f32 %v1940_v51, %v1937_v28 }
0x12f1   :  { %v4986_v54 = vadd.f32 %v1943_v52, %v1942_v53  ;;  %v1826_v52 = vrot.slane %v1812_v26, %v5009_v25 }
0x12f3   :  { %1986 = vrot.lane.b32.xlu1 %v4986_v54, %s4570_s14 }
0x1365   :  { %v1987_v55 = vpop.permute.xlu1 %1986 }
0x1366   :  { %4072 = vmatmul.mubr.msk.f32.vlgmr.msra.gmra.mrb[12].mxu1 %vm422_vm7, %v1987_v55  ;;  %v1834_v55 = vrot.slane %v1826_v52, %v4693_v43 }
0x1439   :  { %v2056_v56 = vpop.f32.mrb[12].mxu1 }
0x143a   :  { %v2057_v30 = vadd.f32 %v2056_v56, %v4853_v0  ;;  %v4073_v57 = vpop.f32.mrb[13].mxu1 }
0x143c   :  { %2068 = vrot.lane.b32.xlu0 %v2057_v30, %s4569_s13  ;;  %v2060_v58 = vadd.f32 %v2057_v30, %v4881_v38 }
0x143e   :  { %v3733_v59 = vmul.f32 -1.442695, %v2060_v58 }
0x1440   :  { %4436 = vpow2.f32 %v3733_v59 }
0x144a   :  { %v4437_v61 = vpop.eup %4436 }
0x144b   :  { %v2064_v62 = vadd.f32 1.0, %v4437_v61  ;;  %v1388_v61 = vrot.slane %v4915_v20, %v5009_v25 }
0x144d   :  { %4438 = vrcp.f32 %v2064_v62 }
0x1457   :  { %v4439_v63 = vpop.eup %4438 }
0x1458   :  { %v2078_v41 = vsub.f32 1.0, %v4439_v63  ;;  %v2084_v11 = vmul.f32 %v4439_v63, %v4986_v54 }
0x14ae   :  { %v2069_v2 = vpop.permute.xlu0 %2068 }
0x14af   :  { %v2071_v3 = vmul.f32 %v4439_v63, %v2069_v2  ;;  %v1670_v63 = vrot.slane %v4951_v8, %v5009_v25  ;;  %v1396_v2 = vrot.slane %v1388_v61, %v5009_v25 }
0x14b1   :  { %2073 = vrot.lane.b32.xlu1 %v2071_v3, %s4569_s13  ;;  %v1407_v20 = vrot.slane %v1396_v2, %v4693_v43 }
0x1523   :  { %v2074_v4 = vpop.permute.xlu1 %2073 }
0x1524   :  { %v2076_v5 = vadd.f32 %v2074_v4, %v4881_v38 }
0x1526   :  { %4440 = vtanh.f32 %v2076_v5  ;;  %v1678_v5 = vrot.slane %v1670_v63, %v5009_v25 }
0x1528   :  { %v1689_v8 = vrot.slane %v1678_v5, %v4693_v43 }
0x1530   :  { %v4441_v9 = vpop.eup %4440 }
0x1531   :  { %2080 = vrot.lane.b32.xlu0 %v4441_v9, %s4570_s14  ;;  %v1389_v9 = vcombine.high %v1388_v61, %v1388_v61 }
0x15a3   :  { %v2081_v10 = vpop.permute.xlu0 %2080 }
0x15a4   :  { %v2083_v13 = vmul.f32 %v2081_v10, %v2078_v41  ;;  %v1403_v41 = vrot.slane %v1389_v9, %v5009_v25  ;;  %v1671_v10 = vcombine.high %v1670_v63, %v1670_v63 }
0x15a6   :  { %v4998_v14 = vadd.f32 %v2084_v11, %v2083_v13  ;;  %v1952_v11 = vrot.slane %v4986_v54, %v5009_v25  ;;  %v1411_v13 = vrot.slane %v1403_v41, %v4693_v43  ;;  %v2277_v54 = vld [vmem:[%s5446_s4 + $0x78] sm:$0xff] }
0x15a8   :  { %2127 = vrot.lane.b32.xlu1 %v4998_v14, %s4570_s14  ;;  %v2093_v46 = vrot.slane %v4998_v14, %v5009_v25  ;;  %v1953_v21 = vcombine.high %v1952_v11, %v1952_v11 }
0x15aa   :  { %v2101_v28 = vrot.slane %v2093_v46, %v5009_v25  ;;  %v2094_v53 = vcombine.high %v2093_v46, %v2093_v46  ;;  %v1967_v24 = vrot.slane %v1953_v21, %v5009_v25 }
0x15ac   :  { %v2112_v51 = vrot.slane %v2101_v28, %v4693_v43  ;;  %v2108_v56 = vrot.slane %v2094_v53, %v5009_v25  ;;  %v1975_v23 = vrot.slane %v1967_v24, %v4693_v43 }
0x15ae   :  { %v2116_v30 = vrot.slane %v2108_v56, %v4693_v43 }
0x161a   :  { %v2128_v15 = vpop.permute.xlu1 %2127 }
0x161b   :  { %4083 = vmatmul.mubr.msk.f32.vlgmr.msra.gmra.mrb[10].mxu0 %vm422_vm7, %v2128_v15  ;;  %v1685_v15 = vrot.slane %v1671_v10, %v5009_v25 }
0x161c   :  { %4104 = vmatprep.mubr.msk.f32.mxu0 %vm4568_vm12, %v4566_v6 }
0x16ee   :  { %v2197_v38 = vpop.f32.mrb[10].mxu0 }
0x16ef   :  { %v2198_v16 = vadd.f32 %v2197_v38, %v4853_v0  ;;  %v4084_v17 = vpop.f32.mrb[11].mxu0  ;;  %v2274_v38 = vld [vmem:[%s5446_s4 + $0x60] sm:$0xff] }
0x16f0   :  { %v2276_v17 = vld [vmem:[%s5446_s4 + $0x70] sm:$0xff] }
0x16f1   :  { %2209 = vrot.lane.b32.xlu0 %v2198_v16, %s4569_s13  ;;  %v2201_v18 = vadd.f32 %v2198_v16, %v4885_v39  ;;  %v2275_v16 = vld [vmem:[%s5446_s4 + $0x68] sm:$0xff]  ;;  %v5090_v22 = vpack.c.bf16 %v2277_v54, %v2276_v17 }
0x16f3   :  { %v3735_v19 = vmul.f32 -1.442695, %v2201_v18  ;;  %v5082_v18 = vpack.c.bf16 %v2275_v16, %v2274_v38 }
0x16f5   :  { %4442 = vpow2.f32 %v3735_v19  ;;  %v1693_v19 = vrot.slane %v1685_v15, %v4693_v43  ;;  %4310 = vmatpush3.bf16.msra.mxu0 %v5082_v18 }
0x16f6   :  { %4311 = vmatprep.subr.bf16.mxu0 %v4567_v33 }
0x16f9   :  { %4313 = vmatpush3.bf16.msra.mxu0 %v5090_v22 }
0x16fa   :  { %4320 = vmatprep.subr.bf16.mxu0 %v4567_v33 }
0x16fc   :  { %4105 = vmatmul.mubr.f32.vlgmr.msra.gmra.mrb[12].mxu0 %v4566_v6 }
0x16fd   :  { %4322 = vmatpush3.bf16.msra.mxu0 %v5082_v18  ;;  %4126 = vmatprep.mubr.msk.f32.mxu0 %vm4568_vm12, %v4566_v6 }
0x16fe   :  { %4323 = vmatprep.subr.bf16.mxu0 %v4567_v33 }
0x16ff   :  { %v4443_v45 = vpop.eup %4442 }
0x1700   :  { %v2205_v7 = vadd.f32 1.0, %v4443_v45  ;;  %v1960_v45 = vrot.slane %v1952_v11, %v5009_v25 }
0x1701   :  { %4325 = vmatpush3.bf16.msra.mxu0 %v5090_v22 }
0x1702   :  { %4444 = vrcp.f32 %v2205_v7  ;;  %v1971_v7 = vrot.slane %v1960_v45, %v4693_v43  ;;  %4332 = vmatprep.subr.bf16.mxu0 %v4567_v33 }
0x170c   :  { %v5013_v0 = vpop.eup %4444 }
0x170d   :  { %v2219_v42 = vsub.f32 1.0, %v5013_v0 }
0x1763   :  { %v2210_v27 = vpop.permute.xlu0 %2209 }
0x1764   :  { %v2212_v31 = vmul.f32 %v5013_v0, %v2210_v27 }
0x1766   :  { %2214 = vrot.lane.b32.xlu1 %v2212_v31, %s4569_s13 }
0x176a   :  { %1269 = vrot.lane.b32.xlu1 %v1264_v34, %s4570_s14  ;;  %v2225_v34 = vmul.f32 %v5013_v0, %v4998_v14 }
0x176e   :  { %1553 = vrot.lane.b32.xlu1 %v1548_v60, %s4570_s14  ;;  %v2271_v60 = vld [vmem:[%s5446_s4 + $0x48] sm:$0xff] }
0x176f   :  { %v4300_v49 = vpack.c.bf16 %v2271_v60, %v2270_v35 }
0x1771   :  { %4301 = vmatprep.subr.bf16.mxu1 %v4300_v49 }
0x1772   :  { %1271 = vrot.lane.b32.xlu1 %v1268_v40, %s4570_s14  ;;  %v2273_v40 = vld [vmem:[%s5446_s4 + $0x58] sm:$0xff]  ;;  %4303 = vmatpush3.bf16.msra.mxu1 %v4300_v49 }
0x1773   :  { %v4304_v0 = vpack.c.bf16 %v2273_v40, %v2272_v32 }
0x1775   :  { %4305 = vmatprep.subr.bf16.mxu1 %v4304_v0 }
0x1776   :  { %1555 = vrot.lane.b32.xlu1 %v1552_v36, %s4570_s14  ;;  %4307 = vmatpush3.bf16.msra.mxu1 %v4304_v0 }
0x1777   :  { %4314 = vmatprep.subr.bf16.mxu1 %v4567_v33 }
0x177a   :  { %1835 = vrot.lane.b32.xlu1 %v1830_v50, %s4570_s14 }
0x177e   :  { %2117 = vrot.lane.b32.xlu1 %v2112_v51, %s4570_s14 }
0x1782   :  { %1837 = vrot.lane.b32.xlu1 %v1834_v55, %s4570_s14 }
0x1786   :  { %2119 = vrot.lane.b32.xlu1 %v2116_v30, %s4570_s14 }
0x17d8   :  { %v2215_v57 = vpop.permute.xlu1 %2214 }
0x17d9   :  { %v2217_v58 = vadd.f32 %v2215_v57, %v4885_v39  ;;  %v91_v57 = vld [vmem:[%s5445_s3 + $0x8] sm:$0x3] }
0x17db   :  { %4446 = vtanh.f32 %v2217_v58  ;;  %v5155_v58 = vrot.slane %v91_v57, %v4701_v47 }
0x17dc   :  { %v1270_v59 = vpop.permute.xlu1 %1269 }
0x17dd   :  { %1276 = vst.msk [vmem:[#allocation2] sm:$0x1] %vm1275_vm10, %v1270_v59 }
0x17de   :  { %1279 = vst.msk [vmem:[#allocation2 + $0x7] sm:$0x1] %vm1278_vm11, %v1270_v59  ;;  %v2473_v59 = vpop.f32.mrb[12].mxu0 }
0x17df   :  { %v2474_v61 = vadd.f32 %v2473_v59, %v5155_v58 }
0x17e0   :  { %v1554_v62 = vpop.permute.xlu1 %1553 }
0x17e1   :  { %1559 = vst.msk [vmem:[#allocation2 + $0x2] sm:$0x1] %vm1275_vm10, %v1554_v62  ;;  %2485 = vrot.lane.b32.xlu1 %v2474_v61, %s4569_s13 }
0x17e2   :  { %1561 = vst.msk [vmem:[#allocation2 + $0x5] sm:$0x1] %vm1278_vm11, %v1554_v62  ;;  %v4106_v62 = vpop.f32.mrb[13].mxu0 }
0x17e4   :  { %v1272_v39 = vpop.permute.xlu1 %1271 }
0x17e5   :  { %v4447_v3 = vpop.eup %4446  ;;  %1277 = vst.msk [vmem:[#allocation2 + $0x8] sm:$0x1] %vm1275_vm10, %v1272_v39 }
0x17e6   :  { %1280 = vst.msk [vmem:[#allocation2 + $0xf] sm:$0x1] %vm1278_vm11, %v1272_v39  ;;  %2221 = vrot.lane.b32.xlu0 %v4447_v3, %s4570_s14 }
0x17e8   :  { %v1556_v4 = vpop.permute.xlu1 %1555 }
0x17e9   :  { %1560 = vst.msk [vmem:[#allocation2 + $0xa] sm:$0x1] %vm1275_vm10, %v1556_v4 }
0x17ea   :  { %1562 = vst.msk [vmem:[#allocation2 + $0xd] sm:$0x1] %vm1278_vm11, %v1556_v4  ;;  %1412 = vrot.lane.b32.xlu0 %v1407_v20, %s4570_s14  ;;  %v2281_v4 = vrot.slane %v91_v57, %v4693_v43 }
0x17ec   :  { %v1836_v27 = vpop.permute.xlu1 %1835 }
0x17ee   :  { %1694 = vrot.lane.b32.xlu0 %v1689_v8, %s4570_s14 }
0x17f0   :  { %v2118_v29 = vpop.permute.xlu1 %2117 }
0x17f2   :  { %1414 = vrot.lane.b32.xlu0 %v1411_v13, %s4570_s14 }
0x17f4   :  { %v1838_v46 = vpop.permute.xlu1 %1837 }
0x17f6   :  { %1696 = vrot.lane.b32.xlu0 %v1693_v19, %s4570_s14 }
0x17f8   :  { %v2120_v52 = vpop.permute.xlu1 %2119 }
0x17fa   :  { %1976 = vrot.lane.b32.xlu0 %v1971_v7, %s4570_s14 }
0x17fe   :  { %1978 = vrot.lane.b32.xlu0 %v1975_v23, %s4570_s14 }
0x1858   :  { %v2222_v31 = vpop.permute.xlu0 %2221 }
0x1859   :  { %v2224_v1 = vmul.f32 %v2222_v31, %v2219_v42 }
0x185b   :  { %v2226_v37 = vadd.f32 %v2225_v34, %v2224_v1 }
0x185c   :  { %v1413_v14 = vpop.permute.xlu0 %1412 }
0x185d   :  { %v2234_v44 = vrot.slane %v2226_v37, %v5009_v25  ;;  %1418 = vst.msk [vmem:[#allocation2 + $0x1] sm:$0x1] %vm1275_vm10, %v1413_v14 }
0x185e   :  { %1420 = vst.msk [vmem:[#allocation2 + $0x6] sm:$0x1] %vm1278_vm11, %v1413_v14  ;;  %2125 = vst.msk [vmem:[#allocation2 + $0x1] sm:$0x1] %vm1278_vm11, %v2118_v29 }
0x185f   :  { %2123 = vst.msk [vmem:[#allocation2 + $0x6] sm:$0x1] %vm1275_vm10, %v2118_v29  ;;  %v2235_v36 = vcombine.high %v2234_v44, %v2234_v44  ;;  %v2242_v48 = vrot.slane %v2234_v44, %v5009_v25 }
0x1860   :  { %v1695_v50 = vpop.permute.xlu0 %1694 }
0x1861   :  { %1700 = vst.msk [vmem:[#allocation2 + $0x3] sm:$0x1] %vm1275_vm10, %v1695_v50  ;;  %v2253_v28 = vrot.slane %v2242_v48, %v4693_v43  ;;  %v2249_v26 = vrot.slane %v2235_v36, %v5009_v25 }
0x1862   :  { %1702 = vst.msk [vmem:[#allocation2 + $0x4] sm:$0x1] %vm1278_vm11, %v1695_v50  ;;  %1843 = vst.msk [vmem:[#allocation2 + $0x3] sm:$0x1] %vm1278_vm11, %v1836_v27 }
0x1863   :  { %1841 = vst.msk [vmem:[#allocation2 + $0x4] sm:$0x1] %vm1275_vm10, %v1836_v27  ;;  %2258 = vrot.lane.b32.xlu0 %v2253_v28, %s4570_s14  ;;  %v2257_v53 = vrot.slane %v2249_v26, %v4693_v43  ;;  %v2486_v28 = vpop.permute.xlu1 %2485 }
0x1864   :  { %v1415_v51 = vpop.permute.xlu0 %1414 }
0x1865   :  { %1419 = vst.msk [vmem:[#allocation2 + $0x9] sm:$0x1] %vm1275_vm10, %v1415_v51 }
0x1866   :  { %1421 = vst.msk [vmem:[#allocation2 + $0xe] sm:$0x1] %vm1278_vm11, %v1415_v51  ;;  %2126 = vst.msk [vmem:[#allocation2 + $0x9] sm:$0x1] %vm1278_vm11, %v2120_v52 }
0x1867   :  { %2124 = vst.msk [vmem:[#allocation2 + $0xe] sm:$0x1] %vm1275_vm10, %v2120_v52  ;;  %2260 = vrot.lane.b32.xlu0 %v2257_v53, %s4570_s14 }
0x1868   :  { %v1697_v55 = vpop.permute.xlu0 %1696 }
0x1869   :  { %1701 = vst.msk [vmem:[#allocation2 + $0xb] sm:$0x1] %vm1275_vm10, %v1697_v55 }
0x186a   :  { %1703 = vst.msk [vmem:[#allocation2 + $0xc] sm:$0x1] %vm1278_vm11, %v1697_v55  ;;  %1844 = vst.msk [vmem:[#allocation2 + $0xb] sm:$0x1] %vm1278_vm11, %v1838_v46 }
0x186b   :  { %1842 = vst.msk [vmem:[#allocation2 + $0xc] sm:$0x1] %vm1275_vm10, %v1838_v46 }
0x186c   :  { %v1977_v56 = vpop.permute.xlu0 %1976 }
0x186d   :  { %1982 = vst.msk [vmem:[#allocation2 + $0x5] sm:$0x1] %vm1275_vm10, %v1977_v56 }
0x186e   :  { %1984 = vst.msk [vmem:[#allocation2 + $0x2] sm:$0x1] %vm1278_vm11, %v1977_v56 }
0x1870   :  { %v1979_v30 = vpop.permute.xlu0 %1978 }
0x1871   :  { %1983 = vst.msk [vmem:[#allocation2 + $0xd] sm:$0x1] %vm1275_vm10, %v1979_v30 }
0x1872   :  { %1985 = vst.msk [vmem:[#allocation2 + $0xa] sm:$0x1] %vm1278_vm11, %v1979_v30 }
0x18d5   :  { %v2259_v63 = vpop.permute.xlu0 %2258 }
0x18d6   :  { %2264 = vst.msk [vmem:[#allocation2 + $0x7] sm:$0x1] %vm1275_vm10, %v2259_v63 }
0x18d7   :  { %2266 = vst.msk [vmem:[#allocation2] sm:$0x1] %vm1278_vm11, %v2259_v63 }
0x18d9   :  { %v2261_v39 = vpop.permute.xlu0 %2260 }
0x18da   :  { %2265 = vst.msk [vmem:[#allocation2 + $0xf] sm:$0x1] %vm1275_vm10, %v2261_v39 }
0x18db   :  { %2267 = vst.msk [vmem:[#allocation2 + $0x8] sm:$0x1] %vm1278_vm11, %v2261_v39 }
0x18de   :  { %v2268_v2 = vld [vmem:[#allocation2] sm:$0xff] }
0x18df   :  { %4093 = vmatprep.mubr.msk.f32.mxu1 %vm422_vm7, %v2268_v2 }
0x18e2   :  { %v2269_v3 = vld [vmem:[#allocation2 + $0x8] sm:$0xff] }
0x18e3   :  { %4094 = vmatmul.mubr.msk.f32.vlgmr.msra.gmra.mrb[14].mxu1 %vm422_vm7, %v2269_v3 }
0x18e4   :  { %4316 = vmatpush3.bf16.msra.mxu1 %v5082_v18  ;;  %4115 = vmatprep.mubr.msk.f32.mxu1 %vm4568_vm12, %v4566_v6 }
0x18e5   :  { %4317 = vmatprep.subr.bf16.mxu1 %v4567_v33 }
0x18e8   :  { %4319 = vmatpush3.bf16.msra.mxu1 %v5090_v22 }
0x18e9   :  { %4326 = vmatprep.subr.bf16.mxu1 %v4567_v33 }
0x19b6   :  { %v4095_v20 = vpop.f32.mrb[14].mxu1 }
0x19b7   :  { %v2360_v5 = vadd.f32 %v4095_v20, %v2281_v4  ;;  %v2354_v9 = vpop.f32.mrb[15].mxu1 }
0x19b8   :  { %v2355_v8 = vadd.f32 %v2354_v9, %v2281_v4 }
0x19b9   :  { %v2365_v41 = vrot.slane %v2360_v5, 7  ;;  %v2369_v10 = vrot.slane %v2360_v5, 6  ;;  %v2377_v11 = vrot.slane %v2360_v5, 5  ;;  %v2382_v13 = vrot.slane %v2360_v5, 1 }
0x19ba   :  { %v2368_v15 = vrot.slane %v2355_v8, 7  ;;  %v2373_v38 = vrot.slane %v2355_v8, 1  ;;  %v2376_v16 = vrot.slane %v2355_v8, 6  ;;  %v2381_v17 = vrot.slane %v2355_v8, 2 }
0x19bb   :  { %v2366_v54 = vsel %vm1097_vm8, %v2365_v41, %v2355_v8  ;;  %v2385_v19 = vrot.slane %v2355_v8, 5  ;;  %v2386_v45 = vrot.slane %v2360_v5, 4  ;;  %v2390_v21 = vrot.slane %v2355_v8, 3 }
0x19bc   :  { %v2370_v7 = vsel %vm1097_vm8, %v2369_v10, %v2368_v15  ;;  %v2374_v24 = vsel %vm1097_vm8, %v2360_v5, %v2373_v38  ;;  %v2378_v23 = vsel %vm1097_vm8, %v2377_v11, %v2376_v16  ;;  %v2383_v27 = vsel %vm1097_vm8, %v2382_v13, %v2381_v17 }
0x19bd   :  { %v2372_v42 = vsel %vm4855_vm9, %v2366_v54, %v2370_v7  ;;  %v2380_v31 = vsel %vm4855_vm9, %v2374_v24, %v2378_v23  ;;  %v2387_v29 = vsel %vm1097_vm8, %v2386_v45, %v2385_v19  ;;  %v2391_v34 = vrot.slane %v2360_v5, 2 }
0x19be   :  { %v2477_v1 = vadd.f32 %v2474_v61, %v2372_v42  ;;  %v5184_v35 = vsel %vm4855_vm9, %v2383_v27, %v2387_v29  ;;  %v2394_v60 = vrot.slane %v2355_v8, 4  ;;  %v2395_v32 = vrot.slane %v2360_v5, 3 }
0x19bf   :  { %v2392_v37 = vsel %vm1097_vm8, %v2391_v34, %v2390_v21  ;;  %v5189_v49 = vsel %vm4855_vm9, %v2387_v29, %v2383_v27  ;;  %v5193_v40 = vsel %vm4855_vm9, %v2378_v23, %v2374_v24  ;;  %v5197_v14 = vsel %vm4855_vm9, %v2370_v7, %v2366_v54 }
0x19c0   :  { %v3738_v0 = vmul.f32 -1.442695, %v2477_v1  ;;  %v2396_v44 = vsel %vm1097_vm8, %v2395_v32, %v2394_v60 }
0x19c1   :  { %v5202_v46 = vsel %vm4855_vm9, %v2392_v37, %v2396_v44  ;;  %v5206_v36 = vsel %vm4855_vm9, %v2396_v44, %v2392_v37 }
0x19c2   :  { %4448 = vpow2.f32 %v3738_v0 }
0x19cc   :  { %v4449_v48 = vpop.eup %4448 }
0x19cd   :  { %v2481_v50 = vadd.f32 1.0, %v4449_v48 }
0x19cf   :  { %4450 = vrcp.f32 %v2481_v50 }
0x19d9   :  { %v4451_v26 = vpop.eup %4450 }
0x19da   :  { %v2488_v51 = vmul.f32 %v4451_v26, %v2486_v28  ;;  %v2495_v56 = vsub.f32 1.0, %v4451_v26  ;;  %v2501_v12 = vmul.f32 0.0, %v4451_v26 }
0x19dc   :  { %2490 = vrot.lane.b32.xlu0 %v2488_v51, %s4569_s13 }
0x1a4e   :  { %v2491_v52 = vpop.permute.xlu0 %2490 }
0x1a4f   :  { %v2493_v53 = vadd.f32 %v2491_v52, %v2372_v42 }
0x1a51   :  { %4452 = vtanh.f32 %v2493_v53 }
0x1a5b   :  { %v4453_v55 = vpop.eup %4452 }
0x1a5c   :  { %2497 = vrot.lane.b32.xlu1 %v4453_v55, %s4570_s14 }
0x1ace   :  { %v2498_v30 = vpop.permute.xlu1 %2497 }
0x1acf   :  { %v2500_v57 = vmul.f32 %v2498_v30, %v2495_v56 }
0x1ad1   :  { %v5210_v59 = vadd.f32 %v2501_v12, %v2500_v57 }
0x1ad3   :  { %2544 = vrot.lane.b32.xlu0 %v5210_v59, %s4570_s14 }
0x1b45   :  { %v2545_v61 = vpop.permute.xlu0 %2544 }
0x1b46   :  { %4116 = vmatmul.mubr.msk.f32.vlgmr.msra.gmra.mrb[16].mxu1 %vm422_vm7, %v2545_v61 }
0x1b47   :  { %4328 = vmatpush3.bf16.msra.mxu1 %v5082_v18  ;;  %4137 = vmatprep.mubr.msk.f32.mxu1 %vm4568_vm12, %v4566_v6 }
0x1b48   :  { %4329 = vmatprep.subr.bf16.mxu1 %v4567_v33 }
0x1b4b   :  { %4331 = vmatpush3.bf16.msra.mxu1 %v5090_v22 }
0x1b4c   :  { %4338 = vmatprep.subr.bf16.mxu1 %v4567_v33 }
0x1c19   :  { %v2614_v62 = vpop.f32.mrb[16].mxu1 }
0x1c1a   :  { %v2615_v63 = vadd.f32 %v2614_v62, %v5155_v58  ;;  %v4117_v39 = vpop.f32.mrb[17].mxu1 }
0x1c1c   :  { %2626 = vrot.lane.b32.xlu1 %v2615_v63, %s4569_s13  ;;  %v2618_v2 = vadd.f32 %v2615_v63, %v2380_v31 }
0x1c1e   :  { %v3740_v3 = vmul.f32 -1.442695, %v2618_v2 }
0x1c20   :  { %4454 = vpow2.f32 %v3740_v3 }
0x1c2a   :  { %v4455_v4 = vpop.eup %4454 }
0x1c2b   :  { %v2622_v20 = vadd.f32 1.0, %v4455_v4 }
0x1c2d   :  { %4456 = vrcp.f32 %v2622_v20 }
0x1c37   :  { %v4457_v5 = vpop.eup %4456 }
0x1c38   :  { %v2636_v13 = vsub.f32 1.0, %v4457_v5  ;;  %v2642_v38 = vmul.f32 %v4457_v5, %v5210_v59 }
0x1c8e   :  { %v2627_v9 = vpop.permute.xlu1 %2626 }
0x1c8f   :  { %v2629_v8 = vmul.f32 %v4457_v5, %v2627_v9 }
0x1c91   :  { %2631 = vrot.lane.b32.xlu0 %v2629_v8, %s4569_s13 }
0x1d03   :  { %v2632_v41 = vpop.permute.xlu0 %2631 }
0x1d04   :  { %v2634_v10 = vadd.f32 %v2632_v41, %v2380_v31 }
0x1d06   :  { %4458 = vtanh.f32 %v2634_v10 }
0x1d10   :  { %v4459_v11 = vpop.eup %4458 }
0x1d11   :  { %2638 = vrot.lane.b32.xlu1 %v4459_v11, %s4570_s14 }
0x1d83   :  { %v2639_v15 = vpop.permute.xlu1 %2638 }
0x1d84   :  { %v2641_v16 = vmul.f32 %v2639_v15, %v2636_v13 }
0x1d86   :  { %v5226_v17 = vadd.f32 %v2642_v38, %v2641_v16 }
0x1d88   :  { %2685 = vrot.lane.b32.xlu0 %v5226_v17, %s4570_s14 }
0x1dfa   :  { %v2686_v54 = vpop.permute.xlu0 %2685 }
0x1dfb   :  { %4127 = vmatmul.mubr.msk.f32.vlgmr.msra.gmra.mrb[14].mxu0 %vm422_vm7, %v2686_v54 }
0x1dfc   :  { %4334 = vmatpush3.bf16.msra.mxu0 %v5082_v18  ;;  %4148 = vmatprep.mubr.msk.f32.mxu0 %vm4568_vm12, %v4566_v6 }
0x1dfd   :  { %4335 = vmatprep.subr.bf16.mxu0 %v4567_v33 }
0x1e00   :  { %4337 = vmatpush3.bf16.msra.mxu0 %v5090_v22 }
0x1e01   :  { %4344 = vmatprep.subr.bf16.mxu0 %v4567_v33 }
0x1ece   :  { %v2755_v19 = vpop.f32.mrb[14].mxu0 }
0x1ecf   :  { %v2756_v45 = vadd.f32 %v2755_v19, %v5155_v58  ;;  %v4128_v21 = vpop.f32.mrb[15].mxu0 }
0x1ed1   :  { %2767 = vrot.lane.b32.xlu1 %v2756_v45, %s4569_s13  ;;  %v2759_v7 = vadd.f32 %v2756_v45, %v5184_v35 }
0x1ed3   :  { %v3742_v24 = vmul.f32 -1.442695, %v2759_v7 }
0x1ed5   :  { %4460 = vpow2.f32 %v3742_v24 }
0x1edf   :  { %v4461_v23 = vpop.eup %4460 }
0x1ee0   :  { %v2763_v27 = vadd.f32 1.0, %v4461_v23 }
0x1ee2   :  { %4462 = vrcp.f32 %v2763_v27 }
0x1eec   :  { %v4463_v42 = vpop.eup %4462 }
0x1eed   :  { %v2777_v32 = vsub.f32 1.0, %v4463_v42  ;;  %v2783_v0 = vmul.f32 %v4463_v42, %v5226_v17 }
0x1f43   :  { %v2768_v31 = vpop.permute.xlu1 %2767 }
0x1f44   :  { %v2770_v29 = vmul.f32 %v4463_v42, %v2768_v31 }
0x1f46   :  { %2772 = vrot.lane.b32.xlu0 %v2770_v29, %s4569_s13 }
0x1fb8   :  { %v2773_v34 = vpop.permute.xlu0 %2772 }
0x1fb9   :  { %v2775_v1 = vadd.f32 %v2773_v34, %v5184_v35 }
0x1fbb   :  { %4464 = vtanh.f32 %v2775_v1 }
0x1fc5   :  { %v4465_v60 = vpop.eup %4464 }
0x1fc6   :  { %2779 = vrot.lane.b32.xlu1 %v4465_v60, %s4570_s14 }
0x2038   :  { %v2780_v37 = vpop.permute.xlu1 %2779 }
0x2039   :  { %v2782_v44 = vmul.f32 %v2780_v37, %v2777_v32 }
0x203b   :  { %v5244_v48 = vadd.f32 %v2783_v0, %v2782_v44 }
0x203d   :  { %2826 = vrot.lane.b32.xlu0 %v5244_v48, %s4570_s14 }
0x20af   :  { %v2827_v50 = vpop.permute.xlu0 %2826 }
0x20b0   :  { %4138 = vmatmul.mubr.msk.f32.vlgmr.msra.gmra.mrb[18].mxu1 %vm422_vm7, %v2827_v50 }
0x20b1   :  { %4340 = vmatpush3.bf16.msra.mxu1 %v5082_v18  ;;  %4159 = vmatprep.mubr.msk.f32.mxu1 %vm4568_vm12, %v4566_v6 }
0x20b2   :  { %4341 = vmatprep.subr.bf16.mxu1 %v4567_v33 }
0x20b5   :  { %4343 = vmatpush3.bf16.msra.mxu1 %v5090_v22 }
0x20b6   :  { %4350 = vmatprep.subr.bf16.mxu1 %v4567_v33 }
0x2183   :  { %v2896_v35 = vpop.f32.mrb[18].mxu1 }
0x2184   :  { %v2897_v28 = vadd.f32 %v2896_v35, %v5155_v58  ;;  %v4139_v26 = vpop.f32.mrb[19].mxu1 }
0x2186   :  { %2908 = vrot.lane.b32.xlu1 %v2897_v28, %s4569_s13  ;;  %v2900_v51 = vadd.f32 %v2897_v28, %v5202_v46 }
0x2188   :  { %v3744_v52 = vmul.f32 -1.442695, %v2900_v51 }
0x218a   :  { %4466 = vpow2.f32 %v3744_v52 }
0x2194   :  { %v4467_v53 = vpop.eup %4466 }
0x2195   :  { %v2904_v55 = vadd.f32 1.0, %v4467_v53 }
0x2197   :  { %4468 = vrcp.f32 %v2904_v55 }
0x21a1   :  { %v4469_v56 = vpop.eup %4468 }
0x21a2   :  { %v2918_v63 = vsub.f32 1.0, %v4469_v56  ;;  %v2924_v2 = vmul.f32 %v4469_v56, %v5244_v48 }
0x21f8   :  { %v2909_v30 = vpop.permute.xlu1 %2908 }
0x21f9   :  { %v2911_v12 = vmul.f32 %v4469_v56, %v2909_v30 }
0x21fb   :  { %2913 = vrot.lane.b32.xlu0 %v2911_v12, %s4569_s13 }
0x226d   :  { %v2914_v57 = vpop.permute.xlu0 %2913 }
0x226e   :  { %v2916_v61 = vadd.f32 %v2914_v57, %v5202_v46 }
0x2270   :  { %4470 = vtanh.f32 %v2916_v61 }
0x227a   :  { %v4471_v62 = vpop.eup %4470 }
0x227b   :  { %2920 = vrot.lane.b32.xlu1 %v4471_v62, %s4570_s14 }
0x22ed   :  { %v2921_v39 = vpop.permute.xlu1 %2920 }
0x22ee   :  { %v2923_v3 = vmul.f32 %v2921_v39, %v2918_v63 }
0x22f0   :  { %v5262_v4 = vadd.f32 %v2924_v2, %v2923_v3 }
0x22f2   :  { %2967 = vrot.lane.b32.xlu0 %v5262_v4, %s4570_s14 }
0x2364   :  { %v2968_v20 = vpop.permute.xlu0 %2967 }
0x2365   :  { %4149 = vmatmul.mubr.msk.f32.vlgmr.msra.gmra.mrb[16].mxu0 %vm422_vm7, %v2968_v20 }
0x2366   :  { %4346 = vmatpush3.bf16.msra.mxu0 %v5082_v18  ;;  %4170 = vmatprep.mubr.msk.f32.mxu0 %vm4568_vm12, %v4566_v6 }
0x2367   :  { %4347 = vmatprep.subr.bf16.mxu0 %v4567_v33 }
0x236a   :  { %4349 = vmatpush3.bf16.msra.mxu0 %v5090_v22 }
0x2438   :  { %v3037_v46 = vpop.f32.mrb[16].mxu0 }
0x2439   :  { %v3038_v5 = vadd.f32 %v3037_v46, %v5155_v58  ;;  %v4150_v9 = vpop.f32.mrb[17].mxu0 }
0x243b   :  { %3049 = vrot.lane.b32.xlu1 %v3038_v5, %s4569_s13  ;;  %v3041_v8 = vadd.f32 %v3038_v5, %v5206_v36 }
0x243d   :  { %v3746_v41 = vmul.f32 -1.442695, %v3041_v8 }
0x243f   :  { %4472 = vpow2.f32 %v3746_v41 }
0x2449   :  { %v4473_v10 = vpop.eup %4472 }
0x244a   :  { %v3045_v11 = vadd.f32 1.0, %v4473_v10 }
0x244c   :  { %4474 = vrcp.f32 %v3045_v11 }
0x2456   :  { %v4475_v13 = vpop.eup %4474 }
0x2457   :  { %v3059_v45 = vsub.f32 1.0, %v4475_v13  ;;  %v3065_v7 = vmul.f32 %v4475_v13, %v5262_v4 }
0x24ad   :  { %v3050_v15 = vpop.permute.xlu1 %3049 }
0x24ae   :  { %v3052_v38 = vmul.f32 %v4475_v13, %v3050_v15 }
0x24b0   :  { %3054 = vrot.lane.b32.xlu0 %v3052_v38, %s4569_s13 }
0x2522   :  { %v3055_v16 = vpop.permute.xlu0 %3054 }
0x2523   :  { %v3057_v54 = vadd.f32 %v3055_v16, %v5206_v36  ;;  %v2510_v16 = vrot.slane %v5210_v59, %v5009_v25 }
0x2525   :  { %4476 = vtanh.f32 %v3057_v54 }
0x252f   :  { %v4477_v19 = vpop.eup %4476 }
0x2530   :  { %3061 = vrot.lane.b32.xlu1 %v4477_v19, %s4570_s14 }
0x25a2   :  { %v3062_v21 = vpop.permute.xlu1 %3061 }
0x25a3   :  { %v3064_v24 = vmul.f32 %v3062_v21, %v3059_v45  ;;  %v2792_v45 = vrot.slane %v5244_v48, %v5009_v25  ;;  %v2518_v21 = vrot.slane %v2510_v16, %v5009_v25 }
0x25a5   :  { %v5279_v23 = vadd.f32 %v3065_v7, %v3064_v24  ;;  %v2529_v24 = vrot.slane %v2518_v21, %v4693_v43 }
0x25a7   :  { %3108 = vrot.lane.b32.xlu0 %v5279_v23, %s4570_s14  ;;  %v3074_v7 = vrot.slane %v5279_v23, %v5009_v25 }
0x2619   :  { %v3109_v27 = vpop.permute.xlu0 %3108 }
0x261a   :  { %4160 = vmatmul.mubr.msk.f32.vlgmr.msra.gmra.mrb[20].mxu1 %vm422_vm7, %v3109_v27  ;;  %v2800_v27 = vrot.slane %v2792_v45, %v5009_v25 }
0x261b   :  { %4352 = vmatpush3.bf16.msra.mxu1 %v5082_v18  ;;  %4181 = vmatprep.mubr.msk.f32.mxu1 %vm4568_vm12, %v4566_v6 }
0x261c   :  { %4353 = vmatprep.subr.bf16.mxu1 %v4567_v33  ;;  %v2811_v48 = vrot.slane %v2800_v27, %v4693_v43  ;;  %v3537_v27 = vld [vmem:[#allocation6 + $0x20] sm:$0xff] }
0x261f   :  { %4355 = vmatpush3.bf16.msra.mxu1 %v5090_v22 }
0x26ed   :  { %v3178_v36 = vpop.f32.mrb[20].mxu1 }
0x26ee   :  { %v3179_v42 = vadd.f32 %v3178_v36, %v5155_v58  ;;  %v4161_v31 = vpop.f32.mrb[21].mxu1  ;;  %v3082_v36 = vrot.slane %v3074_v7, %v5009_v25 }
0x26f0   :  { %3190 = vrot.lane.b32.xlu1 %v3179_v42, %s4569_s13  ;;  %v3182_v29 = vadd.f32 %v3179_v42, %v5189_v49  ;;  %v3093_v42 = vrot.slane %v3082_v36, %v4693_v43  ;;  %v3539_v36 = vld [vmem:[#allocation6 + $0x30] sm:$0xff] }
0x26f2   :  { %v3748_v34 = vmul.f32 -1.442695, %v3182_v29 }
0x26f4   :  { %4478 = vpow2.f32 %v3748_v34 }
0x26fe   :  { %v4479_v1 = vpop.eup %4478 }
0x26ff   :  { %v3186_v60 = vadd.f32 1.0, %v4479_v1  ;;  %v2793_v1 = vcombine.high %v2792_v45, %v2792_v45 }
0x2701   :  { %4480 = vrcp.f32 %v3186_v60 }
0x270b   :  { %v4481_v18 = vpop.eup %4480 }
0x270c   :  { %v3200_v44 = vsub.f32 1.0, %v4481_v18  ;;  %v3206_v35 = vmul.f32 %v4481_v18, %v5279_v23  ;;  %v2511_v23 = vcombine.high %v2510_v16, %v2510_v16  ;;  %v3535_v16 = vld [vmem:[#allocation6 + $0x10] sm:$0xff] }
0x270e   :  { %v2525_v34 = vrot.slane %v2511_v23, %v5009_v25 }
0x2710   :  { %v2533_v60 = vrot.slane %v2525_v34, %v4693_v43 }
0x2762   :  { %v3191_v32 = vpop.permute.xlu1 %3190 }
0x2763   :  { %v3193_v37 = vmul.f32 %v4481_v18, %v3191_v32  ;;  %v2807_v18 = vrot.slane %v2793_v1, %v5009_v25  ;;  %v3075_v32 = vcombine.high %v3074_v7, %v3074_v7  ;;  %v3538_v7 = vld [vmem:[#allocation6 + $0x28] sm:$0xff] }
0x2765   :  { %3195 = vrot.lane.b32.xlu0 %v3193_v37, %s4569_s13  ;;  %v2815_v37 = vrot.slane %v2807_v18, %v4693_v43 }
0x27d7   :  { %v3196_v33 = vpop.permute.xlu0 %3195 }
0x27d8   :  { %v3198_v22 = vadd.f32 %v3196_v33, %v5189_v49  ;;  %v3089_v33 = vrot.slane %v3075_v32, %v5009_v25 }
0x27da   :  { %4482 = vtanh.f32 %v3198_v22 }
0x27e4   :  { %v4483_v0 = vpop.eup %4482 }
0x27e5   :  { %3202 = vrot.lane.b32.xlu1 %v4483_v0, %s4570_s14  ;;  %v3097_v0 = vrot.slane %v3089_v33, %v4693_v43 }
0x2857   :  { %v3203_v50 = vpop.permute.xlu1 %3202 }
0x2858   :  { %v3205_v28 = vmul.f32 %v3203_v50, %v3200_v44 }
0x285a   :  { %v5296_v26 = vadd.f32 %v3206_v35, %v3205_v28 }
0x285c   :  { %3249 = vrot.lane.b32.xlu0 %v5296_v26, %s4570_s14 }
0x28ce   :  { %v3250_v51 = vpop.permute.xlu0 %3249 }
0x28cf   :  { %4171 = vmatmul.mubr.msk.f32.vlgmr.msra.gmra.mrb[18].mxu0 %vm422_vm7, %v3250_v51 }
0x28d0   :  { %3624 = vmatprep.mubr.f32.mxu0 %v4566_v6 }
0x29a2   :  { %v3319_v49 = vpop.f32.mrb[18].mxu0 }
0x29a3   :  { %v3320_v52 = vadd.f32 %v3319_v49, %v5155_v58  ;;  %v4172_v53 = vpop.f32.mrb[19].mxu0  ;;  %v2651_v49 = vrot.slane %v5226_v17, %v5009_v25 }
0x29a4   :  { %v2933_v53 = vrot.slane %v5262_v4, %v5009_v25 }
0x29a5   :  { %3331 = vrot.lane.b32.xlu1 %v3320_v52, %s4569_s13  ;;  %v3323_v55 = vadd.f32 %v3320_v52, %v5193_v40 }
0x29a7   :  { %v3750_v56 = vmul.f32 -1.442695, %v3323_v55 }
0x29a9   :  { %4484 = vpow2.f32 %v3750_v56 }
0x29b3   :  { %v4485_v30 = vpop.eup %4484 }
0x29b4   :  { %v3327_v12 = vadd.f32 1.0, %v4485_v30  ;;  %v3215_v30 = vrot.slane %v5296_v26, %v5009_v25 }
0x29b6   :  { %4486 = vrcp.f32 %v3327_v12 }
0x29c0   :  { %v4487_v57 = vpop.eup %4486 }
0x29c1   :  { %v3341_v3 = vsub.f32 1.0, %v4487_v57  ;;  %v3347_v46 = vmul.f32 %v4487_v57, %v5296_v26 }
0x2a17   :  { %v3332_v61 = vpop.permute.xlu1 %3331 }
0x2a18   :  { %v3334_v62 = vmul.f32 %v4487_v57, %v3332_v61  ;;  %v2941_v57 = vrot.slane %v2933_v53, %v5009_v25 }
0x2a1a   :  { %3336 = vrot.lane.b32.xlu0 %v3334_v62, %s4569_s13  ;;  %v2952_v4 = vrot.slane %v2941_v57, %v4693_v43  ;;  %v3223_v62 = vrot.slane %v3215_v30, %v5009_v25 }
0x2a8c   :  { %v3337_v63 = vpop.permute.xlu0 %3336 }
0x2a8d   :  { %v3339_v39 = vadd.f32 %v3337_v63, %v5193_v40  ;;  %v2652_v63 = vcombine.high %v2651_v49, %v2651_v49 }
0x2a8f   :  { %4488 = vtanh.f32 %v3339_v39  ;;  %v3234_v39 = vrot.slane %v3223_v62, %v4693_v43 }
0x2a99   :  { %v4489_v2 = vpop.eup %4488 }
0x2a9a   :  { %3343 = vrot.lane.b32.xlu1 %v4489_v2, %s4570_s14  ;;  %v2666_v2 = vrot.slane %v2652_v63, %v5009_v25 }
0x2b0c   :  { %v3344_v20 = vpop.permute.xlu1 %3343 }
0x2b0d   :  { %v3346_v5 = vmul.f32 %v3344_v20, %v3341_v3  ;;  %v2934_v3 = vcombine.high %v2933_v53, %v2933_v53  ;;  %v2674_v20 = vrot.slane %v2666_v2, %v4693_v43 }
0x2b0f   :  { %v5309_v9 = vadd.f32 %v3347_v46, %v3346_v5  ;;  %v2948_v46 = vrot.slane %v2934_v3, %v5009_v25  ;;  %v3216_v5 = vcombine.high %v3215_v30, %v3215_v30 }
0x2b11   :  { %3390 = vrot.lane.b32.xlu0 %v5309_v9, %s4570_s14  ;;  %v3356_v59 = vrot.slane %v5309_v9, %v5009_v25 }
0x2b13   :  { %v3364_v31 = vrot.slane %v3356_v59, %v5009_v25  ;;  %v3357_v22 = vcombine.high %v3356_v59, %v3356_v59 }
0x2b15   :  { %v3375_v29 = vrot.slane %v3364_v31, %v4693_v43  ;;  %v3371_v44 = vrot.slane %v3357_v22, %v5009_v25  ;;  %v4362_v31 = vpack.c.bf16 %v3539_v36, %v3537_v27 }
0x2b17   :  { %v3379_v50 = vrot.slane %v3371_v44, %v4693_v43 }
0x2b83   :  { %v3391_v8 = vpop.permute.xlu0 %3390 }
0x2b84   :  { %4182 = vmatmul.mubr.msk.f32.vlgmr.msra.gmra.mrb[22].mxu1 %vm422_vm7, %v3391_v8  ;;  %v2956_v8 = vrot.slane %v2948_v46, %v4693_v43 }
0x2c57   :  { %v3460_v41 = vpop.f32.mrb[22].mxu1 }
0x2c58   :  { %v3461_v40 = vadd.f32 %v3460_v41, %v5155_v58  ;;  %v4183_v10 = vpop.f32.mrb[23].mxu1  ;;  %v3230_v41 = vrot.slane %v3216_v5, %v5009_v25 }
0x2c59   :  { %v3534_v10 = vld [vmem:[#allocation6 + $0x8] sm:$0xff] }
0x2c5a   :  { %3472 = vrot.lane.b32.xlu1 %v3461_v40, %s4569_s13  ;;  %v3464_v11 = vadd.f32 %v3461_v40, %v5197_v14  ;;  %v3238_v40 = vrot.slane %v3230_v41, %v4693_v43 }
0x2c5c   :  { %v3752_v13 = vmul.f32 -1.442695, %v3464_v11  ;;  %v3536_v11 = vld [vmem:[#allocation6 + $0x18] sm:$0xff] }
0x2c5e   :  { %4490 = vpow2.f32 %v3752_v13  ;;  %v3533_v13 = vld [vmem:[#allocation6] sm:$0xff] }
0x2c5f   :  { %v4358_v45 = vpack.c.bf16 %v3535_v16, %v3533_v13 }
0x2c68   :  { %v4491_v15 = vpop.eup %4490 }
0x2c69   :  { %v3468_v38 = vadd.f32 1.0, %v4491_v15 }
0x2c6b   :  { %4492 = vrcp.f32 %v3468_v38  ;;  %v4356_v38 = vpack.c.bf16 %v3536_v11, %v3534_v10 }
0x2c6d   :  { %4357 = vmatprep.subr.bf16.mxu0 %v4356_v38 }
0x2c6e   :  { %4359 = vmatpush1.bf16.msra.mxu0 %v4358_v45 }
0x2c75   :  { %v5319_v54 = vpop.eup %4492 }
0x2c76   :  { %v3482_v15 = vsub.f32 1.0, %v5319_v54 }
0x2ccc   :  { %v3473_v19 = vpop.permute.xlu1 %3472 }
0x2ccd   :  { %v3475_v58 = vmul.f32 %v5319_v54, %v3473_v19 }
0x2ccf   :  { %3477 = vrot.lane.b32.xlu0 %v3475_v58, %s4569_s13  ;;  %v3488_v58 = vmul.f32 %v5319_v54, %v5309_v9 }
0x2cd3   :  { %2534 = vrot.lane.b32.xlu0 %v2529_v24, %s4570_s14  ;;  %v3540_v24 = vld [vmem:[#allocation6 + $0x38] sm:$0xff] }
0x2cd7   :  { %2816 = vrot.lane.b32.xlu0 %v2811_v48, %s4570_s14  ;;  %v4360_v48 = vpack.c.bf16 %v3540_v24, %v3538_v7 }
0x2cd9   :  { %4361 = vmatprep.subr.bf16.mxu0 %v4360_v48 }
0x2cda   :  { %4363 = vmatpush1.bf16.msra.mxu0 %v4362_v31 }
0x2cdb   :  { %3098 = vrot.lane.b32.xlu0 %v3093_v42, %s4570_s14 }
0x2cdf   :  { %3380 = vrot.lane.b32.xlu0 %v3375_v29, %s4570_s14 }
0x2ce3   :  { %2536 = vrot.lane.b32.xlu0 %v2533_v60, %s4570_s14 }
0x2ce7   :  { %2818 = vrot.lane.b32.xlu0 %v2815_v37, %s4570_s14 }
0x2ceb   :  { %3100 = vrot.lane.b32.xlu0 %v3097_v0, %s4570_s14 }
0x2cef   :  { %3382 = vrot.lane.b32.xlu0 %v3379_v50, %s4570_s14 }
0x2d41   :  { %v3478_v35 = vpop.permute.xlu0 %3477 }
0x2d42   :  { %v3480_v28 = vadd.f32 %v3478_v35, %v5197_v14  ;;  %v2659_v14 = vrot.slane %v2651_v49, %v5009_v25 }
0x2d44   :  { %4494 = vtanh.f32 %v3480_v28  ;;  %v2670_v17 = vrot.slane %v2659_v14, %v4693_v43  ;;  %v3542_v28 = vld [vmem:[#allocation6 + $0x40] ss:$8 sm:$0x3] }
0x2d45   :  { %v2535_v51 = vpop.permute.xlu0 %2534  ;;  %v3551_v49 = vrot.slane %v3542_v28, %v4701_v47 }
0x2d46   :  { %2540 = vst.msk [vmem:[#allocation3] sm:$0x1] %vm1275_vm10, %v2535_v51 }
0x2d47   :  { %2542 = vst.msk [vmem:[#allocation3 + $0x7] sm:$0x1] %vm1278_vm11, %v2535_v51  ;;  %v3547_v51 = vrot.slane %v3542_v28, %v4693_v43 }
0x2d49   :  { %v2817_v52 = vpop.permute.xlu0 %2816 }
0x2d4a   :  { %2822 = vst.msk [vmem:[#allocation3 + $0x2] sm:$0x1] %vm1275_vm10, %v2817_v52 }
0x2d4b   :  { %2824 = vst.msk [vmem:[#allocation3 + $0x5] sm:$0x1] %vm1278_vm11, %v2817_v52 }
0x2d4d   :  { %v5362_v55 = vpop.permute.xlu0 %3098 }
0x2d4e   :  { %v4495_v56 = vpop.eup %4494 }
0x2d4f   :  { %3484 = vrot.lane.b32.xlu1 %v4495_v56, %s4570_s14 }
0x2d51   :  { %v3381_v12 = vpop.permute.xlu0 %3380 }
0x2d53   :  { %2675 = vrot.lane.b32.xlu1 %v2670_v17, %s4570_s14 }
0x2d55   :  { %v2537_v61 = vpop.permute.xlu0 %2536 }
0x2d56   :  { %2541 = vst.msk [vmem:[#allocation3 + $0x8] sm:$0x1] %vm1275_vm10, %v2537_v61 }
0x2d57   :  { %2543 = vst.msk [vmem:[#allocation3 + $0xf] sm:$0x1] %vm1278_vm11, %v2537_v61  ;;  %2957 = vrot.lane.b32.xlu1 %v2952_v4, %s4570_s14 }
0x2d59   :  { %v2819_v26 = vpop.permute.xlu0 %2818 }
0x2d5a   :  { %2823 = vst.msk [vmem:[#allocation3 + $0xa] sm:$0x1] %vm1275_vm10, %v2819_v26 }
0x2d5b   :  { %2825 = vst.msk [vmem:[#allocation3 + $0xd] sm:$0x1] %vm1278_vm11, %v2819_v26  ;;  %3239 = vrot.lane.b32.xlu1 %v3234_v39, %s4570_s14 }
0x2d5d   :  { %v3101_v60 = vpop.permute.xlu0 %3100 }
0x2d5f   :  { %2677 = vrot.lane.b32.xlu1 %v2674_v20, %s4570_s14 }
0x2d63   :  { %2959 = vrot.lane.b32.xlu1 %v2956_v8, %s4570_s14 }
0x2d67   :  { %3241 = vrot.lane.b32.xlu1 %v3238_v40, %s4570_s14 }
0x2dc1   :  { %v3485_v19 = vpop.permute.xlu1 %3484 }
0x2dc2   :  { %v3487_v21 = vmul.f32 %v3485_v19, %v3482_v15 }
0x2dc4   :  { %v3489_v59 = vadd.f32 %v3488_v58, %v3487_v21 }
0x2dc5   :  { %v2676_v42 = vpop.permute.xlu1 %2675 }
0x2dc6   :  { %v3497_v23 = vrot.slane %v3489_v59, %v5009_v25  ;;  %2681 = vst.msk [vmem:[#allocation3 + $0x1] sm:$0x1] %vm1275_vm10, %v2676_v42 }
0x2dc7   :  { %2683 = vst.msk [vmem:[#allocation3 + $0x6] sm:$0x1] %vm1278_vm11, %v2676_v42  ;;  %3388 = vst.msk [vmem:[#allocation3 + $0x1] sm:$0x1] %vm1278_vm11, %v3381_v12 }
0x2dc8   :  { %3386 = vst.msk [vmem:[#allocation3 + $0x6] sm:$0x1] %vm1275_vm10, %v3381_v12  ;;  %v3498_v9 = vcombine.high %v3497_v23, %v3497_v23  ;;  %v3505_v54 = vrot.slane %v3497_v23, %v5009_v25 }
0x2dc9   :  { %v2958_v29 = vpop.permute.xlu1 %2957 }
0x2dca   :  { %2963 = vst.msk [vmem:[#allocation3 + $0x3] sm:$0x1] %vm1275_vm10, %v2958_v29  ;;  %v3516_v34 = vrot.slane %v3505_v54, %v4693_v43  ;;  %v3512_v1 = vrot.slane %v3498_v9, %v5009_v25  ;;  %v3383_v25 = vpop.permute.xlu0 %3382 }
0x2dcb   :  { %2965 = vst.msk [vmem:[#allocation3 + $0x4] sm:$0x1] %vm1278_vm11, %v2958_v29  ;;  %3106 = vst.msk [vmem:[#allocation3 + $0x3] sm:$0x1] %vm1278_vm11, %v5362_v55 }
0x2dcc   :  { %3104 = vst.msk [vmem:[#allocation3 + $0x4] sm:$0x1] %vm1275_vm10, %v5362_v55  ;;  %3521 = vrot.lane.b32.xlu1 %v3516_v34, %s4570_s14  ;;  %v3520_v32 = vrot.slane %v3512_v1, %v4693_v43 }
0x2dcd   :  { %v3240_v18 = vpop.permute.xlu1 %3239 }
0x2dce   :  { %3245 = vst.msk [vmem:[#allocation3 + $0x5] sm:$0x1] %vm1275_vm10, %v3240_v18 }
0x2dcf   :  { %3247 = vst.msk [vmem:[#allocation3 + $0x2] sm:$0x1] %vm1278_vm11, %v3240_v18 }
0x2dd0   :  { %3523 = vrot.lane.b32.xlu1 %v3520_v32, %s4570_s14 }
0x2dd1   :  { %v2678_v37 = vpop.permute.xlu1 %2677 }
0x2dd2   :  { %2682 = vst.msk [vmem:[#allocation3 + $0x9] sm:$0x1] %vm1275_vm10, %v2678_v37 }
0x2dd3   :  { %2684 = vst.msk [vmem:[#allocation3 + $0xe] sm:$0x1] %vm1278_vm11, %v2678_v37  ;;  %3389 = vst.msk [vmem:[#allocation3 + $0x9] sm:$0x1] %vm1278_vm11, %v3383_v25 }
0x2dd4   :  { %3387 = vst.msk [vmem:[#allocation3 + $0xe] sm:$0x1] %vm1275_vm10, %v3383_v25 }
0x2dd5   :  { %v2960_v33 = vpop.permute.xlu1 %2959 }
0x2dd6   :  { %2964 = vst.msk [vmem:[#allocation3 + $0xb] sm:$0x1] %vm1275_vm10, %v2960_v33 }
0x2dd7   :  { %2966 = vst.msk [vmem:[#allocation3 + $0xc] sm:$0x1] %vm1278_vm11, %v2960_v33  ;;  %3107 = vst.msk [vmem:[#allocation3 + $0xb] sm:$0x1] %vm1278_vm11, %v3101_v60 }
0x2dd8   :  { %3105 = vst.msk [vmem:[#allocation3 + $0xc] sm:$0x1] %vm1275_vm10, %v3101_v60 }
0x2dd9   :  { %v3242_v22 = vpop.permute.xlu1 %3241 }
0x2dda   :  { %3246 = vst.msk [vmem:[#allocation3 + $0xd] sm:$0x1] %vm1275_vm10, %v3242_v22 }
0x2ddb   :  { %3248 = vst.msk [vmem:[#allocation3 + $0xa] sm:$0x1] %vm1278_vm11, %v3242_v22 }
0x2e3e   :  { %v3522_v0 = vpop.permute.xlu1 %3521 }
0x2e3f   :  { %3527 = vst.msk [vmem:[#allocation3 + $0x7] sm:$0x1] %vm1275_vm10, %v3522_v0 }
0x2e40   :  { %3529 = vst.msk [vmem:[#allocation3] sm:$0x1] %vm1278_vm11, %v3522_v0 }
0x2e42   :  { %v3524_v44 = vpop.permute.xlu1 %3523 }
0x2e43   :  { %3528 = vst.msk [vmem:[#allocation3 + $0xf] sm:$0x1] %vm1275_vm10, %v3524_v44 }
0x2e44   :  { %3530 = vst.msk [vmem:[#allocation3 + $0x8] sm:$0x1] %vm1278_vm11, %v3524_v44 }
0x2e47   :  { %v3531_v50 = vld [vmem:[#allocation3] sm:$0xff] }
0x2e48   :  { %3753 = vmatmul.mubr.msk.f32.vlgmr.msra.gmra.mrb[20].mxu0 %vm422_vm7, %v3531_v50 }
0x2e49   :  { %3630 = vmatprep.mubr.f32.mxu0 %v4566_v6 }
0x2e4b   :  { %v3532_v35 = vld [vmem:[#allocation3 + $0x8] sm:$0xff] }
0x2e4c   :  { %3754 = vmatmul.mubr.msk.f32.gmra.mrb[22].mxu0 %vm422_vm7, %v3532_v35 }
0x2f1b   :  { %v3626_v52 = vpop.f32.mrb[20].mxu0 }
0x2f1c   :  { %v3627_v53 = vadd.f32 %v3626_v52, %v3547_v51  ;;  %v3628_v55 = vpop.f32.mrb[21].mxu0 }
0x2f1d   :  { %v3629_v14 = vadd.f32 %v3628_v55, %v3551_v49 }
0x2f1e   :  { %v3755_v56 = vmul.f32 -1.442695, %v3627_v53 }
0x2f1f   :  { %v3756_v30 = vmul.f32 -1.442695, %v3629_v14  ;;  %v3632_v12 = vpop.f32.mrb[22].mxu0 }
0x2f20   :  { %4496 = vpow2.f32 %v3755_v56  ;;  %v3633_v17 = vadd.f32 %v3632_v12, %v3547_v51  ;;  %v3634_v57 = vpop.f32.mrb[23].mxu0 }
0x2f21   :  { %4498 = vpow2.f32 %v3756_v30  ;;  %v3635_v6 = vadd.f32 %v3634_v57, %v3551_v49 }
0x2f22   :  { %v3757_v61 = vmul.f32 -1.442695, %v3633_v17 }
0x2f23   :  { %v3758_v4 = vmul.f32 -1.442695, %v3635_v6 }
0x2f24   :  { %4500 = vpow2.f32 %v3757_v61 }
0x2f25   :  { %4502 = vpow2.f32 %v3758_v4 }
0x2f2a   :  { %v4497_v62 = vpop.eup %4496 }
0x2f2b   :  { %v4499_v43 = vpop.eup %4498  ;;  %v3649_v63 = vadd.f32 1.0, %v4497_v62 }
0x2f2c   :  { %v3650_v47 = vadd.f32 1.0, %v4499_v43 }
0x2f2d   :  { %4504 = vrcp.f32 %v3649_v63 }
0x2f2e   :  { %v4501_v26 = vpop.eup %4500  ;;  %4506 = vrcp.f32 %v3650_v47 }
0x2f2f   :  { %v4503_v39 = vpop.eup %4502  ;;  %v3651_v2 = vadd.f32 1.0, %v4501_v26 }
0x2f30   :  { %v3652_v3 = vadd.f32 1.0, %v4503_v39 }
0x2f31   :  { %4508 = vrcp.f32 %v3651_v2 }
0x2f32   :  { %4510 = vrcp.f32 %v3652_v3 }
0x2f37   :  { %v4505_v20 = vpop.eup %4504 }
0x2f38   :  { %v4507_v46 = vpop.eup %4506  ;;  %3661 = vst [vmem:[%s5448_s6] sm:$0xff] %v4505_v20 }
0x2f39   :  { %3662 = vst [vmem:[%s5448_s6 + $0x8] sm:$0xff] %v4507_v46 }
0x2f3b   :  { %v4509_v5 = vpop.eup %4508 }
0x2f3c   :  { %v4511_v8 = vpop.eup %4510  ;;  %3663 = vst [vmem:[%s5448_s6 + $0x10] sm:$0xff] %v4509_v5 }
0x2f3d   :  { %3664 = vst [vmem:[%s5448_s6 + $0x18] sm:$0xff] %v4511_v8 }
0x2f3e   :  { %3669 = vsyncpa [#allocation5], 1 }
0x2f3f   :  { %3670 = vsyncpa [#allocation7], 1 }

</bundles_post_ra>
